<compile_context>
chip_gen: v5e
topology: v5e:2x2
jax: 0.10.0
libtpu: 0.0.40
codegen_flags: <defaults>
</compile_context>

<pallas_src>
from functools import partial

import jax
import jax.numpy as jnp
from jax.experimental import pallas as pl
from jax.experimental.pallas import tpu as pltpu

_PAD = 2
_K = 5
_WROW = 32  # padded row stride: multiple of 32 so every dy*_WROW shift offset is
            # aligned to the bf16 (16,128) sublane tile -> no relayout copies.


def _oracle_conv_kernel(x_ref, w_ref, b_ref, o_ref, *, K, Wrow, M):
    """5x5 conv as K row-shifted matmuls over a width-stacked (partial im2col) input.

    x_ref: (BB, Hp*Wrow, K*Cin) bf16  zero-padded image(s), K width-shifts on channels
    w_ref: (K, K*Cin, Cout)     bf16  w_ref[dy, dx*Cin + ci, co] = weight[co, ci, dy, dx]
    b_ref: (1, Cout)            f32
    o_ref: (BB, M, Cout)        f32   M = H*Wrow flattened output rows (junk cols cropped
                                      outside the kernel)
    """
    BB = x_ref.shape[0]
    Cout = o_ref.shape[-1]
    bias = b_ref[...]                                          # (1, Cout) f32
    for b in range(BB):                                        # static loop (1 or B)
        # vreg-resident accumulator; bias added exactly once, outside the reduction.
        acc = jnp.broadcast_to(bias, (M, Cout))                # (M, Cout) f32, ~20 vregs
        for dy in range(K):                                    # unrolled over kernel rows
            # 32-row-aligned sublane shift -> clean view, no repack.
            patch = x_ref[b, dy * Wrow:dy * Wrow + M, :]       # (M, K*Cin) bf16
            acc = acc + jnp.dot(patch, w_ref[dy],
                                preferred_element_type=jnp.float32)
        o_ref[b] = acc                                         # single output store


def _batch_goes_parallel():
    """True iff the chip has >1 TensorCore (then a parallel batch grid pays off)."""
    try:
        kind = jax.devices()[0].device_kind.lower()
    except Exception:
        return True
    single_tc = any(tag in kind for tag in ("v5 lite", "v5e", "v6 lite", "v6e"))
    return not single_tc


def prepare_oracle_params(weight, bias):
    """One-time layout prep (hoisted out of the per-forward path).

    weight: (Cout, Cin, K, K) f32, bias: (Cout,) f32.
    """
    Cout, Cin, K, _ = weight.shape
    # weight[co, ci, dy, dx] -> w3[dy, dx*Cin + ci, co]
    w3 = jnp.transpose(weight, (2, 3, 1, 0)).reshape(K, K * Cin, Cout).astype(jnp.bfloat16)
    b2 = bias.reshape(1, Cout).astype(jnp.float32)
    return {"w3": w3, "b2": b2}


def oracle_conv_pallas(x_nchw, w3, b2, *, padding=_PAD):
    """PyTorch-equivalent Conv2d(stride=1, padding=padding) on an NCHW input.

    x_nchw: (B, Cin, H, W) f32. Returns (B, Cout, H, W) f32.
    """
    B, Cin, H, W = x_nchw.shape
    K, KCin, Cout = w3.shape
    assert KCin == K * Cin
    Hp = H + 2 * padding                  # padded height
    Wrow = _WROW                          # aligned padded row stride (>= W + 2*padding)
    assert W + 2 * padding <= Wrow
    Wext = Wrow + K - 1                   # extra zero cols keep the width shifts in bounds
    M = H * Wrow                          # flattened output rows per image

    # ---- small XLA glue: layout prep for the kernel -----------------------------------
    xb = x_nchw.astype(jnp.bfloat16)
    # NHWC, zero-padded. Columns beyond W+2*padding are zeros and only ever feed output
    # columns that get cropped below.
    xp = jnp.pad(jnp.transpose(xb, (0, 2, 3, 1)),
                 ((0, 0), (padding, padding), (padding, Wext - W - padding), (0, 0)))
    # Partial im2col: stack the K width-shifts on the channel axis -> contraction K*Cin.
    xs = jnp.concatenate([xp[:, :, dx:dx + Wrow, :] for dx in range(K)], axis=-1)
    xs = xs.reshape(B, Hp * Wrow, KCin)                       # (B, Hp*Wrow, K*Cin) bf16

    parallel = _batch_goes_parallel()
    bb = 1 if parallel else B             # batch block: split across TCs, or collapsed
    grid = (B // bb,)
    sem = ("parallel",) if parallel else ("arbitrary",)

    out_flat = pl.pallas_call(
        partial(_oracle_conv_kernel, K=K, Wrow=Wrow, M=M),
        out_shape=jax.ShapeDtypeStruct((B, M, Cout), jnp.float32),
        grid=grid,
        in_specs=[
            pl.BlockSpec((bb, Hp * Wrow, KCin), lambda i: (i, 0, 0)),
            pl.BlockSpec((K, KCin, Cout), lambda i: (0, 0, 0)),
            pl.BlockSpec((1, Cout), lambda i: (0, 0)),
        ],
        out_specs=pl.BlockSpec((bb, M, Cout), lambda i: (i, 0, 0)),
        compiler_params=pltpu.CompilerParams(dimension_semantics=sem),
    )(xs, w3, b2)

    # (B, H, Wrow, Cout): drop the Wrow-W junk columns, back to NCHW.
    out = out_flat.reshape(B, H, Wrow, Cout)[:, :, :W, :]
    return jnp.transpose(out, (0, 3, 1, 2))


def init_oracle_params(key, in_ch=32, out_ch=32, k=_K):
    kw, kb = jax.random.split(key)
    weight = 0.05 * jax.random.normal(kw, (out_ch, in_ch, k, k), jnp.float32)
    bias = 0.05 * jax.random.normal(kb, (out_ch,), jnp.float32)
    return {"weight": weight, "bias": bias}


def oracle_forward(params, x):
    """Oracle.forward: x -> conv1(x). `params` are prepared (w3/b2) params."""
    return oracle_conv_pallas(x, params["w3"], params["b2"], padding=_PAD)


if __name__ == "__main__":
    key = jax.random.PRNGKey(0)
    kp, kx = jax.random.split(key)

    # Oracle operates on a 32-channel feature map (Conv2d(32, 32, 5)).
    B, C, H, W = 2, 32, 20, 20
    raw = init_oracle_params(kp)
    # Weight/bias reformatting hoisted out of the per-call path (done once here).
    params = prepare_oracle_params(raw["weight"], raw["bias"])
    x = jax.random.normal(kx, (B, C, H, W), jnp.float32)

    fwd = jax.jit(oracle_forward)
    out = jax.block_until_ready(fwd(params, x))
    assert out.shape == (B, 32, H, W), out.shape

    # Numerical check against an f32 XLA reference (bf16 MXU operands -> loose tolerance).
    # TODO(synk): if bit-closer parity with the f32 PyTorch oracle is required, keep
    # f32 operands (multi-pass MXU) instead of bf16.
    ref = jax.lax.conv_general_dilated(
        x, raw["weight"], window_strides=(1, 1), padding=((2, 2), (2, 2)),
        dimension_numbers=("NCHW", "OIHW", "NCHW"),
        precision=jax.lax.Precision.HIGHEST) + raw["bias"].reshape(1, -1, 1, 1)
    err = float(jnp.max(jnp.abs(out - ref)))
    assert err < 1e-1, f"max abs err vs reference = {err}"
    print("KERNEL_OK")
</pallas_src>

<mosaic_0001>
module attributes {stable_mosaic.version = 11 : i64} {
  func.func @_oracle_conv_kernel(%arg0: i32, %arg1: memref<1x768x160xbf16, #tpu.memory_space<vmem>>, %arg2: memref<5x160x32xbf16, #tpu.memory_space<vmem>>, %arg3: memref<1x32xf32, #tpu.memory_space<vmem>>, %arg4: memref<1x640x32xf32, #tpu.memory_space<vmem>>) attributes {dimension_semantics = [#tpu.dimension_semantics<parallel>], iteration_bounds = array<i64: 2>, scalar_prefetch = 0 : i64, scratch_operands = 0 : i64, tpu.core_type = #tpu.core_type<tc>, window_params = [{transform_indices = @transform_0, window_bounds = array<i64: 1, 768, 160>}, {pipeline_mode = #tpu.pipeline_mode<synchronous>, transform_indices = @transform_1, window_bounds = array<i64: 5, 160, 32>}, {pipeline_mode = #tpu.pipeline_mode<synchronous>, transform_indices = @transform_2, window_bounds = array<i64: 1, 32>}, {transform_indices = @transform_3, window_bounds = array<i64: 1, 640, 32>}]} {
    %c0 = arith.constant 0 : index
    %c0_0 = arith.constant 0 : index
    %0 = vector.load %arg3[%c0, %c0_0] : memref<1x32xf32, #tpu.memory_space<vmem>>, vector<1x32xf32>
    %1 = vector.shape_cast %0 : vector<1x32xf32> to vector<1x32xf32>
    %2 = vector.broadcast %1 : vector<1x32xf32> to vector<640x32xf32>
    %c0_1 = arith.constant 0 : index
    %c0_2 = arith.constant 0 : index
    %c0_3 = arith.constant 0 : index
    %3 = vector.load %arg1[%c0_1, %c0_2, %c0_3] : memref<1x768x160xbf16, #tpu.memory_space<vmem>>, vector<1x640x160xbf16>
    %4 = vector.shape_cast %3 : vector<1x640x160xbf16> to vector<640x160xbf16>
    %c0_4 = arith.constant 0 : index
    %c0_5 = arith.constant 0 : index
    %c0_6 = arith.constant 0 : index
    %5 = vector.load %arg2[%c0_4, %c0_5, %c0_6] : memref<5x160x32xbf16, #tpu.memory_space<vmem>>, vector<1x160x32xbf16>
    %6 = vector.shape_cast %5 : vector<1x160x32xbf16> to vector<160x32xbf16>
    %cst = arith.constant dense<0.000000e+00> : vector<640x32xf32>
    %7 = tpu.matmul %4, %6, %cst {dimension_numbers = #tpu.dot_dimension_numbers<[1], [0], [0], [1], [0, 0, 1, 1], [], []>} : vector<640x160xbf16>, vector<160x32xbf16>, vector<640x32xf32> -> vector<640x32xf32>
    %8 = arith.addf %2, %7 : vector<640x32xf32>
    %c0_7 = arith.constant 0 : index
    %c32 = arith.constant 32 : index
    %c0_8 = arith.constant 0 : index
    %9 = vector.load %arg1[%c0_7, %c32, %c0_8] : memref<1x768x160xbf16, #tpu.memory_space<vmem>>, vector<1x640x160xbf16>
    %10 = vector.shape_cast %9 : vector<1x640x160xbf16> to vector<640x160xbf16>
    %c1 = arith.constant 1 : index
    %c0_9 = arith.constant 0 : index
    %c0_10 = arith.constant 0 : index
    %11 = vector.load %arg2[%c1, %c0_9, %c0_10] : memref<5x160x32xbf16, #tpu.memory_space<vmem>>, vector<1x160x32xbf16>
    %12 = vector.shape_cast %11 : vector<1x160x32xbf16> to vector<160x32xbf16>
    %cst_11 = arith.constant dense<0.000000e+00> : vector<640x32xf32>
    %13 = tpu.matmul %10, %12, %cst_11 {dimension_numbers = #tpu.dot_dimension_numbers<[1], [0], [0], [1], [0, 0, 1, 1], [], []>} : vector<640x160xbf16>, vector<160x32xbf16>, vector<640x32xf32> -> vector<640x32xf32>
    %14 = arith.addf %8, %13 : vector<640x32xf32>
    %c0_12 = arith.constant 0 : index
    %c64 = arith.constant 64 : index
    %c0_13 = arith.constant 0 : index
    %15 = vector.load %arg1[%c0_12, %c64, %c0_13] : memref<1x768x160xbf16, #tpu.memory_space<vmem>>, vector<1x640x160xbf16>
    %16 = vector.shape_cast %15 : vector<1x640x160xbf16> to vector<640x160xbf16>
    %c2 = arith.constant 2 : index
    %c0_14 = arith.constant 0 : index
    %c0_15 = arith.constant 0 : index
    %17 = vector.load %arg2[%c2, %c0_14, %c0_15] : memref<5x160x32xbf16, #tpu.memory_space<vmem>>, vector<1x160x32xbf16>
    %18 = vector.shape_cast %17 : vector<1x160x32xbf16> to vector<160x32xbf16>
    %cst_16 = arith.constant dense<0.000000e+00> : vector<640x32xf32>
    %19 = tpu.matmul %16, %18, %cst_16 {dimension_numbers = #tpu.dot_dimension_numbers<[1], [0], [0], [1], [0, 0, 1, 1], [], []>} : vector<640x160xbf16>, vector<160x32xbf16>, vector<640x32xf32> -> vector<640x32xf32>
    %20 = arith.addf %14, %19 : vector<640x32xf32>
    %c0_17 = arith.constant 0 : index
    %c96 = arith.constant 96 : index
    %c0_18 = arith.constant 0 : index
    %21 = vector.load %arg1[%c0_17, %c96, %c0_18] : memref<1x768x160xbf16, #tpu.memory_space<vmem>>, vector<1x640x160xbf16>
    %22 = vector.shape_cast %21 : vector<1x640x160xbf16> to vector<640x160xbf16>
    %c3 = arith.constant 3 : index
    %c0_19 = arith.constant 0 : index
    %c0_20 = arith.constant 0 : index
    %23 = vector.load %arg2[%c3, %c0_19, %c0_20] : memref<5x160x32xbf16, #tpu.memory_space<vmem>>, vector<1x160x32xbf16>
    %24 = vector.shape_cast %23 : vector<1x160x32xbf16> to vector<160x32xbf16>
    %cst_21 = arith.constant dense<0.000000e+00> : vector<640x32xf32>
    %25 = tpu.matmul %22, %24, %cst_21 {dimension_numbers = #tpu.dot_dimension_numbers<[1], [0], [0], [1], [0, 0, 1, 1], [], []>} : vector<640x160xbf16>, vector<160x32xbf16>, vector<640x32xf32> -> vector<640x32xf32>
    %26 = arith.addf %20, %25 : vector<640x32xf32>
    %c0_22 = arith.constant 0 : index
    %c128 = arith.constant 128 : index
    %c0_23 = arith.constant 0 : index
    %27 = vector.load %arg1[%c0_22, %c128, %c0_23] : memref<1x768x160xbf16, #tpu.memory_space<vmem>>, vector<1x640x160xbf16>
    %28 = vector.shape_cast %27 : vector<1x640x160xbf16> to vector<640x160xbf16>
    %c4 = arith.constant 4 : index
    %c0_24 = arith.constant 0 : index
    %c0_25 = arith.constant 0 : index
    %29 = vector.load %arg2[%c4, %c0_24, %c0_25] : memref<5x160x32xbf16, #tpu.memory_space<vmem>>, vector<1x160x32xbf16>
    %30 = vector.shape_cast %29 : vector<1x160x32xbf16> to vector<160x32xbf16>
    %cst_26 = arith.constant dense<0.000000e+00> : vector<640x32xf32>
    %31 = tpu.matmul %28, %30, %cst_26 {dimension_numbers = #tpu.dot_dimension_numbers<[1], [0], [0], [1], [0, 0, 1, 1], [], []>} : vector<640x160xbf16>, vector<160x32xbf16>, vector<640x32xf32> -> vector<640x32xf32>
    %32 = arith.addf %26, %31 : vector<640x32xf32>
    %c0_27 = arith.constant 0 : index
    %c0_28 = arith.constant 0 : index
    %c0_29 = arith.constant 0 : index
    %33 = vector.load %arg4[%c0_27, %c0_28, %c0_29] : memref<1x640x32xf32, #tpu.memory_space<vmem>>, vector<1x640x32xf32>
    %34 = vector.shape_cast %33 : vector<1x640x32xf32> to vector<640x32xf32>
    %35 = vector.shape_cast %32 : vector<640x32xf32> to vector<1x640x32xf32>
    tpu.vector_store %arg4[%c0_27, %c0_28, %c0_29], %35 {strides = array<i32>} : memref<1x640x32xf32, #tpu.memory_space<vmem>>, vector<1x640x32xf32>,
    return
  }
  func.func @transform_0(%arg0: i32) -> (i32, i32, i32) {
    %c0_i32 = arith.constant 0 : i32
    %c0_i32_0 = arith.constant 0 : i32
    %c0_i32_1 = arith.constant 0 : i32
    return %arg0, %c0_i32, %c0_i32_0 : i32, i32, i32
  }
  func.func @transform_1(%arg0: i32) -> (i32, i32, i32) {
    %c0_i32 = arith.constant 0 : i32
    %c0_i32_0 = arith.constant 0 : i32
    %c0_i32_1 = arith.constant 0 : i32
    %c0_i32_2 = arith.constant 0 : i32
    return %c0_i32, %c0_i32_0, %c0_i32_1 : i32, i32, i32
  }
  func.func @transform_2(%arg0: i32) -> (i32, i32) {
    %c0_i32 = arith.constant 0 : i32
    %c0_i32_0 = arith.constant 0 : i32
    %c0_i32_1 = arith.constant 0 : i32
    return %c0_i32, %c0_i32_0 : i32, i32
  }
  func.func @transform_3(%arg0: i32) -> (i32, i32, i32) {
    %c0_i32 = arith.constant 0 : i32
    %c0_i32_0 = arith.constant 0 : i32
    %c0_i32_1 = arith.constant 0 : i32
    return %arg0, %c0_i32, %c0_i32_0 : i32, i32, i32
  }
}

</mosaic_0001>

<bundles_post_ra>
// kernel: oracle_forward.1
= control target key start
LH: loop header
LB: loop body
LE: loop exit
PB: predicated region body
PF: predicated region fallthrough
CT: control target
= control target key end

     0   :  { %s8590_s12 = smov 0   ;;  %s10996_s0 = inlined_call_operand.vmem [shape: bf16[2,768,160], index: 0, kind: input, shape index: {}]   ;;  %s10997_s1 = inlined_call_operand.vmem [shape: bf16[5,160,32], index: 1, kind: input, shape index: {}]   ;;  %s10998_s2 = inlined_call_operand.vmem [shape: f32[1,32], index: 2, kind: input, shape index: {}]   ;;  %s10999_s3 = inlined_call_operand.vmem [shape: f32[2,640,32], index: 3, kind: output, shape index: {}]  }
   0x1 LB: > { %s6006_s13 = sadd.s32 4294967295, %s8568_s12   ;;  %p6010_p0 = scmp.ge.s32.totalorder %s8568_s12, 1  ;;  %s8568_s12 = sphi %s8590_s12, %s13_s12  }
   0x2   : > { %p137_p1 = scmp.lt.s32.totalorder %s8568_s12, 3 }
   0x4   : > { %p138_p2 = pnand %p6010_p0, %p137_p1 }
   0x6   : > { %141 = sbr.rel (%p138_p2) target bundleno = 1767 (0x6e7), region = 32 }
   0xb   : > { %v8182_v0 = vld [vmem:[%s10997_s1 + $0x38] sm:$0xff]  ;;  %v8604_v1 = vld [vmem:[%s10997_s1 + $0x48] sm:$0xff]  ;;  %p161_p3 = scmp.lt.s32.totalorder %s6006_s13, 1  ;;  %v8181_v4 = vld [vmem:[%s10997_s1 + $0x30] sm:$0xff]  ;;  %vm696_vm0 = vcmask 261120  }
   0xc   : > { %v8272_v2 = vld [vmem:[%s10997_s1 + $0x88] sm:$0xff]  ;;  %v8612_v3 = vld [vmem:[%s10997_s1 + $0x98] sm:$0xff]  ;;  %817 = vmatpush.bf16.msra.mxu0 %v8182_v0  ;;  %8545 = vmatpush.bf16.msra.mxu1 %v8604_v1  ;;  %v8621_v5 = vld [vmem:[%s10997_s1 + $0x40] sm:$0xff] }
   0xd   : > { %s11377_s13 = smov (!%p161_p3, %s6006_s13), 1  ;;  %1956 = vmatpush.bf16.msra.mxu2 %v8272_v2  ;;  %8547 = vmatpush.bf16.msra.mxu3 %v8612_v3  ;;  %v8271_v6 = vld [vmem:[%s10997_s1 + $0x80] sm:$0xff]  ;;  %v8632_v7 = vld [vmem:[%s10997_s1 + $0x90] sm:$0xff]  ;;  %v8364_v8 = vld [vmem:[%s10997_s1 + $0xe8] sm:$0xff] }
   0xe   : > { %s8549_s30 = smul.u32 768, %s11377_s13  ;;  %v8362_v9 = vld [vmem:[%s10997_s1 + $0xd8] sm:$0xff]  ;;  %v8180_v10 = vld [vmem:[%s10997_s1 + $0x28] sm:$0xff]  ;;  %v8179_v18 = vld [vmem:[%s10997_s1 + $0x20] sm:$0xff] }
   0xf   : > { %v8270_v11 = vld [vmem:[%s10997_s1 + $0x78] sm:$0xff]  ;;  %v8269_v19 = vld [vmem:[%s10997_s1 + $0x70] sm:$0xff]  ;;  %v8268_v21 = vld [vmem:[%s10997_s1 + $0x68] sm:$0xff]  ;;  %s8550_s27 = smul.u32 640, %s11377_s13 }
  0x10   : > { %818 = vmatpush.bf16.msra.mxu0 %v8181_v4  ;;  %8546 = vmatpush.bf16.msra.mxu1 %v8621_v5  ;;  %s8645_s10 = scalar_lea.vmem %s10996_s0, %s8549_s30  ;;  %v8178_v20 = vld [vmem:[%s10997_s1 + $0x18] sm:$0xff]  ;;  %v8177_v22 = vld [vmem:[%s10997_s1 + $0x10] sm:$0xff]  ;;  %v8267_v23 = vld [vmem:[%s10997_s1 + $0x60] sm:$0xff] }
  0x11   : > { %1957 = vmatpush.bf16.msra.mxu2 %v8271_v6  ;;  %8548 = vmatpush.bf16.msra.mxu3 %v8632_v7  ;;  %v8133_v12 = vld [vmem:[%s8645_s10 + $0x134] sm:$0xf]  ;;  %v6169_v13 = vld [vmem:[%s8645_s10 + $0x138] sm:$0xf0]  ;;  %v8135_v24 = vld [vmem:[%s8645_s10 + $0x144] sm:$0xf]  ;;  %s10446_s30 = scalar_lea.vmem %s10999_s3, %s8550_s27 }
  0x12   : > { %v8223_v14 = vld [vmem:[%s8645_s10 + $0x154] sm:$0xf]  ;;  %v6172_v15 = vor.u32 %v8133_v12, %v6169_v13  ;;  %v6589_v16 = vld [vmem:[%s8645_s10 + $0x158] sm:$0xf0]  ;;  %v6177_v25 = vld [vmem:[%s8645_s10 + $0x148] sm:$0xf0] }
  0x13   : > { %v6592_v17 = vor.u32 %v8223_v14, %v6589_v16  ;;  %v8225_v26 = vld [vmem:[%s8645_s10 + $0x164] sm:$0xf]  ;;  %v6597_v27 = vld [vmem:[%s8645_s10 + $0x168] sm:$0xf0]  ;;  %v6180_v28 = vor.u32 %v8135_v24, %v6177_v25  ;;  %v8266_v31 = vld [vmem:[%s10997_s1 + $0x58] sm:$0xff] }
  0x14   : > { %3095 = vmatpush.bf16.msrb.mxu1 %v8362_v9  ;;  %819 = vmatpush.bf16.msra.mxu0 %v8180_v10  ;;  %v8176_v29 = vld [vmem:[%s10997_s1 + $0x8] sm:$0xff]  ;;  %v6600_v30 = vor.u32 %v8225_v26, %v6597_v27  ;;  %v8175_v32 = vld [vmem:[%s10997_s1] sm:$0xff]  ;;  %v8265_v33 = vld [vmem:[%s10997_s1 + $0x50] sm:$0xff] }
  0x15   : > { %3310 = vmatpush.bf16.msrb.mxu3 %v8364_v8  ;;  %6392 = vmatmul.msk.bf16.vlgmr.msra.gmra.mxu1 %vm696_vm0, %v6172_v15  ;;  %v6015_v34 = vld [vmem:[%s8645_s10] sm:$0xf]  ;;  %v8096_v35 = vld [vmem:[%s8645_s10 + $0x4] sm:$0xf0]  ;;  %v8361_v38 = vld [vmem:[%s10997_s1 + $0xd0] sm:$0xff] }
  0x16   : > { %6812 = vmatmul.msk.bf16.vlgmr.msra.gmra.mxu3 %vm696_vm0, %v6592_v17  ;;  %1958 = vmatpush.bf16.msra.mxu2 %v8270_v11  ;;  %v6435_v36 = vld [vmem:[%s8645_s10 + $0x20] sm:$0xf]  ;;  %v8186_v37 = vld [vmem:[%s8645_s10 + $0x24] sm:$0xf0]  ;;  %v6016_v39 = vor.u32 %v8096_v35, %v6015_v34  ;;  %v8137_v41 = vld [vmem:[%s8645_s10 + $0x154] sm:$0xf] }
  0x17   : > { %v6436_v40 = vor.u32 %v8186_v37, %v6435_v36  ;;  %v6185_v42 = vld [vmem:[%s8645_s10 + $0x158] sm:$0xf0]  ;;  %v8227_v43 = vld [vmem:[%s8645_s10 + $0x174] sm:$0xf]  ;;  %v6023_v47 = vld [vmem:[%s8645_s10 + $0x10] sm:$0xf] }
  0x18   : > { %820 = vmatpush.bf16.msra.mxu0 %v8179_v18  ;;  %3096 = vmatpush.bf16.msrb.mxu1 %v8361_v38  ;;  %v6605_v44 = vld [vmem:[%s8645_s10 + $0x178] sm:$0xf0]  ;;  %v6188_v45 = vor.u32 %v8137_v41, %v6185_v42  ;;  %v8098_v48 = vld [vmem:[%s8645_s10 + $0x14] sm:$0xf0]  ;;  %v6443_v49 = vld [vmem:[%s8645_s10 + $0x30] sm:$0xf] }
  0x19   : > { %v6608_v46 = vor.u32 %v8227_v43, %v6605_v44  ;;  %v8188_v50 = vld [vmem:[%s8645_s10 + $0x34] sm:$0xf0]  ;;  %v6024_v51 = vor.u32 %v8098_v48, %v6023_v47  ;;  %v8139_v53 = vld [vmem:[%s8645_s10 + $0x164] sm:$0xf]  ;;  %v6193_v54 = vld [vmem:[%s8645_s10 + $0x168] sm:$0xf0] }
  0x1a   : > { %1959 = vmatpush.bf16.msra.mxu2 %v8269_v19  ;;  %v6444_v52 = vor.u32 %v8188_v50, %v6443_v49  ;;  %v8229_v55 = vld [vmem:[%s8645_s10 + $0x184] sm:$0xf]  ;;  %v6613_v56 = vld [vmem:[%s8645_s10 + $0x188] sm:$0xf0]  ;;  %v6196_v57 = vor.u32 %v8139_v53, %v6193_v54  ;;  %v6031_v59 = vld [vmem:[%s8645_s10 + $0x20] sm:$0xf] }
  0x1b   : > { %v6616_v58 = vor.u32 %v8229_v55, %v6613_v56  ;;  %v8100_v60 = vld [vmem:[%s8645_s10 + $0x24] sm:$0xf0]  ;;  %v6451_v61 = vld [vmem:[%s8645_s10 + $0x40] sm:$0xf]  ;;  %v8141_v2 = vld [vmem:[%s8645_s10 + $0x174] sm:$0xf] }
  0x1c   : > { %821 = vmatpush.bf16.msra.mxu0 %v8178_v20  ;;  %v8190_v62 = vld [vmem:[%s8645_s10 + $0x44] sm:$0xf0]  ;;  %v6032_v63 = vor.u32 %v8100_v60, %v6031_v59  ;;  %v8231_v4 = vld [vmem:[%s8645_s10 + $0x194] sm:$0xf]  ;;  %v6039_v8 = vld [vmem:[%s8645_s10 + $0x30] sm:$0xf] }
  0x1d   : > { %v6452_v0 = vor.u32 %v8190_v62, %v6451_v61  ;;  %v8102_v9 = vld [vmem:[%s8645_s10 + $0x34] sm:$0xf0]  ;;  %v6459_v10 = vld [vmem:[%s8645_s10 + $0x50] sm:$0xf]  ;;  %v8143_v14 = vld [vmem:[%s8645_s10 + $0x184] sm:$0xf] }
  0x1e   : > { %1960 = vmatpush.bf16.msra.mxu2 %v8268_v21  ;;  %v8192_v11 = vld [vmem:[%s8645_s10 + $0x54] sm:$0xf0]  ;;  %v6040_v12 = vor.u32 %v8102_v9, %v6039_v8  ;;  %v6209_v15 = vld [vmem:[%s8645_s10 + $0x188] sm:$0xf0]  ;;  %v8233_v16 = vld [vmem:[%s8645_s10 + $0x1a4] sm:$0xf] }
  0x1f   : > { %v6460_v13 = vor.u32 %v8192_v11, %v6459_v10  ;;  %v6629_v17 = vld [vmem:[%s8645_s10 + $0x1a8] sm:$0xf0]  ;;  %v6212_v18 = vor.u32 %v8143_v14, %v6209_v15  ;;  %v6047_v20 = vld [vmem:[%s8645_s10 + $0x40] sm:$0xf]  ;;  %v8104_v21 = vld [vmem:[%s8645_s10 + $0x44] sm:$0xf0] }
  0x20   : > { %822 = vmatpush.bf16.msra.mxu0 %v8177_v22  ;;  %v6632_v19 = vor.u32 %v8233_v16, %v6629_v17  ;;  %v6467_v22 = vld [vmem:[%s8645_s10 + $0x60] sm:$0xf]  ;;  %v6048_v24 = vor.u32 %v8104_v21, %v6047_v20  ;;  %v8145_v26 = vld [vmem:[%s8645_s10 + $0x194] sm:$0xf]  ;;  %v6217_v27 = vld [vmem:[%s8645_s10 + $0x198] sm:$0xf0] }
  0x21   : > { %v6475_v34 = vld [vmem:[%s8645_s10 + $0x70] sm:$0xf]  ;;  %v8196_v35 = vld [vmem:[%s8645_s10 + $0x74] sm:$0xf0]  ;;  %v8359_v38 = vld [vmem:[%s10997_s1 + $0xc0] sm:$0xff] }
  0x22   : > { %1961 = vmatpush.bf16.msra.mxu2 %v8267_v23  ;;  %v8194_v23 = vld [vmem:[%s8645_s10 + $0x64] sm:$0xf0]  ;;  %v6476_v37 = vor.u32 %v8196_v35, %v6475_v34  ;;  %v8237_v41 = vld [vmem:[%s8645_s10 + $0x1c4] sm:$0xf]  ;;  %v6645_v42 = vld [vmem:[%s8645_s10 + $0x1c8] sm:$0xf0] }
  0x23   : > { %v6468_v25 = vor.u32 %v8194_v23, %v6467_v22  ;;  %v6648_v44 = vor.u32 %v8237_v41, %v6645_v42  ;;  %v6483_v47 = vld [vmem:[%s8645_s10 + $0x80] sm:$0xf]  ;;  %v8198_v48 = vld [vmem:[%s8645_s10 + $0x84] sm:$0xf0]  ;;  %v8239_v53 = vld [vmem:[%s8645_s10 + $0x1d4] sm:$0xf] }
  0x24   : > { %823 = vmatpush.bf16.msra.mxu0 %v8176_v29  ;;  %v6637_v29 = vld [vmem:[%s8645_s10 + $0x1b8] sm:$0xf0]  ;;  %v6484_v50 = vor.u32 %v8198_v48, %v6483_v47  ;;  %v8110_v59 = vld [vmem:[%s8645_s10 + $0x74] sm:$0xf0]  ;;  %v6491_v60 = vld [vmem:[%s8645_s10 + $0x90] sm:$0xf] }
  0x25   : > { %6393 = vmatmul.msk.bf16.gmra.mxu1 %vm696_vm0, %v6180_v28  ;;  %v8235_v28 = vld [vmem:[%s8645_s10 + $0x1b4] sm:$0xf]  ;;  %v6653_v54 = vld [vmem:[%s8645_s10 + $0x1d8] sm:$0xf0]  ;;  %v8200_v61 = vld [vmem:[%s8645_s10 + $0x94] sm:$0xf0] }
  0x26   : > { %6813 = vmatmul.msk.bf16.gmra.mxu3 %vm696_vm0, %v6600_v30  ;;  %1962 = vmatpush.bf16.msra.mxu2 %v8266_v31  ;;  %v6220_v30 = vor.u32 %v8145_v26, %v6217_v27  ;;  %v6640_v31 = vor.u32 %v8235_v28, %v6637_v29  ;;  %v8358_v11 = vld [vmem:[%s10997_s1 + $0xb8] sm:$0xff]  ;;  %v6499_v14 = vld [vmem:[%s8645_s10 + $0xa0] sm:$0xf]  ;;  %v8202_v15 = vld [vmem:[%s8645_s10 + $0xa4] sm:$0xf0] }
  0x27   : > { %v8153_v21 = vld [vmem:[%s8645_s10 + $0x1d4] sm:$0xf]  ;;  %v6249_v22 = vld [vmem:[%s8645_s10 + $0x1d8] sm:$0xf0]  ;;  %v8204_v34 = vld [vmem:[%s8645_s10 + $0xb4] sm:$0xf0] }
  0x28   : > { %824 = vmatpush.bf16.msra.mxu0 %v8175_v32  ;;  %v6055_v32 = vld [vmem:[%s8645_s10 + $0x50] sm:$0xf]  ;;  %v8243_v23 = vld [vmem:[%s8645_s10 + $0x1f4] sm:$0xf]  ;;  %v6252_v28 = vor.u32 %v8153_v21, %v6249_v22  ;;  %v8155_v41 = vld [vmem:[%s8645_s10 + $0x1e4] sm:$0xf] }
  0x29   : > { %v6257_v42 = vld [vmem:[%s8645_s10 + $0x1e8] sm:$0xf0] }
  0x2a   : > { %1963 = vmatpush.bf16.msra.mxu2 %v8265_v33  ;;  %v8106_v33 = vld [vmem:[%s8645_s10 + $0x54] sm:$0xf0]  ;;  %v6260_v48 = vor.u32 %v8155_v41, %v6257_v42 }
  0x2b   : > { %825 = vmatmul.bf16.vlgmr.msra.gmra.mxu0 %v6016_v39  ;;  %v6056_v36 = vor.u32 %v8106_v33, %v6055_v32  ;;  %v8147_v39 = vld [vmem:[%s8645_s10 + $0x1a4] sm:$0xf]  ;;  %v8114_v32 = vld [vmem:[%s8645_s10 + $0x94] sm:$0xf0]  ;;  %v6507_v33 = vld [vmem:[%s8645_s10 + $0xb0] sm:$0xf] }
  0x2c   : > { %1032 = vmatpush.bf16.msrb.mxu0 %v8604_v1  ;;  %v8360_v1 = vld [vmem:[%s10997_s1 + $0xc8] sm:$0xff] }
  0x2d   : > { %1964 = vmatmul.bf16.vlgmr.msra.gmra.mxu2 %v6436_v40  ;;  %3097 = vmatpush.bf16.msrb.mxu1 %v8360_v1  ;;  %v6225_v40 = vld [vmem:[%s8645_s10 + $0x1a8] sm:$0xf0] }
  0x2e   : > { %2171 = vmatpush.bf16.msrb.mxu2 %v8612_v3  ;;  %v6201_v3 = vld [vmem:[%s8645_s10 + $0x178] sm:$0xf0]  ;;  %v6228_v43 = vor.u32 %v8147_v39, %v6225_v40  ;;  %v6508_v39 = vor.u32 %v8204_v34, %v6507_v33  ;;  %v6693_v33 = vld [vmem:[%s8645_s10 + $0x228] sm:$0xf0] }
  0x2f   : > { %v6204_v6 = vor.u32 %v8141_v2, %v6201_v3  ;;  %v8363_v2 = vld [vmem:[%s10997_s1 + $0xe0] sm:$0xff] }
  0x30   : > { %1033 = vmatpush.bf16.msrb.mxu0 %v8621_v5  ;;  %v6621_v5 = vld [vmem:[%s8645_s10 + $0x198] sm:$0xf0]  ;;  %v8151_v3 = vld [vmem:[%s8645_s10 + $0x1c4] sm:$0xf]  ;;  %3311 = vmatpush.bf16.msrb.mxu3 %v8363_v2 }
  0x31   : > { %3098 = vmatpush.bf16.msrb.mxu1 %v8359_v38  ;;  %v6265_v2 = vld [vmem:[%s8645_s10 + $0x1f8] sm:$0xf0] }
  0x32   : > { %2172 = vmatpush.bf16.msrb.mxu2 %v8632_v7  ;;  %v6624_v7 = vor.u32 %v8231_v4, %v6621_v5  ;;  %v6241_v4 = vld [vmem:[%s8645_s10 + $0x1c8] sm:$0xf0]  ;;  %v8241_v5 = vld [vmem:[%s8645_s10 + $0x1e4] sm:$0xf] }
  0x33   : > { %v6244_v8 = vor.u32 %v8151_v3, %v6241_v4  ;;  %v8247_v3 = vld [vmem:[%s8645_s10 + $0x214] sm:$0xf]  ;;  %v6685_v4 = vld [vmem:[%s8645_s10 + $0x218] sm:$0xf0] }
  0x35   : > { %6394 = vmatmul.msk.bf16.gmra.mxu1 %vm696_vm0, %v6188_v45  ;;  %v6063_v45 = vld [vmem:[%s8645_s10 + $0x60] sm:$0xf] }
  0x36   : > { %6814 = vmatmul.msk.bf16.gmra.mxu3 %vm696_vm0, %v6608_v46  ;;  %v8108_v46 = vld [vmem:[%s8645_s10 + $0x64] sm:$0xf0]  ;;  %3099 = vmatpush.bf16.msrb.mxu1 %v8358_v11 }
  0x37   : > { %v6064_v49 = vor.u32 %v8108_v46, %v6063_v45 }
  0x3b   : > { %830 = vmatmul.bf16.gmra.mxu0 %v6024_v51  ;;  %v8149_v51 = vld [vmem:[%s8645_s10 + $0x1b4] sm:$0xf] }
  0x3d   : > { %1969 = vmatmul.bf16.gmra.mxu2 %v6444_v52  ;;  %v6233_v52 = vld [vmem:[%s8645_s10 + $0x1b8] sm:$0xf0] }
  0x3e   : > { %v6236_v55 = vor.u32 %v8149_v51, %v6233_v52  ;;  %v6095_v51 = vld [vmem:[%s8645_s10 + $0xa0] sm:$0xf]  ;;  %v8116_v52 = vld [vmem:[%s8645_s10 + $0xa4] sm:$0xf0] }
  0x45   : > { %6395 = vmatmul.msk.bf16.gmra.mxu1 %vm696_vm0, %v6196_v57  ;;  %v6656_v57 = vor.u32 %v8239_v53, %v6653_v54  ;;  %v6515_v53 = vld [vmem:[%s8645_s10 + $0xc0] sm:$0xf]  ;;  %v8206_v54 = vld [vmem:[%s8645_s10 + $0xc4] sm:$0xf0] }
  0x46   : > { %6815 = vmatmul.msk.bf16.gmra.mxu3 %vm696_vm0, %v6616_v58  ;;  %v6071_v58 = vld [vmem:[%s8645_s10 + $0x70] sm:$0xf] }
  0x47   : > { %v6072_v62 = vor.u32 %v8110_v59, %v6071_v58 }
  0x4b   : > { %835 = vmatmul.bf16.gmra.mxu0 %v6032_v63 }
  0x4d   : > { %1974 = vmatmul.bf16.gmra.mxu2 %v6452_v0  ;;  %v6492_v0 = vor.u32 %v8200_v61, %v6491_v60  ;;  %v6516_v60 = vor.u32 %v8206_v54, %v6515_v53 }
  0x55   : > { %6396 = vmatmul.msk.bf16.gmra.mxu1 %vm696_vm0, %v6204_v6  ;;  %v6661_v6 = vld [vmem:[%s8645_s10 + $0x1e8] sm:$0xf0] }
  0x56   : > { %6816 = vmatmul.msk.bf16.gmra.mxu3 %vm696_vm0, %v6624_v7  ;;  %v6664_v10 = vor.u32 %v8241_v5, %v6661_v6 }
  0x5b   : > { %840 = vmatmul.bf16.gmra.mxu0 %v6040_v12  ;;  %v6079_v12 = vld [vmem:[%s8645_s10 + $0x80] sm:$0xf] }
  0x5d   : > { %1979 = vmatmul.bf16.gmra.mxu2 %v6460_v13  ;;  %v8112_v13 = vld [vmem:[%s8645_s10 + $0x84] sm:$0xf0] }
  0x5e   : > { %v6080_v16 = vor.u32 %v8112_v13, %v6079_v12  ;;  %v6688_v12 = vor.u32 %v8247_v3, %v6685_v4  ;;  %v6103_v13 = vld [vmem:[%s8645_s10 + $0xb0] sm:$0xf]  ;;  %v8251_v3 = vld [vmem:[%s8645_s10 + $0x234] sm:$0xf]  ;;  %v6701_v4 = vld [vmem:[%s8645_s10 + $0x238] sm:$0xf0] }
  0x65   : > { %6397 = vmatmul.msk.bf16.gmra.mxu1 %vm696_vm0, %v6212_v18 }
  0x66   : > { %6817 = vmatmul.msk.bf16.gmra.mxu3 %vm696_vm0, %v6632_v19  ;;  %v6500_v19 = vor.u32 %v8202_v15, %v6499_v14  ;;  %v8118_v14 = vld [vmem:[%s8645_s10 + $0xb4] sm:$0xf0]  ;;  %v6523_v15 = vld [vmem:[%s8645_s10 + $0xd0] sm:$0xf] }
  0x67   : > { %v6104_v21 = vor.u32 %v8118_v14, %v6103_v13 }
  0x6b   : > { %845 = vmatmul.bf16.gmra.mxu0 %v6048_v24  ;;  %v6669_v24 = vld [vmem:[%s8645_s10 + $0x1f8] sm:$0xf0] }
  0x6d   : > { %1984 = vmatmul.bf16.gmra.mxu2 %v6468_v25 }
  0x75   : > { %6398 = vmatmul.msk.bf16.gmra.mxu1 %vm696_vm0, %v6220_v30  ;;  %v6672_v30 = vor.u32 %v8243_v23, %v6669_v24 }
  0x76   : > { %6818 = vmatmul.msk.bf16.gmra.mxu3 %vm696_vm0, %v6640_v31  ;;  %v6087_v31 = vld [vmem:[%s8645_s10 + $0x90] sm:$0xf] }
  0x7b   : > { %850 = vmatmul.bf16.gmra.mxu0 %v6056_v36  ;;  %v6088_v36 = vor.u32 %v8114_v32, %v6087_v31  ;;  %v6273_v31 = vld [vmem:[%s8645_s10 + $0x208] sm:$0xf0]  ;;  %v8249_v32 = vld [vmem:[%s8645_s10 + $0x224] sm:$0xf] }
  0x7d   : > { %1989 = vmatmul.bf16.gmra.mxu2 %v6476_v37 }
  0x85   : > { %6399 = vmatmul.msk.bf16.gmra.mxu1 %vm696_vm0, %v6228_v43  ;;  %v8245_v43 = vld [vmem:[%s8645_s10 + $0x204] sm:$0xf] }
  0x86   : > { %6819 = vmatmul.msk.bf16.gmra.mxu3 %vm696_vm0, %v6648_v44  ;;  %v6677_v44 = vld [vmem:[%s8645_s10 + $0x208] sm:$0xf0] }
  0x8b   : > { %855 = vmatmul.bf16.gmra.mxu0 %v6064_v49 }
  0x8d   : > { %1994 = vmatmul.bf16.gmra.mxu2 %v6484_v50  ;;  %v6680_v50 = vor.u32 %v8245_v43, %v6677_v44  ;;  %v6696_v43 = vor.u32 %v8249_v32, %v6693_v33  ;;  %v6111_v44 = vld [vmem:[%s8645_s10 + $0xc0] sm:$0xf]  ;;  %v8356_v32 = vld [vmem:[%s10997_s1 + $0xa8] sm:$0xff] }
  0x92   : > { %v8777_v56 = vpop.f32.mrf.mxu1 }
  0x95   : > { %6400 = vmatmul.msk.bf16.gmra.mxu1 %vm696_vm0, %v6236_v55 }
  0x96   : > { %6820 = vmatmul.msk.bf16.gmra.mxu3 %vm696_vm0, %v6656_v57  ;;  %v6096_v57 = vor.u32 %v8116_v52, %v6095_v51  ;;  %v8210_v51 = vld [vmem:[%s8645_s10 + $0xe4] sm:$0xf0] }
  0x99   : > { %v8785_v63 = vpop.f32.mrf.mxu3 }
  0x9a   : > { %v8787_v1 = vpop.f32.mrf.mxu1 }
  0x9b   : > { %860 = vmatmul.bf16.gmra.mxu0 %v6072_v62  ;;  %v8357_v62 = vld [vmem:[%s10997_s1 + $0xb0] sm:$0xff] }
  0x9c   : > { %3100 = vmatpush.bf16.msrb.mxu1 %v8357_v62 }
  0x9d   : > { %1999 = vmatmul.bf16.gmra.mxu2 %v6492_v0  ;;  %v8157_v0 = vld [vmem:[%s8645_s10 + $0x1f4] sm:$0xf] }
  0xa0   : > { %3101 = vmatpush.bf16.msrb.mxu1 %v8356_v32  ;;  %v8214_v32 = vld [vmem:[%s8645_s10 + $0x104] sm:$0xf0] }
  0xa1   : > { %v8796_v7 = vpop.f32.mrf.mxu3 }
  0xa2   : > { %v8798_v9 = vpop.f32.mrf.mxu1 }
  0xa5   : > { %6401 = vmatmul.msk.bf16.gmra.mxu1 %vm696_vm0, %v6244_v8 }
  0xa6   : > { %6821 = vmatmul.msk.bf16.gmra.mxu3 %vm696_vm0, %v6664_v10  ;;  %v6268_v10 = vor.u32 %v8157_v0, %v6265_v2  ;;  %v8161_v0 = vld [vmem:[%s8645_s10 + $0x214] sm:$0xf]  ;;  %v6281_v2 = vld [vmem:[%s8645_s10 + $0x218] sm:$0xf0] }
  0xa7   : > { %v6284_v14 = vor.u32 %v8161_v0, %v6281_v2  ;;  %v6709_v0 = vld [vmem:[%s8645_s10 + $0x248] sm:$0xf0] }
  0xa8   : > { %v8811_v18 = vpop.f32.mrf.mxu0 }
  0xa9   : > { %v8809_v17 = vpop.f32.mrf.mxu3  ;;  %11000 = vst [vmem:[#allocation2_spill] sm:$0xff] %v8811_v18 }
  0xaa   : > { %v8813_v20 = vpop.f32.mrf.mxu1 }
  0xab   : > { %865 = vmatmul.bf16.gmra.mxu0 %v6080_v16  ;;  %v8208_v16 = vld [vmem:[%s8645_s10 + $0xd4] sm:$0xf0] }
  0xac   : > { %v6524_v24 = vor.u32 %v8208_v16, %v6523_v15  ;;  %v6704_v16 = vor.u32 %v8251_v3, %v6701_v4 }
  0xad   : > { %2004 = vmatmul.bf16.gmra.mxu2 %v6500_v19 }
  0xb0   : > { %v8819_v25 = vpop.f32.mrf.mxu2  ;;  %v8823_v27 = vpop.f32.mrf.mxu0 }
  0xb1   : > { %11001 = vst [vmem:[#allocation3_spill] sm:$0xff] %v8819_v25  ;;  %v8821_v26 = vpop.f32.mrf.mxu3  ;;  %v6857_v25 = vld [vmem:[%s8645_s10 + $0x48] sm:$0xf0] }
  0xb2   : > { %11002 = vst [vmem:[#allocation4_spill] sm:$0xff] %v8823_v27  ;;  %v8825_v29 = vpop.f32.mrf.mxu1 }
  0xb5   : > { %6402 = vmatmul.msk.bf16.gmra.mxu1 %vm696_vm0, %v6252_v28 }
  0xb6   : > { %6822 = vmatmul.msk.bf16.gmra.mxu3 %vm696_vm0, %v6672_v30  ;;  %v8159_v30 = vld [vmem:[%s8645_s10 + $0x204] sm:$0xf] }
  0xb7   : > { %v6276_v41 = vor.u32 %v8159_v30, %v6273_v31  ;;  %v6539_v30 = vld [vmem:[%s8645_s10 + $0xf0] sm:$0xf]  ;;  %v8212_v31 = vld [vmem:[%s8645_s10 + $0xf4] sm:$0xf0] }
  0xb8   : > { %v8833_v35 = vpop.f32.mrf.mxu2  ;;  %v8837_v38 = vpop.f32.mrf.mxu0 }
  0xb9   : > { %11003 = vst [vmem:[#allocation5_spill] sm:$0xff] %v8833_v35  ;;  %v8835_v37 = vpop.f32.mrf.mxu3 }
  0xba   : > { %11004 = vst [vmem:[#allocation6_spill] sm:$0xff] %v8837_v38  ;;  %v8839_v40 = vpop.f32.mrf.mxu1 }
  0xbb   : > { %870 = vmatmul.bf16.gmra.mxu0 %v6088_v36 }
  0xbd   : > { %2009 = vmatmul.bf16.gmra.mxu2 %v6508_v39 }
  0xc0   : > { %v8845_v45 = vpop.f32.mrf.mxu2  ;;  %v8849_v47 = vpop.f32.mrf.mxu0 }
  0xc1   : > { %11005 = vst [vmem:[#allocation7_spill] sm:$0xff] %v8845_v45  ;;  %v8847_v46 = vpop.f32.mrf.mxu3 }
  0xc2   : > { %11006 = vst [vmem:[#allocation8_spill] sm:$0xff] %v8849_v47  ;;  %v8851_v49 = vpop.f32.mrf.mxu1 }
  0xc5   : > { %6403 = vmatmul.msk.bf16.gmra.mxu1 %vm696_vm0, %v6260_v48  ;;  %v8120_v48 = vld [vmem:[%s8645_s10 + $0xc4] sm:$0xf0] }
  0xc6   : > { %6823 = vmatmul.msk.bf16.gmra.mxu3 %vm696_vm0, %v6680_v50  ;;  %v6531_v50 = vld [vmem:[%s8645_s10 + $0xe0] sm:$0xf]  ;;  %v6112_v53 = vor.u32 %v8120_v48, %v6111_v44  ;;  %v6540_v48 = vor.u32 %v8212_v31, %v6539_v30  ;;  %v8124_v30 = vld [vmem:[%s8645_s10 + $0xe4] sm:$0xf0] }
  0xc7   : > { %v6547_v31 = vld [vmem:[%s8645_s10 + $0x100] sm:$0xf] }
  0xc8   : > { %v8859_v55 = vpop.f32.mrf.mxu2  ;;  %v8863_v59 = vpop.f32.mrf.mxu0 }
  0xc9   : > { %11007 = vst [vmem:[#allocation9_spill] sm:$0xff] %v8859_v55  ;;  %v8861_v58 = vpop.f32.mrf.mxu3  ;;  %v8222_v55 = vld [vmem:[%s8645_s10 + $0x144] sm:$0xf0] }
  0xca   : > { %11008 = vst [vmem:[#allocation10_spill] sm:$0xff] %v8863_v59  ;;  %v8865_v61 = vpop.f32.mrf.mxu1 }
  0xcb   : > { %875 = vmatmul.bf16.gmra.mxu0 %v6096_v57 }
  0xcd   : > { %2014 = vmatmul.bf16.gmra.mxu2 %v6516_v60  ;;  %v6532_v60 = vor.u32 %v8210_v51, %v6531_v50  ;;  %v8163_v51 = vld [vmem:[%s8645_s10 + $0x224] sm:$0xf] }
  0xd0   : > { %v8874_v5 = vpop.f32.mrf.mxu2  ;;  %v8878_v8 = vpop.f32.mrf.mxu0 }
  0xd1   : > { %11009 = vst [vmem:[#allocation11_spill] sm:$0xff] %v8874_v5  ;;  %v8876_v6 = vpop.f32.mrf.mxu3  ;;  %v6741_v5 = vld [vmem:[%s8645_s10 + $0x288] sm:$0xf0] }
  0xd2   : > { %11010 = vst [vmem:[#allocation12_spill] sm:$0xff] %v8878_v8  ;;  %v8880_v11 = vpop.f32.mrf.mxu1 }
  0xd5   : > { %6404 = vmatmul.msk.bf16.gmra.mxu1 %vm696_vm0, %v6268_v10 }
  0xd6   : > { %6824 = vmatmul.msk.bf16.gmra.mxu3 %vm696_vm0, %v6688_v12 }
  0xd8   : > { %v8888_v19 = vpop.f32.mrf.mxu2  ;;  %v8892_v23 = vpop.f32.mrf.mxu0 }
  0xd9   : > { %11011 = vst [vmem:[#allocation13_spill] sm:$0xff] %v8888_v19  ;;  %v8890_v22 = vpop.f32.mrf.mxu3 }
  0xda   : > { %11012 = vst [vmem:[#allocation14_spill] sm:$0xff] %v8892_v23  ;;  %v8894_v28 = vpop.f32.mrf.mxu1 }
  0xdb   : > { %880 = vmatmul.bf16.gmra.mxu0 %v6104_v21  ;;  %v6119_v21 = vld [vmem:[%s8645_s10 + $0xd0] sm:$0xf] }
  0xdd   : > { %2019 = vmatmul.bf16.gmra.mxu2 %v6524_v24  ;;  %v8122_v24 = vld [vmem:[%s8645_s10 + $0xd4] sm:$0xf0] }
  0xe0   : > { %v8900_v34 = vpop.f32.mrf.mxu2  ;;  %v8904_v39 = vpop.f32.mrf.mxu0 }
  0xe1   : > { %11013 = vst [vmem:[#allocation15_spill] sm:$0xff] %v8900_v34  ;;  %v8902_v36 = vpop.f32.mrf.mxu3  ;;  %v6733_v34 = vld [vmem:[%s8645_s10 + $0x278] sm:$0xf0] }
  0xe2   : > { %11014 = vst [vmem:[#allocation16_spill] sm:$0xff] %v8904_v39  ;;  %v8906_v42 = vpop.f32.mrf.mxu1 }
  0xe5   : > { %6405 = vmatmul.msk.bf16.gmra.mxu1 %vm696_vm0, %v6276_v41  ;;  %v6120_v41 = vor.u32 %v8122_v24, %v6119_v21  ;;  %v6127_v24 = vld [vmem:[%s8645_s10 + $0xe0] sm:$0xf] }
  0xe6   : > { %6825 = vmatmul.msk.bf16.gmra.mxu3 %vm696_vm0, %v6696_v43 }
  0xe8   : > { %v8914_v52 = vpop.f32.mrf.mxu2  ;;  %v8918_v57 = vpop.f32.mrf.mxu0 }
  0xe9   : > { %11015 = vst [vmem:[#allocation17_spill] sm:$0xff] %v8914_v52  ;;  %v8916_v54 = vpop.f32.mrf.mxu3 }
  0xea   : > { %11016 = vst [vmem:[#allocation18_spill] sm:$0xff] %v8918_v57  ;;  %v8920_v62 = vpop.f32.mrf.mxu1 }
  0xeb   : > { %885 = vmatmul.bf16.gmra.mxu0 %v6112_v53  ;;  %v6289_v53 = vld [vmem:[%s8645_s10 + $0x228] sm:$0xf0] }
  0xed   : > { %2024 = vmatmul.bf16.gmra.mxu2 %v6532_v60  ;;  %v8253_v60 = vld [vmem:[%s8645_s10 + $0x244] sm:$0xf] }
  0xee   : > { %v6712_v21 = vor.u32 %v8253_v60, %v6709_v0  ;;  %v8165_v0 = vld [vmem:[%s8645_s10 + $0x234] sm:$0xf] }
  0xf0   : > { %v8926_v10 = vpop.f32.mrf.mxu2  ;;  %v8930_v13 = vpop.f32.mrf.mxu0 }
  0xf1   : > { %11017 = vst [vmem:[#allocation19_spill] sm:$0xff] %v8926_v10  ;;  %v8928_v12 = vpop.f32.mrf.mxu3  ;;  %v6725_v10 = vld [vmem:[%s8645_s10 + $0x268] sm:$0xf0] }
  0xf2   : > { %11018 = vst [vmem:[#allocation20_spill] sm:$0xff] %v8930_v13  ;;  %v8932_v15 = vpop.f32.mrf.mxu1 }
  0xf5   : > { %6406 = vmatmul.msk.bf16.gmra.mxu1 %vm696_vm0, %v6284_v14  ;;  %v6292_v14 = vor.u32 %v8163_v51, %v6289_v53  ;;  %v6548_v53 = vor.u32 %v8214_v32, %v6547_v31  ;;  %v6135_v32 = vld [vmem:[%s8645_s10 + $0xf0] sm:$0xf] }
  0xf6   : > { %6826 = vmatmul.msk.bf16.gmra.mxu3 %vm696_vm0, %v6704_v16 }
  0xf8   : > { %v8943_v33 = vpop.f32.mrf.mxu2  ;;  %v8947_v44 = vpop.f32.mrf.mxu0 }
  0xf9   : > { %11019 = vst [vmem:[#allocation21_spill] sm:$0xff] %v8943_v33  ;;  %v8945_v43 = vpop.f32.mrf.mxu3 }
  0xfa   : > { %11020 = vst [vmem:[#allocation22_spill] sm:$0xff] %v8947_v44  ;;  %v8949_v50 = vpop.f32.mrf.mxu1 }
  0xfb   : > { %890 = vmatmul.bf16.gmra.mxu0 %v6120_v41 }
  0xfd   : > { %2029 = vmatmul.bf16.gmra.mxu2 %v6540_v48  ;;  %v6128_v48 = vor.u32 %v8124_v30, %v6127_v24 }
 0x100   : > { %v8955_v2 = vpop.f32.mrf.mxu2  ;;  %v8959_v4 = vpop.f32.mrf.mxu0 }
 0x101   : > { %11021 = vst [vmem:[#allocation23_spill] sm:$0xff] %v8955_v2  ;;  %v8957_v3 = vpop.f32.mrf.mxu3  ;;  %v6717_v2 = vld [vmem:[%s8645_s10 + $0x258] sm:$0xf0] }
 0x102   : > { %11022 = vst [vmem:[#allocation24_spill] sm:$0xff] %v8959_v4  ;;  %v8961_v16 = vpop.f32.mrf.mxu1 }
 0x105   : > { %6407 = vmatmul.msk.bf16.gmra.mxu1 %vm696_vm0, %v6292_v14  ;;  %v6297_v14 = vld [vmem:[%s8645_s10 + $0x238] sm:$0xf0] }
 0x106   : > { %6827 = vmatmul.msk.bf16.gmra.mxu3 %vm696_vm0, %v6712_v21  ;;  %v8255_v21 = vld [vmem:[%s8645_s10 + $0x254] sm:$0xf] }
 0x107   : > { %v6720_v31 = vor.u32 %v8255_v21, %v6717_v2  ;;  %v6305_v21 = vld [vmem:[%s8645_s10 + $0x248] sm:$0xf0] }
 0x108   : > { %v8969_v41 = vpop.f32.mrf.mxu2  ;;  %v8973_v51 = vpop.f32.mrf.mxu0 }
 0x109   : > { %11023 = vst [vmem:[#allocation25_spill] sm:$0xff] %v8969_v41  ;;  %v8971_v4 = vpop.f32.mrf.mxu3 }
 0x10a   : > { %11024 = vst [vmem:[#allocation26_spill] sm:$0xff] %v8973_v51  ;;  %v8975_v60 = vpop.f32.mrf.mxu1  ;;  %v6300_v51 = vor.u32 %v8165_v0, %v6297_v14 }
 0x10b   : > { %895 = vmatmul.bf16.gmra.mxu0 %v6128_v48  ;;  %v8126_v48 = vld [vmem:[%s8645_s10 + $0xf4] sm:$0xf0] }
 0x10c   : > { %v6136_v13 = vor.u32 %v8126_v48, %v6135_v32 }
 0x10d   : > { %2034 = vmatmul.bf16.gmra.mxu2 %v6548_v53  ;;  %v6555_v53 = vld [vmem:[%s8645_s10 + $0x110] sm:$0xf] }
 0x110   : > { %v8981_v44 = vpop.f32.mrf.mxu2  ;;  %v8985_v30 = vpop.f32.mrf.mxu0 }
 0x111   : > { %11025 = vst [vmem:[#allocation27_spill] sm:$0xff] %v8981_v44  ;;  %v8983_v24 = vpop.f32.mrf.mxu3  ;;  %v8216_v44 = vld [vmem:[%s8645_s10 + $0x114] sm:$0xf0] }
 0x112   : > { %11026 = vst [vmem:[#allocation28_spill] sm:$0xff] %v8985_v30  ;;  %v8987_v41 = vpop.f32.mrf.mxu1  ;;  %v6556_v14 = vor.u32 %v8216_v44, %v6555_v53  ;;  %v8355_v44 = vld [vmem:[%s10997_s1 + $0xa0] sm:$0xff] }
 0x113   : > { %3102 = vmatpush.bf16.msrb.mxu1 %v8355_v44  ;;  %v6313_v44 = vld [vmem:[%s8645_s10 + $0x258] sm:$0xf0] }
 0x115   : > { %6408 = vmatmul.msk.bf16.gmra.mxu1 %vm696_vm0, %v6300_v51  ;;  %v8167_v51 = vld [vmem:[%s8645_s10 + $0x244] sm:$0xf] }
 0x116   : > { %6828 = vmatmul.msk.bf16.gmra.mxu3 %vm696_vm0, %v6720_v31  ;;  %v8257_v31 = vld [vmem:[%s8645_s10 + $0x264] sm:$0xf] }
 0x117   : > { %v6728_v53 = vor.u32 %v8257_v31, %v6725_v10 }
 0x118   : > { %v8995_v33 = vpop.f32.mrf.mxu2  ;;  %v8999_v0 = vpop.f32.mrf.mxu0 }
 0x119   : > { %11027 = vst [vmem:[#allocation29_spill] sm:$0xff] %v8995_v33  ;;  %v8997_v30 = vpop.f32.mrf.mxu3 }
 0x11a   : > { %11028 = vst [vmem:[#allocation30_spill] sm:$0xff] %v8999_v0  ;;  %v9001_v2 = vpop.f32.mrf.mxu1  ;;  %v6308_v0 = vor.u32 %v8167_v51, %v6305_v21  ;;  %v8218_v51 = vld [vmem:[%s8645_s10 + $0x124] sm:$0xf0] }
 0x11b   : > { %900 = vmatmul.bf16.gmra.mxu0 %v6136_v13 }
 0x11d   : > { %2039 = vmatmul.bf16.gmra.mxu2 %v6556_v14  ;;  %v6143_v14 = vld [vmem:[%s8645_s10 + $0x100] sm:$0xf] }
 0x120   : > { %v9007_v57 = vpop.f32.mrf.mxu2  ;;  %v9011_v48 = vpop.f32.mrf.mxu0 }
 0x121   : > { %11029 = vst [vmem:[#allocation31_spill] sm:$0xff] %v9007_v57  ;;  %v9009_v32 = vpop.f32.mrf.mxu3  ;;  %v8128_v57 = vld [vmem:[%s8645_s10 + $0x104] sm:$0xf0] }
 0x122   : > { %11030 = vst [vmem:[#allocation32_spill] sm:$0xff] %v9011_v48  ;;  %v9016_v13 = vpop.f32.mrf.mxu1  ;;  %v6563_v48 = vld [vmem:[%s8645_s10 + $0x120] sm:$0xf]  ;;  %v6144_v33 = vor.u32 %v8128_v57, %v6143_v14 }
 0x123   : > { %v6564_v10 = vor.u32 %v8218_v51, %v6563_v48  ;;  %v8130_v51 = vld [vmem:[%s8645_s10 + $0x114] sm:$0xf0] }
 0x125   : > { %6409 = vmatmul.msk.bf16.gmra.mxu1 %vm696_vm0, %v6308_v0  ;;  %v8169_v0 = vld [vmem:[%s8645_s10 + $0x254] sm:$0xf] }
 0x126   : > { %6829 = vmatmul.msk.bf16.gmra.mxu3 %vm696_vm0, %v6728_v53  ;;  %v8259_v53 = vld [vmem:[%s8645_s10 + $0x274] sm:$0xf] }
 0x127   : > { %v6736_v48 = vor.u32 %v8259_v53, %v6733_v34  ;;  %v6321_v53 = vld [vmem:[%s8645_s10 + $0x268] sm:$0xf0] }
 0x128   : > { %v9024_v21 = vpop.f32.mrf.mxu2  ;;  %v9028_v39 = vpop.f32.mrf.mxu0 }
 0x129   : > { %11031 = vst [vmem:[#allocation33_spill] sm:$0xff] %v9024_v21  ;;  %v9026_v52 = vpop.f32.mrf.mxu3 }
 0x12a   : > { %11032 = vst [vmem:[#allocation34_spill] sm:$0xff] %v9028_v39  ;;  %v9030_v31 = vpop.f32.mrf.mxu1  ;;  %v6316_v39 = vor.u32 %v8169_v0, %v6313_v44 }
 0x12b   : > { %905 = vmatmul.bf16.gmra.mxu0 %v6144_v33  ;;  %v6151_v33 = vld [vmem:[%s8645_s10 + $0x110] sm:$0xf] }
 0x12c   : > { %v6152_v8 = vor.u32 %v8130_v51, %v6151_v33 }
 0x12d   : > { %2044 = vmatmul.bf16.gmra.mxu2 %v6564_v10  ;;  %v6571_v10 = vld [vmem:[%s8645_s10 + $0x130] sm:$0xf] }
 0x130   : > { %v9036_v23 = vpop.f32.mrf.mxu2  ;;  %v9040_v14 = vpop.f32.mrf.mxu0 }
 0x131   : > { %11033 = vst [vmem:[#allocation35_spill] sm:$0xff] %v9036_v23  ;;  %v9038_v57 = vpop.f32.mrf.mxu3  ;;  %v8220_v23 = vld [vmem:[%s8645_s10 + $0x134] sm:$0xf0] }
 0x132   : > { %11034 = vst [vmem:[#allocation36_spill] sm:$0xff] %v9040_v14  ;;  %v9042_v21 = vpop.f32.mrf.mxu1  ;;  %v6572_v34 = vor.u32 %v8220_v23, %v6571_v10  ;;  %v8132_v10 = vld [vmem:[%s8645_s10 + $0x124] sm:$0xf0] }
 0x135   : > { %6410 = vmatmul.msk.bf16.gmra.mxu1 %vm696_vm0, %v6316_v39  ;;  %v8171_v39 = vld [vmem:[%s8645_s10 + $0x264] sm:$0xf] }
 0x136   : > { %6830 = vmatmul.msk.bf16.gmra.mxu3 %vm696_vm0, %v6736_v48  ;;  %v8261_v48 = vld [vmem:[%s8645_s10 + $0x284] sm:$0xf] }
 0x137   : > { %v6744_v23 = vor.u32 %v8261_v48, %v6741_v5 }
 0x138   : > { %v9050_v19 = vpop.f32.mrf.mxu2  ;;  %v9054_v0 = vpop.f32.mrf.mxu0 }
 0x139   : > { %11035 = vst [vmem:[#allocation37_spill] sm:$0xff] %v9050_v19  ;;  %v9052_v14 = vpop.f32.mrf.mxu3 }
 0x13a   : > { %11036 = vst [vmem:[#allocation38_spill] sm:$0xff] %v9054_v0  ;;  %v9056_v44 = vpop.f32.mrf.mxu1  ;;  %v6324_v0 = vor.u32 %v8171_v39, %v6321_v53 }
 0x13b   : > { %910 = vmatmul.bf16.gmra.mxu0 %v6152_v8  ;;  %v6159_v8 = vld [vmem:[%s8645_s10 + $0x120] sm:$0xf] }
 0x13c   : > { %v6160_v53 = vor.u32 %v8132_v10, %v6159_v8  ;;  %v8173_v8 = vld [vmem:[%s8645_s10 + $0x274] sm:$0xf] }
 0x13d   : > { %2049 = vmatmul.bf16.gmra.mxu2 %v6572_v34  ;;  %v6579_v34 = vld [vmem:[%s8645_s10 + $0x140] sm:$0xf]  ;;  %v8263_v10 = vld [vmem:[%s8645_s10 + $0x294] sm:$0xf] }
 0x13e   : > { %v6580_v48 = vor.u32 %v8222_v55, %v6579_v34 }
 0x140   : > { %v9062_v59 = vpop.f32.mrf.mxu2  ;;  %v9066_v51 = vpop.f32.mrf.mxu0 }
 0x141   : > { %11037 = vst [vmem:[#allocation39_spill] sm:$0xff] %v9062_v59  ;;  %v9064_v33 = vpop.f32.mrf.mxu3 }
 0x142   : > { %11038 = vst [vmem:[#allocation40_spill] sm:$0xff] %v9066_v51  ;;  %v9068_v19 = vpop.f32.mrf.mxu1  ;;  %v8544_v51 = vld [vmem:[%s10997_s1 + $0x188] sm:$0xff] }
 0x143   : > { %5588 = vmatpush.bf16.msra.mxu3 %v8544_v51  ;;  %v6329_v51 = vld [vmem:[%s8645_s10 + $0x278] sm:$0xf0] }
 0x145   : > { %6411 = vmatmul.msk.bf16.gmra.mxu1 %vm696_vm0, %v6324_v0 }
 0x146   : > { %6831 = vmatmul.msk.bf16.gmra.mxu3 %vm696_vm0, %v6744_v23  ;;  %v8542_v23 = vld [vmem:[%s10997_s1 + $0x178] sm:$0xff] }
 0x147   : > { %5373 = vmatpush.bf16.msra.mxu1 %v8542_v23  ;;  %v6587_v23 = vld [vmem:[%s8645_s10 + $0x150] sm:$0xf] }
 0x148   : > { %v9079_v39 = vpop.f32.mrf.mxu2  ;;  %v9083_v0 = vpop.f32.mrf.mxu0 }
 0x149   : > { %11039 = vst [vmem:[#allocation41_spill] sm:$0xff] %v9079_v39  ;;  %v9081_v5 = vpop.f32.mrf.mxu3  ;;  %v6749_v39 = vld [vmem:[%s8645_s10 + $0x298] sm:$0xf0] }
 0x14a   : > { %11040 = vst [vmem:[#allocation42_spill] sm:$0xff] %v9083_v0  ;;  %v9085_v59 = vpop.f32.mrf.mxu1  ;;  %v6332_v0 = vor.u32 %v8173_v8, %v6329_v51  ;;  %v6752_v38 = vor.u32 %v8263_v10, %v6749_v39  ;;  %v8275_v10 = vld [vmem:[%s8645_s10 + $0x44] sm:$0xf] }
 0x14b   : > { %11041 = vst [vmem:[#allocation43_spill] sm:$0xff] %v9085_v59  ;;  %915 = vmatmul.bf16.gmra.mxu0 %v6160_v53  ;;  %v6167_v53 = vld [vmem:[%s8645_s10 + $0x130] sm:$0xf]  ;;  %v6659_v59 = vld [vmem:[%s8645_s10 + $0x1e0] sm:$0xf] }
 0x14d   : > { %2054 = vmatmul.bf16.gmra.mxu2 %v6580_v48  ;;  %v8134_v48 = vld [vmem:[%s8645_s10 + $0x134] sm:$0xf0] }
 0x14e   : > { %v6168_v27 = vor.u32 %v8134_v48, %v6167_v53 }
 0x150   : > { %v9094_v47 = vpop.f32.mrf.mxu2  ;;  %v9098_v34 = vpop.f32.mrf.mxu0 }
 0x151   : > { %11042 = vst [vmem:[#allocation44_spill] sm:$0xff] %v9094_v47  ;;  %v9096_v55 = vpop.f32.mrf.mxu3  ;;  %v8224_v47 = vld [vmem:[%s8645_s10 + $0x154] sm:$0xf0] }
 0x152   : > { %11043 = vst [vmem:[#allocation45_spill] sm:$0xff] %v9096_v55  ;;  %v9100_v45 = vpop.f32.mrf.mxu1  ;;  %v6588_v39 = vor.u32 %v8224_v47, %v6587_v23  ;;  %v6860_v47 = vor.u32 %v8275_v10, %v6857_v25  ;;  %v8136_v23 = vld [vmem:[%s8645_s10 + $0x144] sm:$0xf0]  ;;  %v8278_v10 = vld [vmem:[%s8645_s10 + $0x54] sm:$0xf0] }
 0x153   : > { %11044 = vst [vmem:[#allocation46_spill] sm:$0xff] %v9098_v34  ;;  %v8152_v55 = vld [vmem:[%s8645_s10 + $0x1c4] sm:$0xf0] }
 0x154   : > { %11045 = vst [vmem:[#allocation47_spill] sm:$0xff] %v9100_v45  ;;  %v6239_v45 = vld [vmem:[%s8645_s10 + $0x1c0] sm:$0xf] }
 0x155   : > { %6412 = vmatmul.msk.bf16.gmra.mxu1 %vm696_vm0, %v6332_v0  ;;  %v6855_v0 = vld [vmem:[%s8645_s10 + $0x40] sm:$0xf] }
 0x156   : > { %6832 = vmatmul.msk.bf16.gmra.mxu3 %vm696_vm0, %v6752_v38  ;;  %v8276_v38 = vld [vmem:[%s8645_s10 + $0x44] sm:$0xf0] }
 0x158   : > { %v9108_v35 = vpop.f32.mrf.mxu2  ;;  %v9112_v8 = vpop.f32.mrf.mxu0 }
 0x159   : > { %11046 = vst [vmem:[#allocation48_spill] sm:$0xff] %v9108_v35  ;;  %v9110_v34 = vpop.f32.mrf.mxu3 }
 0x15a   : > { %11047 = vst [vmem:[#allocation49_spill] sm:$0xff] %v9110_v34  ;;  %v9114_v51 = vpop.f32.mrf.mxu1 }
 0x15b   : > { %11048 = vst [vmem:[#allocation50_spill] sm:$0xff] %v9112_v8  ;;  %920 = vmatmul.bf16.gmra.mxu0 %v6168_v27  ;;  %v6856_v8 = vor.u32 %v8276_v38, %v6855_v0  ;;  %v6175_v27 = vld [vmem:[%s8645_s10 + $0x140] sm:$0xf] }
 0x15c   : > { %11049 = vst [vmem:[#allocation51_spill] sm:$0xff] %v9114_v51  ;;  %v8226_v51 = vld [vmem:[%s8645_s10 + $0x164] sm:$0xf0] }
 0x15d   : > { %2059 = vmatmul.bf16.gmra.mxu2 %v6588_v39  ;;  %v6595_v39 = vld [vmem:[%s8645_s10 + $0x160] sm:$0xf] }
 0x15e   : > { %v6596_v38 = vor.u32 %v8226_v51, %v6595_v39  ;;  %v8138_v39 = vld [vmem:[%s8645_s10 + $0x154] sm:$0xf0] }
 0x160   : > { %v9120_v18 = vpop.f32.mrf.mxu2  ;;  %v9124_v48 = vpop.f32.mrf.mxu0 }
 0x161   : > { %11050 = vst [vmem:[#allocation52_spill] sm:$0xff] %v9120_v18  ;;  %v9122_v53 = vpop.f32.mrf.mxu3 }
 0x162   : > { %11051 = vst [vmem:[#allocation53_spill] sm:$0xff] %v9122_v53  ;;  %v9126_v35 = vpop.f32.mrf.mxu1  ;;  %v6176_v53 = vor.u32 %v8136_v23, %v6175_v27 }
 0x163   : > { %11052 = vst [vmem:[#allocation54_spill] sm:$0xff] %v9124_v48  ;;  %v6865_v48 = vld [vmem:[%s8645_s10 + $0x58] sm:$0xf0] }
 0x164   : > { %11053 = vst [vmem:[#allocation55_spill] sm:$0xff] %v9126_v35 }
 0x165   : > { %3103 = vmatmul.bf16.vlgmr.msrb.gmra.mxu1 %v6856_v8  ;;  %v6863_v8 = vld [vmem:[%s8645_s10 + $0x50] sm:$0xf] }
 0x166   : > { %7213 = vmatmul.msk.bf16.vlgmr.msrb.gmra.mxu3 %vm696_vm0, %v6860_v47  ;;  %v8277_v47 = vld [vmem:[%s8645_s10 + $0x54] sm:$0xf] }
 0x167   : > { %v6868_v51 = vor.u32 %v8277_v47, %v6865_v48  ;;  %v8280_v47 = vld [vmem:[%s8645_s10 + $0x64] sm:$0xf0] }
 0x168   : > { %v9133_v18 = vpop.f32.mrf.mxu2  ;;  %v9137_v0 = vpop.f32.mrf.mxu0 }
 0x169   : > { %11054 = vst [vmem:[#allocation56_spill] sm:$0xff] %v9133_v18  ;;  %v9135_v34 = vpop.f32.mrf.mxu3 }
 0x16a   : > { %11055 = vst [vmem:[#allocation57_spill] sm:$0xff] %v9135_v34  ;;  %v9139_v25 = vpop.f32.mrf.mxu1 }
 0x16b   : > { %11056 = vst [vmem:[#allocation58_spill] sm:$0xff] %v9137_v0  ;;  %925 = vmatmul.bf16.gmra.mxu0 %v6176_v53  ;;  %v6864_v0 = vor.u32 %v8278_v10, %v6863_v8  ;;  %v6183_v53 = vld [vmem:[%s8645_s10 + $0x150] sm:$0xf] }
 0x16c   : > { %11057 = vst [vmem:[#allocation59_spill] sm:$0xff] %v9139_v25  ;;  %v8228_v25 = vld [vmem:[%s8645_s10 + $0x174] sm:$0xf0] }
 0x16d   : > { %2064 = vmatmul.bf16.gmra.mxu2 %v6596_v38  ;;  %v6603_v38 = vld [vmem:[%s8645_s10 + $0x170] sm:$0xf] }
 0x16e   : > { %v6604_v10 = vor.u32 %v8228_v25, %v6603_v38  ;;  %v8140_v38 = vld [vmem:[%s8645_s10 + $0x164] sm:$0xf0] }
 0x170   : > { %v9145_v35 = vpop.f32.mrf.mxu2  ;;  %v9149_v23 = vpop.f32.mrf.mxu0 }
 0x171   : > { %11058 = vst [vmem:[#allocation60_spill] sm:$0xff] %v9145_v35  ;;  %v9147_v27 = vpop.f32.mrf.mxu3 }
 0x172   : > { %11059 = vst [vmem:[#allocation61_spill] sm:$0xff] %v9147_v27  ;;  %v9151_v18 = vpop.f32.mrf.mxu1  ;;  %v6184_v27 = vor.u32 %v8138_v39, %v6183_v53 }
 0x173   : > { %11060 = vst [vmem:[#allocation62_spill] sm:$0xff] %v9149_v23  ;;  %v6873_v23 = vld [vmem:[%s8645_s10 + $0x68] sm:$0xf0] }
 0x174   : > { %11061 = vst [vmem:[#allocation63_spill] sm:$0xff] %v9151_v18 }
 0x175   : > { %3108 = vmatmul.bf16.gmra.mxu1 %v6864_v0  ;;  %v6871_v0 = vld [vmem:[%s8645_s10 + $0x60] sm:$0xf] }
 0x176   : > { %7214 = vmatmul.msk.bf16.gmra.mxu3 %vm696_vm0, %v6868_v51  ;;  %v8279_v51 = vld [vmem:[%s8645_s10 + $0x64] sm:$0xf] }
 0x177   : > { %v6876_v25 = vor.u32 %v8279_v51, %v6873_v23  ;;  %v8282_v51 = vld [vmem:[%s8645_s10 + $0x74] sm:$0xf0] }
 0x178   : > { %v9158_v35 = vpop.f32.mrf.mxu2  ;;  %v9162_v8 = vpop.f32.mrf.mxu0 }
 0x179   : > { %11062 = vst [vmem:[#allocation64_spill] sm:$0xff] %v9158_v35  ;;  %v9160_v34 = vpop.f32.mrf.mxu3 }
 0x17a   : > { %11063 = vst [vmem:[#allocation65_spill] sm:$0xff] %v9160_v34  ;;  %v9164_v48 = vpop.f32.mrf.mxu1 }
 0x17b   : > { %11064 = vst [vmem:[#allocation66_spill] sm:$0xff] %v9162_v8  ;;  %930 = vmatmul.bf16.gmra.mxu0 %v6184_v27  ;;  %v6872_v8 = vor.u32 %v8280_v47, %v6871_v0  ;;  %v6191_v27 = vld [vmem:[%s8645_s10 + $0x160] sm:$0xf] }
 0x17c   : > { %11065 = vst [vmem:[#allocation67_spill] sm:$0xff] %v9164_v48  ;;  %v8230_v48 = vld [vmem:[%s8645_s10 + $0x184] sm:$0xf0] }
 0x17d   : > { %2069 = vmatmul.bf16.gmra.mxu2 %v6604_v10  ;;  %v6611_v10 = vld [vmem:[%s8645_s10 + $0x180] sm:$0xf] }
 0x17e   : > { %v6612_v47 = vor.u32 %v8230_v48, %v6611_v10  ;;  %v8142_v10 = vld [vmem:[%s8645_s10 + $0x174] sm:$0xf0] }
 0x180   : > { %v9170_v18 = vpop.f32.mrf.mxu2  ;;  %v9174_v39 = vpop.f32.mrf.mxu0 }
 0x181   : > { %11066 = vst [vmem:[#allocation68_spill] sm:$0xff] %v9170_v18  ;;  %v9172_v53 = vpop.f32.mrf.mxu3 }
 0x182   : > { %11067 = vst [vmem:[#allocation69_spill] sm:$0xff] %v9172_v53  ;;  %v9176_v35 = vpop.f32.mrf.mxu1  ;;  %v6192_v53 = vor.u32 %v8140_v38, %v6191_v27 }
 0x183   : > { %11068 = vst [vmem:[#allocation70_spill] sm:$0xff] %v9174_v39  ;;  %v6881_v39 = vld [vmem:[%s8645_s10 + $0x78] sm:$0xf0] }
 0x184   : > { %11069 = vst [vmem:[#allocation71_spill] sm:$0xff] %v9176_v35 }
 0x185   : > { %3113 = vmatmul.bf16.gmra.mxu1 %v6872_v8  ;;  %v6879_v8 = vld [vmem:[%s8645_s10 + $0x70] sm:$0xf] }
 0x186   : > { %7215 = vmatmul.msk.bf16.gmra.mxu3 %vm696_vm0, %v6876_v25  ;;  %v8281_v25 = vld [vmem:[%s8645_s10 + $0x74] sm:$0xf] }
 0x187   : > { %v6884_v48 = vor.u32 %v8281_v25, %v6881_v39  ;;  %v6887_v25 = vld [vmem:[%s8645_s10 + $0x80] sm:$0xf] }
 0x188   : > { %v9183_v18 = vpop.f32.mrf.mxu2  ;;  %v9187_v0 = vpop.f32.mrf.mxu0 }
 0x189   : > { %11070 = vst [vmem:[#allocation72_spill] sm:$0xff] %v9183_v18  ;;  %v9185_v34 = vpop.f32.mrf.mxu3 }
 0x18a   : > { %11071 = vst [vmem:[#allocation73_spill] sm:$0xff] %v9185_v34  ;;  %v9189_v23 = vpop.f32.mrf.mxu1 }
 0x18b   : > { %11072 = vst [vmem:[#allocation74_spill] sm:$0xff] %v9187_v0  ;;  %935 = vmatmul.bf16.gmra.mxu0 %v6192_v53  ;;  %v6880_v0 = vor.u32 %v8282_v51, %v6879_v8  ;;  %v6199_v53 = vld [vmem:[%s8645_s10 + $0x170] sm:$0xf] }
 0x18c   : > { %11073 = vst [vmem:[#allocation75_spill] sm:$0xff] %v9189_v23  ;;  %v8232_v23 = vld [vmem:[%s8645_s10 + $0x194] sm:$0xf0] }
 0x18d   : > { %2074 = vmatmul.bf16.gmra.mxu2 %v6612_v47  ;;  %v6619_v47 = vld [vmem:[%s8645_s10 + $0x190] sm:$0xf] }
 0x18e   : > { %v6620_v51 = vor.u32 %v8232_v23, %v6619_v47 }
 0x190   : > { %v9195_v35 = vpop.f32.mrf.mxu2  ;;  %v9199_v38 = vpop.f32.mrf.mxu0 }
 0x191   : > { %11074 = vst [vmem:[#allocation76_spill] sm:$0xff] %v9195_v35  ;;  %v9197_v27 = vpop.f32.mrf.mxu3 }
 0x192   : > { %11075 = vst [vmem:[#allocation77_spill] sm:$0xff] %v9197_v27  ;;  %v9201_v18 = vpop.f32.mrf.mxu1  ;;  %v6200_v27 = vor.u32 %v8142_v10, %v6199_v53  ;;  %v8283_v53 = vld [vmem:[%s8645_s10 + $0x84] sm:$0xf]  ;;  %v6889_v10 = vld [vmem:[%s8645_s10 + $0x88] sm:$0xf0] }
 0x193   : > { %11076 = vst [vmem:[#allocation78_spill] sm:$0xff] %v9199_v38 }
 0x194   : > { %11077 = vst [vmem:[#allocation79_spill] sm:$0xff] %v9201_v18 }
 0x195   : > { %3118 = vmatmul.bf16.gmra.mxu1 %v6880_v0  ;;  %v8541_v0 = vld [vmem:[%s10997_s1 + $0x170] sm:$0xff] }
 0x196   : > { %7216 = vmatmul.msk.bf16.gmra.mxu3 %vm696_vm0, %v6884_v48  ;;  %5374 = vmatpush.bf16.msra.mxu1 %v8541_v0  ;;  %v8284_v48 = vld [vmem:[%s8645_s10 + $0x84] sm:$0xf0]  ;;  %v6627_v0 = vld [vmem:[%s8645_s10 + $0x1a0] sm:$0xf] }
 0x198   : > { %v9208_v35 = vpop.f32.mrf.mxu2  ;;  %v9212_v8 = vpop.f32.mrf.mxu0 }
 0x199   : > { %11078 = vst [vmem:[#allocation80_spill] sm:$0xff] %v9208_v35  ;;  %v9210_v34 = vpop.f32.mrf.mxu3 }
 0x19a   : > { %11079 = vst [vmem:[#allocation81_spill] sm:$0xff] %v9210_v34  ;;  %v9214_v39 = vpop.f32.mrf.mxu1  ;;  %v8234_v34 = vld [vmem:[%s8645_s10 + $0x1a4] sm:$0xf0] }
 0x19b   : > { %11080 = vst [vmem:[#allocation82_spill] sm:$0xff] %v9212_v8  ;;  %940 = vmatmul.bf16.gmra.mxu0 %v6200_v27  ;;  %v6888_v8 = vor.u32 %v8284_v48, %v6887_v25  ;;  %v6207_v27 = vld [vmem:[%s8645_s10 + $0x180] sm:$0xf]  ;;  %v6628_v48 = vor.u32 %v8234_v34, %v6627_v0  ;;  %v8146_v0 = vld [vmem:[%s8645_s10 + $0x194] sm:$0xf0] }
 0x19c   : > { %11081 = vst [vmem:[#allocation83_spill] sm:$0xff] %v9214_v39  ;;  %v6892_v39 = vor.u32 %v8283_v53, %v6889_v10  ;;  %v8285_v10 = vld [vmem:[%s8645_s10 + $0x94] sm:$0xf] }
 0x19d   : > { %2079 = vmatmul.bf16.gmra.mxu2 %v6620_v51  ;;  %v8144_v51 = vld [vmem:[%s8645_s10 + $0x184] sm:$0xf0] }
 0x1a0   : > { %v9223_v35 = vpop.f32.mrf.mxu2  ;;  %v9227_v47 = vpop.f32.mrf.mxu0 }
 0x1a1   : > { %11082 = vst [vmem:[#allocation84_spill] sm:$0xff] %v9223_v35  ;;  %v9225_v23 = vpop.f32.mrf.mxu3 }
 0x1a2   : > { %11083 = vst [vmem:[#allocation85_spill] sm:$0xff] %v9225_v23  ;;  %v9229_v38 = vpop.f32.mrf.mxu1  ;;  %v6208_v23 = vor.u32 %v8144_v51, %v6207_v27 }
 0x1a3   : > { %11084 = vst [vmem:[#allocation86_spill] sm:$0xff] %v9227_v47  ;;  %v6897_v47 = vld [vmem:[%s8645_s10 + $0x98] sm:$0xf0] }
 0x1a4   : > { %11085 = vst [vmem:[#allocation87_spill] sm:$0xff] %v9229_v38  ;;  %v6900_v34 = vor.u32 %v8285_v10, %v6897_v47  ;;  %v8288_v10 = vld [vmem:[%s8645_s10 + $0xa4] sm:$0xf0] }
 0x1a5   : > { %3123 = vmatmul.bf16.gmra.mxu1 %v6888_v8  ;;  %v6895_v8 = vld [vmem:[%s8645_s10 + $0x90] sm:$0xf] }
 0x1a6   : > { %7217 = vmatmul.msk.bf16.gmra.mxu3 %vm696_vm0, %v6892_v39  ;;  %v8286_v39 = vld [vmem:[%s8645_s10 + $0x94] sm:$0xf0] }
 0x1a8   : > { %v9236_v35 = vpop.f32.mrf.mxu2  ;;  %v9240_v25 = vpop.f32.mrf.mxu0 }
 0x1a9   : > { %11086 = vst [vmem:[#allocation88_spill] sm:$0xff] %v9236_v35  ;;  %v9238_v18 = vpop.f32.mrf.mxu3 }
 0x1aa   : > { %11087 = vst [vmem:[#allocation89_spill] sm:$0xff] %v9238_v18  ;;  %v9242_v53 = vpop.f32.mrf.mxu1 }
 0x1ab   : > { %11088 = vst [vmem:[#allocation90_spill] sm:$0xff] %v9240_v25  ;;  %945 = vmatmul.bf16.gmra.mxu0 %v6208_v23  ;;  %v6896_v25 = vor.u32 %v8286_v39, %v6895_v8  ;;  %v6215_v23 = vld [vmem:[%s8645_s10 + $0x190] sm:$0xf] }
 0x1ac   : > { %11089 = vst [vmem:[#allocation91_spill] sm:$0xff] %v9242_v53  ;;  %v8236_v53 = vld [vmem:[%s8645_s10 + $0x1b4] sm:$0xf0] }
 0x1ad   : > { %2084 = vmatmul.bf16.gmra.mxu2 %v6628_v48  ;;  %v6635_v48 = vld [vmem:[%s8645_s10 + $0x1b0] sm:$0xf] }
 0x1ae   : > { %v6636_v39 = vor.u32 %v8236_v53, %v6635_v48  ;;  %v8148_v48 = vld [vmem:[%s8645_s10 + $0x1a4] sm:$0xf0] }
 0x1b0   : > { %v9248_v38 = vpop.f32.mrf.mxu2  ;;  %v9252_v51 = vpop.f32.mrf.mxu0 }
 0x1b1   : > { %11090 = vst [vmem:[#allocation92_spill] sm:$0xff] %v9248_v38  ;;  %v9250_v27 = vpop.f32.mrf.mxu3 }
 0x1b2   : > { %11091 = vst [vmem:[#allocation93_spill] sm:$0xff] %v9250_v27  ;;  %v9254_v35 = vpop.f32.mrf.mxu1  ;;  %v6216_v27 = vor.u32 %v8146_v0, %v6215_v23 }
 0x1b3   : > { %11092 = vst [vmem:[#allocation94_spill] sm:$0xff] %v9252_v51  ;;  %v6905_v51 = vld [vmem:[%s8645_s10 + $0xa8] sm:$0xf0] }
 0x1b4   : > { %11093 = vst [vmem:[#allocation95_spill] sm:$0xff] %v9254_v35 }
 0x1b5   : > { %3128 = vmatmul.bf16.gmra.mxu1 %v6896_v25  ;;  %v6903_v25 = vld [vmem:[%s8645_s10 + $0xa0] sm:$0xf] }
 0x1b6   : > { %7218 = vmatmul.msk.bf16.gmra.mxu3 %vm696_vm0, %v6900_v34  ;;  %v8287_v34 = vld [vmem:[%s8645_s10 + $0xa4] sm:$0xf] }
 0x1b7   : > { %v6908_v53 = vor.u32 %v8287_v34, %v6905_v51  ;;  %v8290_v34 = vld [vmem:[%s8645_s10 + $0xb4] sm:$0xf0] }
 0x1b8   : > { %v9261_v38 = vpop.f32.mrf.mxu2  ;;  %v9265_v8 = vpop.f32.mrf.mxu0 }
 0x1b9   : > { %11094 = vst [vmem:[#allocation96_spill] sm:$0xff] %v9261_v38  ;;  %v9263_v18 = vpop.f32.mrf.mxu3 }
 0x1ba   : > { %11095 = vst [vmem:[#allocation97_spill] sm:$0xff] %v9263_v18  ;;  %v9267_v47 = vpop.f32.mrf.mxu1 }
 0x1bb   : > { %11096 = vst [vmem:[#allocation98_spill] sm:$0xff] %v9265_v8  ;;  %950 = vmatmul.bf16.gmra.mxu0 %v6216_v27  ;;  %v6904_v8 = vor.u32 %v8288_v10, %v6903_v25  ;;  %v6223_v27 = vld [vmem:[%s8645_s10 + $0x1a0] sm:$0xf] }
 0x1bc   : > { %11097 = vst [vmem:[#allocation99_spill] sm:$0xff] %v9267_v47  ;;  %v8238_v47 = vld [vmem:[%s8645_s10 + $0x1c4] sm:$0xf0] }
 0x1bd   : > { %2089 = vmatmul.bf16.gmra.mxu2 %v6636_v39  ;;  %v6643_v39 = vld [vmem:[%s8645_s10 + $0x1c0] sm:$0xf] }
 0x1be   : > { %v6644_v10 = vor.u32 %v8238_v47, %v6643_v39  ;;  %v8150_v39 = vld [vmem:[%s8645_s10 + $0x1b4] sm:$0xf0] }
 0x1c0   : > { %v9273_v35 = vpop.f32.mrf.mxu2  ;;  %v9277_v0 = vpop.f32.mrf.mxu0 }
 0x1c1   : > { %11098 = vst [vmem:[#allocation100_spill] sm:$0xff] %v9273_v35  ;;  %v9275_v23 = vpop.f32.mrf.mxu3 }
 0x1c2   : > { %11099 = vst [vmem:[#allocation101_spill] sm:$0xff] %v9275_v23  ;;  %v9279_v38 = vpop.f32.mrf.mxu1  ;;  %v6224_v23 = vor.u32 %v8148_v48, %v6223_v27 }
 0x1c3   : > { %11100 = vst [vmem:[#allocation102_spill] sm:$0xff] %v9277_v0  ;;  %v6913_v0 = vld [vmem:[%s8645_s10 + $0xb8] sm:$0xf0] }
 0x1c4   : > { %11101 = vst [vmem:[#allocation103_spill] sm:$0xff] %v9279_v38 }
 0x1c5   : > { %3133 = vmatmul.bf16.gmra.mxu1 %v6904_v8  ;;  %v6911_v8 = vld [vmem:[%s8645_s10 + $0xb0] sm:$0xf] }
 0x1c6   : > { %7219 = vmatmul.msk.bf16.gmra.mxu3 %vm696_vm0, %v6908_v53  ;;  %v8289_v53 = vld [vmem:[%s8645_s10 + $0xb4] sm:$0xf] }
 0x1c7   : > { %v6916_v47 = vor.u32 %v8289_v53, %v6913_v0  ;;  %v9320_v0 = vld [vmem:[%s10998_s2] ss:$0 sm:$0xff] }
 0x1c8   : > { %v9286_v35 = vpop.f32.mrf.mxu2  ;;  %v9290_v25 = vpop.f32.mrf.mxu0  ;;  %v6919_v53 = vld [vmem:[%s8645_s10 + $0xc0] sm:$0xf] }
 0x1c9   : > { %11102 = vst [vmem:[#allocation104_spill] sm:$0xff] %v9286_v35  ;;  %v9288_v18 = vpop.f32.mrf.mxu3 }
 0x1ca   : > { %11103 = vst [vmem:[#allocation105_spill] sm:$0xff] %v9288_v18  ;;  %v9292_v51 = vpop.f32.mrf.mxu1 }
 0x1cb   : > { %11104 = vst [vmem:[#allocation106_spill] sm:$0xff] %v9290_v25  ;;  %955 = vmatmul.bf16.gmra.mxu0 %v6224_v23  ;;  %v6912_v25 = vor.u32 %v8290_v34, %v6911_v8  ;;  %v6231_v23 = vld [vmem:[%s8645_s10 + $0x1b0] sm:$0xf] }
 0x1cc   : > { %11105 = vst [vmem:[#allocation107_spill] sm:$0xff] %v9292_v51  ;;  %v8240_v51 = vld [vmem:[%s8645_s10 + $0x1d4] sm:$0xf0] }
 0x1cd   : > { %2094 = vmatmul.bf16.gmra.mxu2 %v6644_v10  ;;  %v6651_v10 = vld [vmem:[%s8645_s10 + $0x1d0] sm:$0xf] }
 0x1ce   : > { %v6652_v34 = vor.u32 %v8240_v51, %v6651_v10 }
 0x1d0   : > { %v9298_v38 = vpop.f32.mrf.mxu2  ;;  %v9302_v48 = vpop.f32.mrf.mxu0 }
 0x1d1   : > { %11106 = vst [vmem:[#allocation108_spill] sm:$0xff] %v9298_v38  ;;  %v9300_v27 = vpop.f32.mrf.mxu3 }
 0x1d2   : > { %11107 = vst [vmem:[#allocation109_spill] sm:$0xff] %v9300_v27  ;;  %v9304_v35 = vpop.f32.mrf.mxu1  ;;  %v6232_v27 = vor.u32 %v8150_v39, %v6231_v23  ;;  %v8291_v23 = vld [vmem:[%s8645_s10 + $0xc4] sm:$0xf]  ;;  %v6921_v39 = vld [vmem:[%s8645_s10 + $0xc8] sm:$0xf0] }
 0x1d3   : > { %11108 = vst [vmem:[#allocation110_spill] sm:$0xff] %v9302_v48 }
 0x1d4   : > { %11109 = vst [vmem:[#allocation111_spill] sm:$0xff] %v9304_v35 }
 0x1d5   : > { %3138 = vmatmul.bf16.gmra.mxu1 %v6912_v25 }
 0x1d6   : > { %7220 = vmatmul.msk.bf16.gmra.mxu3 %vm696_vm0, %v6916_v47  ;;  %v8292_v47 = vld [vmem:[%s8645_s10 + $0xc4] sm:$0xf0] }
 0x1d8   : > { %v9311_v38 = vpop.f32.mrf.mxu2  ;;  %v921_v8 = vpop.f32.mrf.mxu0 }
 0x1d9   : > { %11110 = vst [vmem:[#allocation112_spill] sm:$0xff] %v9311_v38  ;;  %v9313_v18 = vpop.f32.mrf.mxu3  ;;  %v1131_v25 = vadd.f32 %v8777_v56, %v921_v8  ;;  %v6924_v56 = vor.u32 %v8291_v23, %v6921_v39 }
 0x1da   : > { %11111 = vst [vmem:[#allocation113_spill] sm:$0xff] %v9313_v18  ;;  %v9315_v48 = vpop.f32.mrf.mxu1  ;;  %v6920_v18 = vor.u32 %v8292_v47, %v6919_v53 }
 0x1db   : > { %11112 = vst [vmem:[#allocation114_spill] sm:$0xff] %v9315_v48  ;;  %960 = vmatmul.bf16.gmra.mxu0 %v6232_v27  ;;  %v1273_v10 = vadd.f32 %v9320_v0, %v1131_v25  ;;  %v8242_v25 = vld [vmem:[%s8645_s10 + $0x1e4] sm:$0xf0] }
 0x1dd   : > { %2099 = vmatmul.bf16.gmra.mxu2 %v6652_v34 }
 0x1e0   : > { %v2060_v51 = vpop.f32.mrf.mxu2  ;;  %v923_v48 = vpop.f32.mrf.mxu0 }
 0x1e1   : > { %v2270_v27 = vadd.f32 %v8785_v63, %v2060_v51  ;;  %v9329_v38 = vpop.f32.mrf.mxu3  ;;  %v1133_v34 = vadd.f32 %v8787_v1, %v923_v48  ;;  %v6240_v51 = vor.u32 %v8152_v55, %v6239_v45  ;;  %v6660_v1 = vor.u32 %v8242_v25, %v6659_v59  ;;  %v6927_v55 = vld [vmem:[%s8645_s10 + $0xd0] sm:$0xf]  ;;  %v6929_v59 = vld [vmem:[%s8645_s10 + $0xd8] sm:$0xf0] }
 0x1e2   : > { %v3104_v35 = vpop.f32.mrf.mxu1 }
 0x1e3   : > { %v9331_v8 = vadd.f32 %v2270_v27, %v1273_v10  ;;  %v1274_v53 = vadd.f32 %v9320_v0, %v1133_v34  ;;  %v8540_v27 = vld [vmem:[%s10997_s1 + $0x168] sm:$0xff] }
 0x1e4   : > { %5375 = vmatpush.bf16.msra.mxu1 %v8540_v27  ;;  %v6247_v27 = vld [vmem:[%s8645_s10 + $0x1d0] sm:$0xf] }
 0x1e5   : > { %3143 = vmatmul.bf16.gmra.mxu1 %v6920_v18 }
 0x1e6   : > { %7221 = vmatmul.msk.bf16.gmra.mxu3 %vm696_vm0, %v6924_v56  ;;  %v8294_v56 = vld [vmem:[%s8645_s10 + $0xd4] sm:$0xf0] }
 0x1e8   : > { %v2062_v63 = vpop.f32.mrf.mxu2  ;;  %v926_v39 = vpop.f32.mrf.mxu0 }
 0x1e9   : > { %v2272_v47 = vadd.f32 %v8796_v7, %v2062_v63  ;;  %v3313_v23 = vpop.f32.mrf.mxu3  ;;  %v1136_v45 = vadd.f32 %v8798_v9, %v926_v39  ;;  %v8293_v7 = vld [vmem:[%s8645_s10 + $0xd4] sm:$0xf] }
 0x1ea   : > { %v9341_v18 = vadd.f32 %v3313_v23, %v3104_v35  ;;  %v3106_v48 = vpop.f32.mrf.mxu1  ;;  %v6932_v23 = vor.u32 %v8293_v7, %v6929_v59 }
 0x1eb   : > { %v9343_v10 = vadd.f32 %v2272_v47, %v1274_v53  ;;  %965 = vmatmul.bf16.gmra.mxu0 %v6240_v51  ;;  %v1275_v34 = vadd.f32 %v9320_v0, %v1136_v45  ;;  %v6928_v53 = vor.u32 %v8294_v56, %v6927_v55  ;;  %v6667_v45 = vld [vmem:[%s8645_s10 + $0x1f0] sm:$0xf] }
 0x1ec   : > { %11113 = vst [vmem:[#allocation115_spill] sm:$0xff] %v9341_v18  ;;  %v8154_v18 = vld [vmem:[%s8645_s10 + $0x1d4] sm:$0xf0] }
 0x1ed   : > { %2104 = vmatmul.bf16.gmra.mxu2 %v6660_v1 }
 0x1f0   : > { %v2065_v35 = vpop.f32.mrf.mxu2  ;;  %v928_v51 = vpop.f32.mrf.mxu0 }
 0x1f1   : > { %v2275_v25 = vadd.f32 %v8809_v17, %v2065_v35  ;;  %v3315_v63 = vpop.f32.mrf.mxu3  ;;  %v1138_v1 = vadd.f32 %v8813_v20, %v928_v51  ;;  %v8244_v17 = vld [vmem:[%s8645_s10 + $0x1f4] sm:$0xf0] }
 0x1f2   : > { %v9355_v47 = vadd.f32 %v3315_v63, %v3106_v48  ;;  %v3109_v9 = vpop.f32.mrf.mxu1  ;;  %v6248_v48 = vor.u32 %v8154_v18, %v6247_v27  ;;  %v6668_v20 = vor.u32 %v8244_v17, %v6667_v45  ;;  %v8295_v18 = vld [vmem:[%s8645_s10 + $0xe4] sm:$0xf] }
 0x1f3   : > { %v9357_v39 = vadd.f32 %v2275_v25, %v1275_v34  ;;  %v1276_v55 = vadd.f32 %v9320_v0, %v1138_v1  ;;  %v6937_v1 = vld [vmem:[%s8645_s10 + $0xe8] sm:$0xf0] }
 0x1f5   : > { %3148 = vmatmul.bf16.gmra.mxu1 %v6928_v53  ;;  %v6935_v53 = vld [vmem:[%s8645_s10 + $0xe0] sm:$0xf] }
 0x1f6   : > { %7222 = vmatmul.msk.bf16.gmra.mxu3 %vm696_vm0, %v6932_v23  ;;  %v8296_v23 = vld [vmem:[%s8645_s10 + $0xe4] sm:$0xf0] }
 0x1f8   : > { %v2067_v35 = vpop.f32.mrf.mxu2  ;;  %v931_v59 = vpop.f32.mrf.mxu0 }
 0x1f9   : > { %v2277_v56 = vadd.f32 %v8821_v26, %v2067_v35  ;;  %v3318_v7 = vpop.f32.mrf.mxu3  ;;  %v1141_v51 = vadd.f32 %v8825_v29, %v931_v59  ;;  %v6936_v35 = vor.u32 %v8296_v23, %v6935_v53  ;;  %v6255_v59 = vld [vmem:[%s8645_s10 + $0x1e0] sm:$0xf] }
 0x1fa   : > { %v9367_v34 = vadd.f32 %v3318_v7, %v3109_v9  ;;  %v3111_v25 = vpop.f32.mrf.mxu1 }
 0x1fb   : > { %v9369_v63 = vadd.f32 %v2277_v56, %v1276_v55  ;;  %970 = vmatmul.bf16.gmra.mxu0 %v6248_v48  ;;  %v1277_v27 = vadd.f32 %v9320_v0, %v1141_v51  ;;  %v6940_v55 = vor.u32 %v8295_v18, %v6937_v1  ;;  %v6675_v51 = vld [vmem:[%s8645_s10 + $0x200] sm:$0xf] }
 0x1fd   : > { %2109 = vmatmul.bf16.gmra.mxu2 %v6668_v20  ;;  %v8156_v20 = vld [vmem:[%s8645_s10 + $0x1e4] sm:$0xf0] }
 0x200   : > { %v2070_v26 = vpop.f32.mrf.mxu2  ;;  %v933_v17 = vpop.f32.mrf.mxu0 }
 0x201   : > { %v2280_v9 = vadd.f32 %v8835_v37, %v2070_v26  ;;  %v3320_v45 = vpop.f32.mrf.mxu3  ;;  %v1143_v7 = vadd.f32 %v8839_v40, %v933_v17  ;;  %v8246_v37 = vld [vmem:[%s8645_s10 + $0x204] sm:$0xf0] }
 0x202   : > { %v9378_v48 = vadd.f32 %v3320_v45, %v3111_v25  ;;  %v3114_v29 = vpop.f32.mrf.mxu1  ;;  %v6256_v25 = vor.u32 %v8156_v20, %v6255_v59  ;;  %v6676_v40 = vor.u32 %v8246_v37, %v6675_v51  ;;  %v8297_v59 = vld [vmem:[%s8645_s10 + $0xf4] sm:$0xf] }
 0x203   : > { %v9380_v56 = vadd.f32 %v2280_v9, %v1277_v27  ;;  %v1278_v53 = vadd.f32 %v9320_v0, %v1143_v7  ;;  %v6945_v7 = vld [vmem:[%s8645_s10 + $0xf8] sm:$0xf0] }
 0x205   : > { %3153 = vmatmul.bf16.gmra.mxu1 %v6936_v35  ;;  %v6943_v35 = vld [vmem:[%s8645_s10 + $0xf0] sm:$0xf] }
 0x206   : > { %7223 = vmatmul.msk.bf16.gmra.mxu3 %vm696_vm0, %v6940_v55  ;;  %v8298_v55 = vld [vmem:[%s8645_s10 + $0xf4] sm:$0xf0] }
 0x208   : > { %v2072_v26 = vpop.f32.mrf.mxu2  ;;  %v936_v1 = vpop.f32.mrf.mxu0 }
 0x209   : > { %v2282_v23 = vadd.f32 %v8847_v46, %v2072_v26  ;;  %v3323_v18 = vpop.f32.mrf.mxu3  ;;  %v1146_v17 = vadd.f32 %v8851_v49, %v936_v1  ;;  %v6944_v26 = vor.u32 %v8298_v55, %v6943_v35  ;;  %v6263_v1 = vld [vmem:[%s8645_s10 + $0x1f0] sm:$0xf] }
 0x20a   : > { %v9390_v27 = vadd.f32 %v3323_v18, %v3114_v29  ;;  %v3116_v9 = vpop.f32.mrf.mxu1 }
 0x20b   : > { %v9392_v45 = vadd.f32 %v2282_v23, %v1278_v53  ;;  %975 = vmatmul.bf16.gmra.mxu0 %v6256_v25  ;;  %v1279_v20 = vadd.f32 %v9320_v0, %v1146_v17  ;;  %v6948_v53 = vor.u32 %v8297_v59, %v6945_v7  ;;  %v6683_v17 = vld [vmem:[%s8645_s10 + $0x210] sm:$0xf] }
 0x20d   : > { %2114 = vmatmul.bf16.gmra.mxu2 %v6676_v40  ;;  %v8158_v40 = vld [vmem:[%s8645_s10 + $0x1f4] sm:$0xf0] }
 0x210   : > { %v2075_v46 = vpop.f32.mrf.mxu2  ;;  %v938_v37 = vpop.f32.mrf.mxu0 }
 0x211   : > { %v2285_v29 = vadd.f32 %v8861_v58, %v2075_v46  ;;  %v3325_v51 = vpop.f32.mrf.mxu3  ;;  %v1148_v18 = vadd.f32 %v8865_v61, %v938_v37  ;;  %v8248_v58 = vld [vmem:[%s8645_s10 + $0x214] sm:$0xf0] }
 0x212   : > { %v9401_v25 = vadd.f32 %v3325_v51, %v3116_v9  ;;  %v3119_v49 = vpop.f32.mrf.mxu1  ;;  %v6264_v9 = vor.u32 %v8158_v40, %v6263_v1  ;;  %v6684_v61 = vor.u32 %v8248_v58, %v6683_v17  ;;  %v8299_v1 = vld [vmem:[%s8645_s10 + $0x104] sm:$0xf] }
 0x213   : > { %v9403_v23 = vadd.f32 %v2285_v29, %v1279_v20  ;;  %v1280_v35 = vadd.f32 %v9320_v0, %v1148_v18  ;;  %v6953_v18 = vld [vmem:[%s8645_s10 + $0x108] sm:$0xf0] }
 0x215   : > { %3158 = vmatmul.bf16.gmra.mxu1 %v6944_v26  ;;  %v6951_v26 = vld [vmem:[%s8645_s10 + $0x100] sm:$0xf] }
 0x216   : > { %7224 = vmatmul.msk.bf16.gmra.mxu3 %vm696_vm0, %v6948_v53  ;;  %v8300_v53 = vld [vmem:[%s8645_s10 + $0x104] sm:$0xf0] }
 0x218   : > { %v2077_v46 = vpop.f32.mrf.mxu2  ;;  %v941_v7 = vpop.f32.mrf.mxu0 }
 0x219   : > { %v2287_v55 = vadd.f32 %v8876_v6, %v2077_v46  ;;  %v3328_v59 = vpop.f32.mrf.mxu3  ;;  %v1151_v37 = vadd.f32 %v8880_v11, %v941_v7  ;;  %v6952_v46 = vor.u32 %v8300_v53, %v6951_v26  ;;  %v6271_v7 = vld [vmem:[%s8645_s10 + $0x200] sm:$0xf] }
 0x21a   : > { %v9413_v20 = vadd.f32 %v3328_v59, %v3119_v49  ;;  %v3121_v29 = vpop.f32.mrf.mxu1 }
 0x21b   : > { %v9415_v51 = vadd.f32 %v2287_v55, %v1280_v35  ;;  %980 = vmatmul.bf16.gmra.mxu0 %v6264_v9  ;;  %v1281_v40 = vadd.f32 %v9320_v0, %v1151_v37  ;;  %v6956_v35 = vor.u32 %v8299_v1, %v6953_v18  ;;  %v6691_v37 = vld [vmem:[%s8645_s10 + $0x220] sm:$0xf] }
 0x21d   : > { %2119 = vmatmul.bf16.gmra.mxu2 %v6684_v61  ;;  %v8160_v61 = vld [vmem:[%s8645_s10 + $0x204] sm:$0xf0] }
 0x220   : > { %v2080_v6 = vpop.f32.mrf.mxu2  ;;  %v943_v58 = vpop.f32.mrf.mxu0 }
 0x221   : > { %v2290_v49 = vadd.f32 %v8890_v22, %v2080_v6  ;;  %v3330_v17 = vpop.f32.mrf.mxu3  ;;  %v1153_v59 = vadd.f32 %v8894_v28, %v943_v58  ;;  %v8250_v22 = vld [vmem:[%s8645_s10 + $0x224] sm:$0xf0] }
 0x222   : > { %v9424_v9 = vadd.f32 %v3330_v17, %v3121_v29  ;;  %v3124_v11 = vpop.f32.mrf.mxu1  ;;  %v6272_v29 = vor.u32 %v8160_v61, %v6271_v7  ;;  %v6692_v28 = vor.u32 %v8250_v22, %v6691_v37  ;;  %v8301_v7 = vld [vmem:[%s8645_s10 + $0x114] sm:$0xf] }
 0x223   : > { %v9426_v55 = vadd.f32 %v2290_v49, %v1281_v40  ;;  %v1282_v26 = vadd.f32 %v9320_v0, %v1153_v59  ;;  %v6961_v59 = vld [vmem:[%s8645_s10 + $0x118] sm:$0xf0] }
 0x225   : > { %3163 = vmatmul.bf16.gmra.mxu1 %v6952_v46  ;;  %v6959_v46 = vld [vmem:[%s8645_s10 + $0x110] sm:$0xf] }
 0x226   : > { %7225 = vmatmul.msk.bf16.gmra.mxu3 %vm696_vm0, %v6956_v35  ;;  %v8302_v35 = vld [vmem:[%s8645_s10 + $0x114] sm:$0xf0] }
 0x228   : > { %v2082_v6 = vpop.f32.mrf.mxu2  ;;  %v946_v18 = vpop.f32.mrf.mxu0 }
 0x229   : > { %v2292_v53 = vadd.f32 %v8902_v36, %v2082_v6  ;;  %v3333_v1 = vpop.f32.mrf.mxu3  ;;  %v1156_v58 = vadd.f32 %v8906_v42, %v946_v18  ;;  %v6960_v6 = vor.u32 %v8302_v35, %v6959_v46  ;;  %v6279_v18 = vld [vmem:[%s8645_s10 + $0x210] sm:$0xf] }
 0x22a   : > { %v9436_v40 = vadd.f32 %v3333_v1, %v3124_v11  ;;  %v3126_v49 = vpop.f32.mrf.mxu1 }
 0x22b   : > { %v9438_v17 = vadd.f32 %v2292_v53, %v1282_v26  ;;  %985 = vmatmul.bf16.gmra.mxu0 %v6272_v29  ;;  %v1283_v61 = vadd.f32 %v9320_v0, %v1156_v58  ;;  %v6964_v26 = vor.u32 %v8301_v7, %v6961_v59  ;;  %v8252_v58 = vld [vmem:[%s8645_s10 + $0x234] sm:$0xf0] }
 0x22c   : > { %11114 = vst [vmem:[#allocation116_spill] sm:$0xff] %v9436_v40  ;;  %v6699_v40 = vld [vmem:[%s8645_s10 + $0x230] sm:$0xf] }
 0x22d   : > { %2124 = vmatmul.bf16.gmra.mxu2 %v6692_v28  ;;  %v8162_v28 = vld [vmem:[%s8645_s10 + $0x214] sm:$0xf0] }
 0x230   : > { %v2085_v36 = vpop.f32.mrf.mxu2  ;;  %v948_v22 = vpop.f32.mrf.mxu0 }
 0x231   : > { %v2295_v11 = vadd.f32 %v8916_v54, %v2085_v36  ;;  %v3335_v37 = vpop.f32.mrf.mxu3  ;;  %v1158_v1 = vadd.f32 %v8920_v62, %v948_v22  ;;  %v6280_v36 = vor.u32 %v8162_v28, %v6279_v18  ;;  %v6700_v62 = vor.u32 %v8252_v58, %v6699_v40  ;;  %v6969_v40 = vld [vmem:[%s8645_s10 + $0x128] sm:$0xf0] }
 0x232   : > { %v9447_v29 = vadd.f32 %v3335_v37, %v3126_v49  ;;  %v3129_v42 = vpop.f32.mrf.mxu1  ;;  %v8539_v37 = vld [vmem:[%s10997_s1 + $0x160] sm:$0xff] }
 0x233   : > { %v9449_v53 = vadd.f32 %v2295_v11, %v1283_v61  ;;  %v1284_v49 = vadd.f32 %v9320_v0, %v1158_v1  ;;  %5376 = vmatpush.bf16.msra.mxu1 %v8539_v37  ;;  %v6707_v37 = vld [vmem:[%s8645_s10 + $0x240] sm:$0xf] }
 0x235   : > { %3168 = vmatmul.bf16.gmra.mxu1 %v6960_v6  ;;  %v6967_v6 = vld [vmem:[%s8645_s10 + $0x120] sm:$0xf] }
 0x236   : > { %7226 = vmatmul.msk.bf16.gmra.mxu3 %vm696_vm0, %v6964_v26  ;;  %v8304_v26 = vld [vmem:[%s8645_s10 + $0x124] sm:$0xf0] }
 0x238   : > { %v2087_v54 = vpop.f32.mrf.mxu2  ;;  %v951_v7 = vpop.f32.mrf.mxu0 }
 0x239   : > { %v2297_v46 = vadd.f32 %v8928_v12, %v2087_v54  ;;  %v3338_v35 = vpop.f32.mrf.mxu3  ;;  %v1161_v22 = vadd.f32 %v8932_v15, %v951_v7  ;;  %v8303_v12 = vld [vmem:[%s8645_s10 + $0x124] sm:$0xf]  ;;  %v6968_v54 = vor.u32 %v8304_v26, %v6967_v6  ;;  %v6287_v7 = vld [vmem:[%s8645_s10 + $0x220] sm:$0xf] }
 0x23a   : > { %v9459_v59 = vadd.f32 %v3338_v35, %v3129_v42  ;;  %v3131_v61 = vpop.f32.mrf.mxu1 }
 0x23b   : > { %v9461_v11 = vadd.f32 %v2297_v46, %v1284_v49  ;;  %990 = vmatmul.bf16.gmra.mxu0 %v6280_v36  ;;  %v1285_v1 = vadd.f32 %v9320_v0, %v1161_v22  ;;  %v6972_v49 = vor.u32 %v8303_v12, %v6969_v40 }
 0x23d   : > { %2129 = vmatmul.bf16.gmra.mxu2 %v6700_v62  ;;  %v8164_v62 = vld [vmem:[%s8645_s10 + $0x224] sm:$0xf0] }
 0x240   : > { %v2090_v42 = vpop.f32.mrf.mxu2  ;;  %v953_v58 = vpop.f32.mrf.mxu0 }
 0x241   : > { %v2300_v18 = vadd.f32 %v8945_v43, %v2090_v42  ;;  %v3340_v28 = vpop.f32.mrf.mxu3  ;;  %v1163_v35 = vadd.f32 %v8949_v50, %v953_v58  ;;  %v8254_v43 = vld [vmem:[%s8645_s10 + $0x244] sm:$0xf0]  ;;  %v6975_v58 = vld [vmem:[%s8645_s10 + $0x130] sm:$0xf] }
 0x242   : > { %v9473_v36 = vadd.f32 %v3340_v28, %v3131_v61  ;;  %v3134_v15 = vpop.f32.mrf.mxu1  ;;  %v6288_v61 = vor.u32 %v8164_v62, %v6287_v7  ;;  %v6708_v50 = vor.u32 %v8254_v43, %v6707_v37 }
 0x243   : > { %v9475_v46 = vadd.f32 %v2300_v18, %v1285_v1  ;;  %v1286_v6 = vadd.f32 %v9320_v0, %v1163_v35  ;;  %v6977_v35 = vld [vmem:[%s8645_s10 + $0x138] sm:$0xf0] }
 0x245   : > { %3173 = vmatmul.bf16.gmra.mxu1 %v6968_v54  ;;  %v8306_v54 = vld [vmem:[%s8645_s10 + $0x134] sm:$0xf0] }
 0x246   : > { %7227 = vmatmul.msk.bf16.gmra.mxu3 %vm696_vm0, %v6972_v49  ;;  %v8305_v49 = vld [vmem:[%s8645_s10 + $0x134] sm:$0xf]  ;;  %v6976_v43 = vor.u32 %v8306_v54, %v6975_v58 }
 0x248   : > { %v2092_v22 = vpop.f32.mrf.mxu2  ;;  %v956_v40 = vpop.f32.mrf.mxu0 }
 0x249   : > { %v2302_v26 = vadd.f32 %v8957_v3, %v2092_v22  ;;  %v3343_v12 = vpop.f32.mrf.mxu3  ;;  %v1166_v28 = vadd.f32 %v8961_v16, %v956_v40  ;;  %v8166_v40 = vld [vmem:[%s8645_s10 + $0x234] sm:$0xf0] }
 0x24a   : > { %v9485_v42 = vadd.f32 %v3343_v12, %v3134_v15  ;;  %v3136_v1 = vpop.f32.mrf.mxu1  ;;  %v6295_v12 = vld [vmem:[%s8645_s10 + $0x230] sm:$0xf] }
 0x24b   : > { %v9487_v18 = vadd.f32 %v2302_v26, %v1286_v6  ;;  %995 = vmatmul.bf16.gmra.mxu0 %v6288_v61  ;;  %v1287_v7 = vadd.f32 %v9320_v0, %v1166_v28  ;;  %v6980_v61 = vor.u32 %v8305_v49, %v6977_v35 }
 0x24d   : > { %2134 = vmatmul.bf16.gmra.mxu2 %v6708_v50  ;;  %v6715_v50 = vld [vmem:[%s8645_s10 + $0x250] sm:$0xf] }
 0x250   : > { %v2095_v3 = vpop.f32.mrf.mxu2  ;;  %v958_v37 = vpop.f32.mrf.mxu0 }
 0x251   : > { %v2305_v15 = vadd.f32 %v8971_v4, %v2095_v3  ;;  %v3345_v62 = vpop.f32.mrf.mxu3  ;;  %v1168_v26 = vadd.f32 %v8975_v60, %v958_v37  ;;  %v8256_v4 = vld [vmem:[%s8645_s10 + $0x254] sm:$0xf0]  ;;  %v6983_v37 = vld [vmem:[%s8645_s10 + $0x140] sm:$0xf] }
 0x252   : > { %v9496_v22 = vadd.f32 %v3345_v62, %v3136_v1  ;;  %v3139_v16 = vpop.f32.mrf.mxu1  ;;  %v6296_v1 = vor.u32 %v8166_v40, %v6295_v12  ;;  %v6716_v60 = vor.u32 %v8256_v4, %v6715_v50 }
 0x253   : > { %v9498_v6 = vadd.f32 %v2305_v15, %v1287_v7  ;;  %v1288_v58 = vadd.f32 %v9320_v0, %v1168_v26  ;;  %v6985_v26 = vld [vmem:[%s8645_s10 + $0x148] sm:$0xf0] }
 0x255   : > { %3178 = vmatmul.bf16.gmra.mxu1 %v6976_v43  ;;  %v8308_v43 = vld [vmem:[%s8645_s10 + $0x144] sm:$0xf0] }
 0x256   : > { %7228 = vmatmul.msk.bf16.gmra.mxu3 %vm696_vm0, %v6980_v61  ;;  %v8307_v61 = vld [vmem:[%s8645_s10 + $0x144] sm:$0xf]  ;;  %v6984_v4 = vor.u32 %v8308_v43, %v6983_v37 }
 0x258   : > { %v2097_v28 = vpop.f32.mrf.mxu2  ;;  %v961_v35 = vpop.f32.mrf.mxu0 }
 0x259   : > { %v2307_v54 = vadd.f32 %v8983_v24, %v2097_v28  ;;  %v3348_v49 = vpop.f32.mrf.mxu3  ;;  %v1171_v62 = vadd.f32 %v8987_v41, %v961_v35  ;;  %v8168_v35 = vld [vmem:[%s8645_s10 + $0x244] sm:$0xf0] }
 0x25a   : > { %v9508_v3 = vadd.f32 %v3348_v49, %v3139_v16  ;;  %v3141_v7 = vpop.f32.mrf.mxu1  ;;  %v6303_v49 = vld [vmem:[%s8645_s10 + $0x240] sm:$0xf] }
 0x25b   : > { %v9510_v15 = vadd.f32 %v2307_v54, %v1288_v58  ;;  %1000 = vmatmul.bf16.gmra.mxu0 %v6296_v1  ;;  %v1289_v12 = vadd.f32 %v9320_v0, %v1171_v62  ;;  %v6988_v1 = vor.u32 %v8307_v61, %v6985_v26 }
 0x25d   : > { %2139 = vmatmul.bf16.gmra.mxu2 %v6716_v60  ;;  %v6723_v60 = vld [vmem:[%s8645_s10 + $0x260] sm:$0xf] }
 0x260   : > { %v2100_v24 = vpop.f32.mrf.mxu2  ;;  %v963_v50 = vpop.f32.mrf.mxu0 }
 0x261   : > { %v2310_v16 = vadd.f32 %v8997_v30, %v2100_v24  ;;  %v3350_v40 = vpop.f32.mrf.mxu3  ;;  %v1173_v54 = vadd.f32 %v9001_v2, %v963_v50  ;;  %v8258_v30 = vld [vmem:[%s8645_s10 + $0x264] sm:$0xf0]  ;;  %v6991_v50 = vld [vmem:[%s8645_s10 + $0x150] sm:$0xf] }
 0x262   : > { %v9519_v28 = vadd.f32 %v3350_v40, %v3141_v7  ;;  %v3144_v41 = vpop.f32.mrf.mxu1  ;;  %v6304_v7 = vor.u32 %v8168_v35, %v6303_v49  ;;  %v6724_v2 = vor.u32 %v8258_v30, %v6723_v60 }
 0x263   : > { %v9521_v58 = vadd.f32 %v2310_v16, %v1289_v12  ;;  %v1290_v37 = vadd.f32 %v9320_v0, %v1173_v54  ;;  %v6993_v54 = vld [vmem:[%s8645_s10 + $0x158] sm:$0xf0] }
 0x265   : > { %3183 = vmatmul.bf16.gmra.mxu1 %v6984_v4  ;;  %v8310_v4 = vld [vmem:[%s8645_s10 + $0x154] sm:$0xf0] }
 0x266   : > { %7229 = vmatmul.msk.bf16.gmra.mxu3 %vm696_vm0, %v6988_v1  ;;  %v8309_v1 = vld [vmem:[%s8645_s10 + $0x154] sm:$0xf]  ;;  %v6992_v30 = vor.u32 %v8310_v4, %v6991_v50 }
 0x268   : > { %v2102_v62 = vpop.f32.mrf.mxu2  ;;  %v966_v26 = vpop.f32.mrf.mxu0 }
 0x269   : > { %v2312_v43 = vadd.f32 %v9009_v32, %v2102_v62  ;;  %v3353_v61 = vpop.f32.mrf.mxu3  ;;  %v1176_v40 = vadd.f32 %v9016_v13, %v966_v26  ;;  %v8170_v26 = vld [vmem:[%s8645_s10 + $0x254] sm:$0xf0] }
 0x26a   : > { %v9531_v24 = vadd.f32 %v3353_v61, %v3144_v41  ;;  %v3146_v12 = vpop.f32.mrf.mxu1  ;;  %v6311_v61 = vld [vmem:[%s8645_s10 + $0x250] sm:$0xf] }
 0x26b   : > { %v9533_v16 = vadd.f32 %v2312_v43, %v1290_v37  ;;  %1005 = vmatmul.bf16.gmra.mxu0 %v6304_v7  ;;  %v1291_v49 = vadd.f32 %v9320_v0, %v1176_v40  ;;  %v6996_v7 = vor.u32 %v8309_v1, %v6993_v54 }
 0x26d   : > { %2144 = vmatmul.bf16.gmra.mxu2 %v6724_v2  ;;  %v6731_v2 = vld [vmem:[%s8645_s10 + $0x270] sm:$0xf] }
 0x270   : > { %v2105_v32 = vpop.f32.mrf.mxu2  ;;  %v968_v60 = vpop.f32.mrf.mxu0 }
 0x271   : > { %v2315_v41 = vadd.f32 %v9026_v52, %v2105_v32  ;;  %v3355_v35 = vpop.f32.mrf.mxu3  ;;  %v1178_v43 = vadd.f32 %v9030_v31, %v968_v60  ;;  %v8260_v52 = vld [vmem:[%s8645_s10 + $0x274] sm:$0xf0]  ;;  %v6999_v60 = vld [vmem:[%s8645_s10 + $0x160] sm:$0xf] }
 0x272   : > { %v9542_v62 = vadd.f32 %v3355_v35, %v3146_v12  ;;  %v3149_v13 = vpop.f32.mrf.mxu1  ;;  %v6312_v12 = vor.u32 %v8170_v26, %v6311_v61  ;;  %v6732_v31 = vor.u32 %v8260_v52, %v6731_v2 }
 0x273   : > { %v9544_v37 = vadd.f32 %v2315_v41, %v1291_v49  ;;  %v1292_v50 = vadd.f32 %v9320_v0, %v1178_v43  ;;  %v7001_v43 = vld [vmem:[%s8645_s10 + $0x168] sm:$0xf0] }
 0x275   : > { %3188 = vmatmul.bf16.gmra.mxu1 %v6992_v30  ;;  %v8312_v30 = vld [vmem:[%s8645_s10 + $0x164] sm:$0xf0] }
 0x276   : > { %7230 = vmatmul.msk.bf16.gmra.mxu3 %vm696_vm0, %v6996_v7  ;;  %v8311_v7 = vld [vmem:[%s8645_s10 + $0x164] sm:$0xf]  ;;  %v7000_v52 = vor.u32 %v8312_v30, %v6999_v60 }
 0x278   : > { %v2107_v40 = vpop.f32.mrf.mxu2  ;;  %v971_v54 = vpop.f32.mrf.mxu0 }
 0x279   : > { %v2317_v4 = vadd.f32 %v9038_v57, %v2107_v40  ;;  %v3358_v1 = vpop.f32.mrf.mxu3  ;;  %v1181_v35 = vadd.f32 %v9042_v21, %v971_v54  ;;  %v8172_v54 = vld [vmem:[%s8645_s10 + $0x264] sm:$0xf0] }
 0x27a   : > { %v9554_v32 = vadd.f32 %v3358_v1, %v3149_v13  ;;  %v3151_v49 = vpop.f32.mrf.mxu1  ;;  %v6319_v1 = vld [vmem:[%s8645_s10 + $0x260] sm:$0xf] }
 0x27b   : > { %v9556_v41 = vadd.f32 %v2317_v4, %v1292_v50  ;;  %1010 = vmatmul.bf16.gmra.mxu0 %v6312_v12  ;;  %v1293_v61 = vadd.f32 %v9320_v0, %v1181_v35  ;;  %v7004_v12 = vor.u32 %v8311_v7, %v7001_v43  ;;  %v8262_v35 = vld [vmem:[%s8645_s10 + $0x284] sm:$0xf0]  ;;  %v6320_v60 = vor.u32 %v8172_v54, %v6319_v1  ;;  %v7009_v1 = vld [vmem:[%s8645_s10 + $0x178] sm:$0xf0] }
 0x27d   : > { %2149 = vmatmul.bf16.gmra.mxu2 %v6732_v31  ;;  %v6739_v31 = vld [vmem:[%s8645_s10 + $0x280] sm:$0xf] }
 0x280   : > { %v2110_v57 = vpop.f32.mrf.mxu2  ;;  %v973_v2 = vpop.f32.mrf.mxu0 }
 0x281   : > { %v2320_v13 = vadd.f32 %v9052_v14, %v2110_v57  ;;  %v3360_v26 = vpop.f32.mrf.mxu3  ;;  %v1183_v4 = vadd.f32 %v9056_v44, %v973_v2  ;;  %v8543_v14 = vld [vmem:[%s10997_s1 + $0x180] sm:$0xff]  ;;  %v6740_v57 = vor.u32 %v8262_v35, %v6739_v31  ;;  %v8538_v2 = vld [vmem:[%s10997_s1 + $0x158] sm:$0xff] }
 0x282   : > { %v9565_v40 = vadd.f32 %v3360_v26, %v3151_v49  ;;  %v3154_v21 = vpop.f32.mrf.mxu1  ;;  %5589 = vmatpush.bf16.msra.mxu3 %v8543_v14  ;;  %5377 = vmatpush.bf16.msra.mxu1 %v8538_v2  ;;  %v6327_v2 = vld [vmem:[%s8645_s10 + $0x270] sm:$0xf] }
 0x283   : > { %v9567_v50 = vadd.f32 %v2320_v13, %v1293_v61  ;;  %v1294_v30 = vadd.f32 %v9320_v0, %v1183_v4  ;;  %v8314_v4 = vld [vmem:[%s8645_s10 + $0x174] sm:$0xf0] }
 0x284   : > { %11115 = vst [vmem:[#allocation117_spill] sm:$0xff] %v9565_v40  ;;  %v8187_v40 = vld [vmem:[%s8645_s10 + $0x34] sm:$0xf] }
 0x285   : > { %3193 = vmatmul.bf16.gmra.mxu1 %v7000_v52 }
 0x286   : > { %7231 = vmatmul.msk.bf16.gmra.mxu3 %vm696_vm0, %v7004_v12  ;;  %v7007_v12 = vld [vmem:[%s8645_s10 + $0x170] sm:$0xf] }
 0x288   : > { %v2112_v49 = vpop.f32.mrf.mxu2  ;;  %v976_v43 = vpop.f32.mrf.mxu0 }
 0x289   : > { %v2322_v44 = vadd.f32 %v9064_v33, %v2112_v49  ;;  %v3363_v7 = vpop.f32.mrf.mxu3  ;;  %v1186_v52 = vadd.f32 %v9068_v19, %v976_v43  ;;  %v8313_v33 = vld [vmem:[%s8645_s10 + $0x174] sm:$0xf]  ;;  %v7008_v49 = vor.u32 %v8314_v4, %v7007_v12  ;;  %v11118_v43 = vld [vmem:[#allocation43_spill] sm:$0xff] }
 0x28a   : > { %v9580_v61 = vadd.f32 %v3363_v7, %v3154_v21  ;;  %v3156_v13 = vpop.f32.mrf.mxu1  ;;  %v8454_v7 = vld [vmem:[%s10997_s1 + $0x138] sm:$0xff] }
 0x28b   : > { %v9582_v26 = vadd.f32 %v2322_v44, %v1294_v30  ;;  %1015 = vmatmul.bf16.gmra.mxu0 %v6320_v60  ;;  %v1295_v54 = vadd.f32 %v9320_v0, %v1186_v52  ;;  %v7012_v30 = vor.u32 %v8313_v33, %v7009_v1  ;;  %v8174_v52 = vld [vmem:[%s8645_s10 + $0x274] sm:$0xf0]  ;;  %4449 = vmatpush.bf16.msra.mxu2 %v8454_v7  ;;  %v8452_v7 = vld [vmem:[%s10997_s1 + $0x128] sm:$0xff] }
 0x28c   : > { %11116 = vst [vmem:[#allocation118_spill] sm:$0xff] %v9580_v61  ;;  %v6328_v12 = vor.u32 %v8174_v52, %v6327_v2  ;;  %v11119_v33 = vld [vmem:[#allocation45_spill] sm:$0xff]  ;;  %4234 = vmatpush.bf16.msra.mxu0 %v8452_v7  ;;  %v8316_v52 = vld [vmem:[%s8645_s10 + $0x184] sm:$0xf0]  ;;  %v8095_v61 = vld [vmem:[%s8645_s10 + $0x4] sm:$0xf] }
 0x28d   : > { %2154 = vmatmul.bf16.gmra.mxu2 %v6740_v57 }
 0x290   : > { %v2115_v21 = vpop.f32.mrf.mxu2  ;;  %v978_v14 = vpop.f32.mrf.mxu0 }
 0x291   : > { %v2325_v31 = vadd.f32 %v9081_v5, %v2115_v21  ;;  %v3365_v35 = vpop.f32.mrf.mxu3  ;;  %v1188_v57 = vadd.f32 %v11118_v43, %v978_v14  ;;  %v6747_v5 = vld [vmem:[%s8645_s10 + $0x290] sm:$0xf]  ;;  %v8264_v21 = vld [vmem:[%s8645_s10 + $0x294] sm:$0xf0]  ;;  %v11122_v43 = vld [vmem:[#allocation47_spill] sm:$0xff] }
 0x292   : > { %v9594_v60 = vadd.f32 %v3365_v35, %v3156_v13  ;;  %v3159_v19 = vpop.f32.mrf.mxu1  ;;  %v6748_v35 = vor.u32 %v8264_v21, %v6747_v5  ;;  %v7017_v5 = vld [vmem:[%s8645_s10 + $0x188] sm:$0xf0] }
 0x293   : > { %v9596_v44 = vadd.f32 %v2325_v31, %v1295_v54  ;;  %v1296_v4 = vadd.f32 %v9320_v0, %v1188_v57  ;;  %v7015_v57 = vld [vmem:[%s8645_s10 + $0x180] sm:$0xf] }
 0x294   : > { %11117 = vst [vmem:[#allocation119_spill] sm:$0xff] %v9594_v60 }
 0x295   : > { %3198 = vmatmul.bf16.gmra.mxu1 %v7008_v49 }
 0x296   : > { %7232 = vmatmul.msk.bf16.gmra.mxu3 %vm696_vm0, %v7012_v30 }
 0x298   : > { %v2117_v13 = vpop.f32.mrf.mxu2  ;;  %v981_v31 = vpop.f32.mrf.mxu0 }
 0x299   : > { %v2327_v1 = vadd.f32 %v11119_v33, %v2117_v13  ;;  %v3368_v54 = vpop.f32.mrf.mxu3  ;;  %v1191_v2 = vadd.f32 %v11122_v43, %v981_v31  ;;  %v8315_v13 = vld [vmem:[%s8645_s10 + $0x184] sm:$0xf]  ;;  %v11126_v43 = vld [vmem:[#allocation51_spill] sm:$0xff] }
 0x29a   : > { %v9609_v14 = vadd.f32 %v3368_v54, %v3159_v19  ;;  %v3161_v49 = vpop.f32.mrf.mxu1 }
 0x29b   : > { %v9611_v30 = vadd.f32 %v2327_v1, %v1296_v4  ;;  %1020 = vmatmul.bf16.gmra.mxu0 %v6328_v12  ;;  %v1297_v21 = vadd.f32 %v9320_v0, %v1191_v2  ;;  %v11123_v4 = vld [vmem:[#allocation49_spill] sm:$0xff]  ;;  %v7016_v12 = vor.u32 %v8316_v52, %v7015_v57  ;;  %v8185_v2 = vld [vmem:[%s8645_s10 + $0x24] sm:$0xf] }
 0x29c   : > { %11120 = vst [vmem:[#allocation43_spill] sm:$0xff] %v9609_v14  ;;  %v11127_v52 = vld [vmem:[#allocation53_spill] sm:$0xff] }
 0x29d   : > { %11121 = vst [vmem:[#allocation45_spill] sm:$0xff] %v9611_v30  ;;  %2159 = vmatmul.bf16.gmra.mxu2 %v6748_v35  ;;  %v7020_v35 = vor.u32 %v8315_v13, %v7017_v5  ;;  %v6017_v30 = vld [vmem:[%s8645_s10 + $0x8] sm:$0xf0] }
 0x2a0   : > { %v2120_v19 = vpop.f32.mrf.mxu2  ;;  %v983_v54 = vpop.f32.mrf.mxu0 }
 0x2a1   : > { %v2330_v33 = vadd.f32 %v11123_v4, %v2120_v19  ;;  %v3370_v1 = vpop.f32.mrf.mxu3  ;;  %v1193_v60 = vadd.f32 %v11126_v43, %v983_v54  ;;  %v6437_v19 = vld [vmem:[%s8645_s10 + $0x28] sm:$0xf0] }
 0x2a2   : > { %v9623_v14 = vadd.f32 %v3370_v1, %v3161_v49  ;;  %v3164_v31 = vpop.f32.mrf.mxu1  ;;  %v6020_v49 = vor.u32 %v8095_v61, %v6017_v30  ;;  %v8318_v61 = vld [vmem:[%s8645_s10 + $0x194] sm:$0xf0]  ;;  %v7025_v30 = vld [vmem:[%s8645_s10 + $0x198] sm:$0xf0] }
 0x2a3   : > { %v9625_v7 = vadd.f32 %v2330_v33, %v1297_v21  ;;  %v1298_v57 = vadd.f32 %v9320_v0, %v1193_v60  ;;  %v6440_v33 = vor.u32 %v8185_v2, %v6437_v19  ;;  %v8317_v60 = vld [vmem:[%s8645_s10 + $0x194] sm:$0xf]  ;;  %v11131_v2 = vld [vmem:[#allocation57_spill] sm:$0xff] }
 0x2a4   : > { %11124 = vst [vmem:[#allocation47_spill] sm:$0xff] %v9623_v14  ;;  %v7023_v14 = vld [vmem:[%s8645_s10 + $0x190] sm:$0xf] }
 0x2a5   : > { %11125 = vst [vmem:[#allocation49_spill] sm:$0xff] %v9625_v7  ;;  %3203 = vmatmul.bf16.gmra.mxu1 %v7016_v12  ;;  %v6025_v7 = vld [vmem:[%s8645_s10 + $0x18] sm:$0xf0] }
 0x2a6   : > { %7233 = vmatmul.msk.bf16.gmra.mxu3 %vm696_vm0, %v7020_v35  ;;  %v11130_v35 = vld [vmem:[#allocation55_spill] sm:$0xff] }
 0x2a8   : > { %v2122_v4 = vpop.f32.mrf.mxu2  ;;  %v986_v21 = vpop.f32.mrf.mxu0 }
 0x2a9   : > { %v2332_v13 = vadd.f32 %v11127_v52, %v2122_v4  ;;  %v3373_v5 = vpop.f32.mrf.mxu3  ;;  %v1196_v43 = vadd.f32 %v11130_v35, %v986_v21  ;;  %v7028_v21 = vor.u32 %v8317_v60, %v7025_v30  ;;  %v11134_v35 = vld [vmem:[#allocation59_spill] sm:$0xff] }
 0x2aa   : > { %v9635_v1 = vadd.f32 %v3373_v5, %v3164_v31  ;;  %v3166_v54 = vpop.f32.mrf.mxu1 }
 0x2ab   : > { %v9637_v12 = vadd.f32 %v2332_v13, %v1298_v57  ;;  %6373 = vmatmul.msk.bf16.vlgmr.msrb.gmra.mxu0 %vm696_vm0, %v6020_v49  ;;  %v1299_v31 = vadd.f32 %v9320_v0, %v1196_v43  ;;  %v7024_v49 = vor.u32 %v8318_v61, %v7023_v14  ;;  %v6445_v43 = vld [vmem:[%s8645_s10 + $0x38] sm:$0xf0] }
 0x2ac   : > { %11128 = vst [vmem:[#allocation51_spill] sm:$0xff] %v9635_v1  ;;  %v11135_v61 = vld [vmem:[#allocation61_spill] sm:$0xff] }
 0x2ad   : > { %11129 = vst [vmem:[#allocation53_spill] sm:$0xff] %v9637_v12  ;;  %6793 = vmatmul.msk.bf16.vlgmr.msrb.gmra.mxu2 %vm696_vm0, %v6440_v33  ;;  %v8097_v12 = vld [vmem:[%s8645_s10 + $0x14] sm:$0xf] }
 0x2ae   : > { %v6028_v14 = vor.u32 %v8097_v12, %v6025_v7  ;;  %v8451_v7 = vld [vmem:[%s10997_s1 + $0x120] sm:$0xff]  ;;  %v8320_v12 = vld [vmem:[%s8645_s10 + $0x1a4] sm:$0xf0] }
 0x2af   : > { %4235 = vmatpush.bf16.msra.mxu0 %v8451_v7  ;;  %v8099_v7 = vld [vmem:[%s8645_s10 + $0x24] sm:$0xf] }
 0x2b0   : > { %v2125_v4 = vpop.f32.mrf.mxu2  ;;  %v988_v52 = vpop.f32.mrf.mxu0 }
 0x2b1   : > { %v2335_v19 = vadd.f32 %v11131_v2, %v2125_v4  ;;  %v3375_v57 = vpop.f32.mrf.mxu3  ;;  %v1198_v1 = vadd.f32 %v11134_v35, %v988_v52  ;;  %v6448_v2 = vor.u32 %v8187_v40, %v6445_v43  ;;  %v8319_v35 = vld [vmem:[%s8645_s10 + $0x1a4] sm:$0xf]  ;;  %v7033_v40 = vld [vmem:[%s8645_s10 + $0x1a8] sm:$0xf0] }
 0x2b2   : > { %v9648_v13 = vadd.f32 %v3375_v57, %v3166_v54  ;;  %v3169_v5 = vpop.f32.mrf.mxu1 }
 0x2b3   : > { %v9650_v33 = vadd.f32 %v2335_v19, %v1299_v31  ;;  %v1300_v54 = vadd.f32 %v9320_v0, %v1198_v1  ;;  %v7031_v1 = vld [vmem:[%s8645_s10 + $0x1a0] sm:$0xf] }
 0x2b4   : > { %11132 = vst [vmem:[#allocation55_spill] sm:$0xff] %v9648_v13 }
 0x2b5   : > { %11133 = vst [vmem:[#allocation57_spill] sm:$0xff] %v9650_v33  ;;  %3208 = vmatmul.bf16.gmra.mxu1 %v7024_v49  ;;  %v11138_v49 = vld [vmem:[#allocation63_spill] sm:$0xff]  ;;  %v8189_v33 = vld [vmem:[%s8645_s10 + $0x44] sm:$0xf] }
 0x2b6   : > { %7234 = vmatmul.msk.bf16.gmra.mxu3 %vm696_vm0, %v7028_v21 }
 0x2b8   : > { %v2127_v4 = vpop.f32.mrf.mxu2  ;;  %v991_v31 = vpop.f32.mrf.mxu0 }
 0x2b9   : > { %v2337_v60 = vadd.f32 %v11135_v61, %v2127_v4  ;;  %v3378_v30 = vpop.f32.mrf.mxu3  ;;  %v1201_v21 = vadd.f32 %v11138_v49, %v991_v31  ;;  %v11139_v4 = vld [vmem:[#allocation65_spill] sm:$0xff] }
 0x2ba   : > { %v9660_v19 = vadd.f32 %v3378_v30, %v3169_v5  ;;  %v3171_v57 = vpop.f32.mrf.mxu1 }
 0x2bb   : > { %v9662_v52 = vadd.f32 %v2337_v60, %v1300_v54  ;;  %6374 = vmatmul.msk.bf16.gmra.mxu0 %vm696_vm0, %v6028_v14  ;;  %v1301_v43 = vadd.f32 %v9320_v0, %v1201_v21  ;;  %v7032_v60 = vor.u32 %v8320_v12, %v7031_v1  ;;  %v6453_v0 = vld [vmem:[%s8645_s10 + $0x48] sm:$0xf0]  ;;  %v11143_v12 = vld [vmem:[#allocation69_spill] sm:$0xff] }
 0x2bc   : > { %11136 = vst [vmem:[#allocation59_spill] sm:$0xff] %v9660_v19  ;;  %v11142_v19 = vld [vmem:[#allocation67_spill] sm:$0xff] }
 0x2bd   : > { %11137 = vst [vmem:[#allocation61_spill] sm:$0xff] %v9662_v52  ;;  %6794 = vmatmul.msk.bf16.gmra.mxu2 %vm696_vm0, %v6448_v2  ;;  %v7036_v2 = vor.u32 %v8319_v35, %v7033_v40  ;;  %v6033_v52 = vld [vmem:[%s8645_s10 + $0x28] sm:$0xf0] }
 0x2be   : > { %v6036_v1 = vor.u32 %v8099_v7, %v6033_v52  ;;  %v11146_v52 = vld [vmem:[#allocation71_spill] sm:$0xff]  ;;  %v7041_v7 = vld [vmem:[%s8645_s10 + $0x1b8] sm:$0xf0] }
 0x2c0   : > { %v2130_v5 = vpop.f32.mrf.mxu2  ;;  %v993_v61 = vpop.f32.mrf.mxu0 }
 0x2c1   : > { %v2340_v14 = vadd.f32 %v11139_v4, %v2130_v5  ;;  %v3380_v54 = vpop.f32.mrf.mxu3  ;;  %v1203_v13 = vadd.f32 %v11142_v19, %v993_v61 }
 0x2c2   : > { %v9676_v30 = vadd.f32 %v3380_v54, %v3171_v57  ;;  %v3174_v31 = vpop.f32.mrf.mxu1  ;;  %v9689_v57 = vld [vmem:[%s10998_s2] ss:$0 sm:$0xff] }
 0x2c3   : > { %v9678_v49 = vadd.f32 %v2340_v14, %v1301_v43  ;;  %v1302_v19 = vadd.f32 %v9689_v57, %v1203_v13  ;;  %v6456_v43 = vor.u32 %v8189_v33, %v6453_v0  ;;  %v8321_v13 = vld [vmem:[%s8645_s10 + $0x1b4] sm:$0xf] }
 0x2c4   : > { %11140 = vst [vmem:[#allocation63_spill] sm:$0xff] %v9676_v30  ;;  %v8101_v30 = vld [vmem:[%s8645_s10 + $0x34] sm:$0xf] }
 0x2c5   : > { %11141 = vst [vmem:[#allocation65_spill] sm:$0xff] %v9678_v49  ;;  %3213 = vmatmul.bf16.gmra.mxu1 %v7032_v60  ;;  %v7039_v60 = vld [vmem:[%s8645_s10 + $0x1b0] sm:$0xf]  ;;  %v8191_v49 = vld [vmem:[%s8645_s10 + $0x54] sm:$0xf] }
 0x2c6   : > { %7235 = vmatmul.msk.bf16.gmra.mxu3 %vm696_vm0, %v7036_v2  ;;  %v8322_v2 = vld [vmem:[%s8645_s10 + $0x1b4] sm:$0xf0] }
 0x2c8   : > { %v2132_v21 = vpop.f32.mrf.mxu2  ;;  %v996_v5 = vpop.f32.mrf.mxu0 }
 0x2c9   : > { %v2342_v35 = vadd.f32 %v11143_v12, %v2132_v21  ;;  %v3383_v40 = vpop.f32.mrf.mxu3  ;;  %v1206_v61 = vadd.f32 %v11146_v52, %v996_v5  ;;  %v7044_v5 = vor.u32 %v8321_v13, %v7041_v7  ;;  %v11150_v52 = vld [vmem:[#allocation75_spill] sm:$0xff] }
 0x2ca   : > { %v9693_v4 = vadd.f32 %v3383_v40, %v3174_v31  ;;  %v3176_v14 = vpop.f32.mrf.mxu1  ;;  %v11147_v31 = vld [vmem:[#allocation73_spill] sm:$0xff] }
 0x2cb   : > { %v9695_v54 = vadd.f32 %v2342_v35, %v1302_v19  ;;  %6375 = vmatmul.msk.bf16.gmra.mxu0 %vm696_vm0, %v6036_v1  ;;  %v1303_v33 = vadd.f32 %v9689_v57, %v1206_v61  ;;  %v7040_v1 = vor.u32 %v8322_v2, %v7039_v60  ;;  %v6461_v61 = vld [vmem:[%s8645_s10 + $0x58] sm:$0xf0] }
 0x2cc   : > { %11144 = vst [vmem:[#allocation67_spill] sm:$0xff] %v9693_v4  ;;  %v11151_v60 = vld [vmem:[#allocation77_spill] sm:$0xff] }
 0x2cd   : > { %11145 = vst [vmem:[#allocation69_spill] sm:$0xff] %v9695_v54  ;;  %6795 = vmatmul.msk.bf16.gmra.mxu2 %vm696_vm0, %v6456_v43  ;;  %v6041_v54 = vld [vmem:[%s8645_s10 + $0x38] sm:$0xf0] }
 0x2d0   : > { %v2135_v21 = vpop.f32.mrf.mxu2  ;;  %v998_v12 = vpop.f32.mrf.mxu0 }
 0x2d1   : > { %v2345_v0 = vadd.f32 %v11147_v31, %v2135_v21  ;;  %v3385_v19 = vpop.f32.mrf.mxu3  ;;  %v1208_v4 = vadd.f32 %v11150_v52, %v998_v12  ;;  %v6044_v31 = vor.u32 %v8101_v30, %v6041_v54  ;;  %v8537_v30 = vld [vmem:[%s10997_s1 + $0x150] sm:$0xff]  ;;  %v11154_v54 = vld [vmem:[#allocation79_spill] sm:$0xff] }
 0x2d2   : > { %v9706_v35 = vadd.f32 %v3385_v19, %v3176_v14  ;;  %v3179_v40 = vpop.f32.mrf.mxu1  ;;  %5378 = vmatpush.bf16.msra.mxu1 %v8537_v30  ;;  %v11158_v30 = vld [vmem:[#allocation83_spill] sm:$0xff] }
 0x2d3   : > { %v9708_v43 = vadd.f32 %v2345_v0, %v1303_v33  ;;  %v1304_v14 = vadd.f32 %v9689_v57, %v1208_v4  ;;  %v6464_v33 = vor.u32 %v8191_v49, %v6461_v61  ;;  %v7047_v4 = vld [vmem:[%s8645_s10 + $0x1c0] sm:$0xf]  ;;  %v8323_v49 = vld [vmem:[%s8645_s10 + $0x1c4] sm:$0xf] }
 0x2d4   : > { %11148 = vst [vmem:[#allocation71_spill] sm:$0xff] %v9706_v35  ;;  %v8103_v35 = vld [vmem:[%s8645_s10 + $0x44] sm:$0xf] }
 0x2d5   : > { %11149 = vst [vmem:[#allocation73_spill] sm:$0xff] %v9708_v43  ;;  %3218 = vmatmul.bf16.gmra.mxu1 %v7040_v1  ;;  %v8193_v43 = vld [vmem:[%s8645_s10 + $0x64] sm:$0xf] }
 0x2d6   : > { %7236 = vmatmul.msk.bf16.gmra.mxu3 %vm696_vm0, %v7044_v5  ;;  %v8324_v5 = vld [vmem:[%s8645_s10 + $0x1c4] sm:$0xf0] }
 0x2d8   : > { %v2137_v21 = vpop.f32.mrf.mxu2  ;;  %v1001_v7 = vpop.f32.mrf.mxu0 }
 0x2d9   : > { %v2347_v2 = vadd.f32 %v11151_v60, %v2137_v21  ;;  %v3388_v13 = vpop.f32.mrf.mxu3  ;;  %v1211_v1 = vadd.f32 %v11154_v54, %v1001_v7  ;;  %v11155_v21 = vld [vmem:[#allocation81_spill] sm:$0xff] }
 0x2da   : > { %v9718_v0 = vadd.f32 %v3388_v13, %v3179_v40  ;;  %v3181_v19 = vpop.f32.mrf.mxu1  ;;  %v7049_v40 = vld [vmem:[%s8645_s10 + $0x1c8] sm:$0xf0] }
 0x2db   : > { %v9720_v12 = vadd.f32 %v2347_v2, %v1304_v14  ;;  %6376 = vmatmul.msk.bf16.gmra.mxu0 %vm696_vm0, %v6044_v31  ;;  %v1305_v61 = vadd.f32 %v9689_v57, %v1211_v1  ;;  %v7048_v2 = vor.u32 %v8324_v5, %v7047_v4  ;;  %v6469_v1 = vld [vmem:[%s8645_s10 + $0x68] sm:$0xf0]  ;;  %v8450_v4 = vld [vmem:[%s10997_s1 + $0x118] sm:$0xff] }
 0x2dc   : > { %11152 = vst [vmem:[#allocation75_spill] sm:$0xff] %v9718_v0  ;;  %4236 = vmatpush.bf16.msra.mxu0 %v8450_v4  ;;  %v7057_v4 = vld [vmem:[%s8645_s10 + $0x1d8] sm:$0xf0] }
 0x2dd   : > { %11153 = vst [vmem:[#allocation77_spill] sm:$0xff] %v9720_v12  ;;  %6796 = vmatmul.msk.bf16.gmra.mxu2 %vm696_vm0, %v6464_v33  ;;  %v7052_v33 = vor.u32 %v8323_v49, %v7049_v40  ;;  %v6049_v12 = vld [vmem:[%s8645_s10 + $0x48] sm:$0xf0]  ;;  %v11159_v40 = vld [vmem:[#allocation85_spill] sm:$0xff] }
 0x2de   : > { %v6052_v5 = vor.u32 %v8103_v35, %v6049_v12  ;;  %v7055_v35 = vld [vmem:[%s8645_s10 + $0x1d0] sm:$0xf]  ;;  %v8326_v12 = vld [vmem:[%s8645_s10 + $0x1d4] sm:$0xf0] }
 0x2e0   : > { %v2140_v52 = vpop.f32.mrf.mxu2  ;;  %v1003_v60 = vpop.f32.mrf.mxu0 }
 0x2e1   : > { %v2350_v31 = vadd.f32 %v11155_v21, %v2140_v52  ;;  %v3390_v14 = vpop.f32.mrf.mxu3  ;;  %v1213_v0 = vadd.f32 %v11158_v30, %v1003_v60 }
 0x2e2   : > { %v9734_v13 = vadd.f32 %v3390_v14, %v3181_v19  ;;  %v3184_v7 = vpop.f32.mrf.mxu1 }
 0x2e3   : > { %v9736_v54 = vadd.f32 %v2350_v31, %v1305_v61  ;;  %v1306_v49 = vadd.f32 %v9689_v57, %v1213_v0  ;;  %v6472_v31 = vor.u32 %v8193_v43, %v6469_v1  ;;  %v8325_v0 = vld [vmem:[%s8645_s10 + $0x1d4] sm:$0xf] }
 0x2e4   : > { %11156 = vst [vmem:[#allocation79_spill] sm:$0xff] %v9734_v13  ;;  %v8105_v13 = vld [vmem:[%s8645_s10 + $0x54] sm:$0xf] }
 0x2e5   : > { %11157 = vst [vmem:[#allocation81_spill] sm:$0xff] %v9736_v54  ;;  %3223 = vmatmul.bf16.gmra.mxu1 %v7048_v2  ;;  %v8197_v54 = vld [vmem:[%s8645_s10 + $0x84] sm:$0xf] }
 0x2e6   : > { %7237 = vmatmul.msk.bf16.gmra.mxu3 %vm696_vm0, %v7052_v33  ;;  %v11162_v33 = vld [vmem:[#allocation87_spill] sm:$0xff] }
 0x2e8   : > { %v2142_v19 = vpop.f32.mrf.mxu2  ;;  %v1006_v21 = vpop.f32.mrf.mxu0 }
 0x2e9   : > { %v2352_v52 = vadd.f32 %v11159_v40, %v2142_v19  ;;  %v3393_v61 = vpop.f32.mrf.mxu3  ;;  %v1216_v30 = vadd.f32 %v11162_v33, %v1006_v21  ;;  %v7060_v21 = vor.u32 %v8325_v0, %v7057_v4  ;;  %v11166_v33 = vld [vmem:[#allocation91_spill] sm:$0xff] }
 0x2ea   : > { %v9749_v14 = vadd.f32 %v3393_v61, %v3184_v7  ;;  %v3186_v60 = vpop.f32.mrf.mxu1  ;;  %v11163_v7 = vld [vmem:[#allocation89_spill] sm:$0xff] }
 0x2eb   : > { %v9751_v2 = vadd.f32 %v2352_v52, %v1306_v49  ;;  %6377 = vmatmul.msk.bf16.gmra.mxu0 %vm696_vm0, %v6052_v5  ;;  %v1307_v43 = vadd.f32 %v9689_v57, %v1216_v30  ;;  %v7056_v5 = vor.u32 %v8326_v12, %v7055_v35  ;;  %v8195_v30 = vld [vmem:[%s8645_s10 + $0x74] sm:$0xf]  ;;  %v11167_v12 = vld [vmem:[#allocation93_spill] sm:$0xff] }
 0x2ec   : > { %11160 = vst [vmem:[#allocation83_spill] sm:$0xff] %v9749_v14 }
 0x2ed   : > { %11161 = vst [vmem:[#allocation85_spill] sm:$0xff] %v9751_v2  ;;  %6797 = vmatmul.msk.bf16.gmra.mxu2 %vm696_vm0, %v6472_v31  ;;  %v6057_v2 = vld [vmem:[%s8645_s10 + $0x58] sm:$0xf0] }
 0x2f0   : > { %v2145_v19 = vpop.f32.mrf.mxu2  ;;  %v1008_v40 = vpop.f32.mrf.mxu0 }
 0x2f1   : > { %v2355_v1 = vadd.f32 %v11163_v7, %v2145_v19  ;;  %v3395_v49 = vpop.f32.mrf.mxu3  ;;  %v1218_v14 = vadd.f32 %v11166_v33, %v1008_v40  ;;  %v6477_v19 = vld [vmem:[%s8645_s10 + $0x78] sm:$0xf0] }
 0x2f2   : > { %v9762_v52 = vadd.f32 %v3395_v49, %v3186_v60  ;;  %v3189_v61 = vpop.f32.mrf.mxu1  ;;  %v6060_v60 = vor.u32 %v8105_v13, %v6057_v2  ;;  %v8328_v13 = vld [vmem:[%s8645_s10 + $0x1e4] sm:$0xf0]  ;;  %v7065_v2 = vld [vmem:[%s8645_s10 + $0x1e8] sm:$0xf0] }
 0x2f3   : > { %v9764_v31 = vadd.f32 %v2355_v1, %v1307_v43  ;;  %v1308_v35 = vadd.f32 %v9689_v57, %v1218_v14  ;;  %v6480_v1 = vor.u32 %v8195_v30, %v6477_v19  ;;  %v8327_v14 = vld [vmem:[%s8645_s10 + $0x1e4] sm:$0xf]  ;;  %v11171_v30 = vld [vmem:[#allocation97_spill] sm:$0xff] }
 0x2f4   : > { %11164 = vst [vmem:[#allocation87_spill] sm:$0xff] %v9762_v52  ;;  %v7063_v52 = vld [vmem:[%s8645_s10 + $0x1e0] sm:$0xf] }
 0x2f5   : > { %11165 = vst [vmem:[#allocation89_spill] sm:$0xff] %v9764_v31  ;;  %3228 = vmatmul.bf16.gmra.mxu1 %v7056_v5  ;;  %v6065_v31 = vld [vmem:[%s8645_s10 + $0x68] sm:$0xf0] }
 0x2f6   : > { %7238 = vmatmul.msk.bf16.gmra.mxu3 %vm696_vm0, %v7060_v21  ;;  %v11170_v21 = vld [vmem:[#allocation95_spill] sm:$0xff] }
 0x2f8   : > { %v2147_v7 = vpop.f32.mrf.mxu2  ;;  %v1011_v43 = vpop.f32.mrf.mxu0 }
 0x2f9   : > { %v2357_v0 = vadd.f32 %v11167_v12, %v2147_v7  ;;  %v3398_v4 = vpop.f32.mrf.mxu3  ;;  %v1221_v33 = vadd.f32 %v11170_v21, %v1011_v43  ;;  %v7068_v43 = vor.u32 %v8327_v14, %v7065_v2  ;;  %v11174_v21 = vld [vmem:[#allocation99_spill] sm:$0xff] }
 0x2fa   : > { %v9774_v49 = vadd.f32 %v3398_v4, %v3189_v61  ;;  %v3191_v40 = vpop.f32.mrf.mxu1 }
 0x2fb   : > { %v9776_v5 = vadd.f32 %v2357_v0, %v1308_v35  ;;  %6378 = vmatmul.msk.bf16.gmra.mxu0 %vm696_vm0, %v6060_v60  ;;  %v1309_v61 = vadd.f32 %v9689_v57, %v1221_v33  ;;  %v7064_v60 = vor.u32 %v8328_v13, %v7063_v52  ;;  %v6485_v33 = vld [vmem:[%s8645_s10 + $0x88] sm:$0xf0] }
 0x2fc   : > { %11168 = vst [vmem:[#allocation91_spill] sm:$0xff] %v9774_v49 }
 0x2fd   : > { %11169 = vst [vmem:[#allocation93_spill] sm:$0xff] %v9776_v5  ;;  %6798 = vmatmul.msk.bf16.gmra.mxu2 %vm696_vm0, %v6480_v1  ;;  %v8107_v5 = vld [vmem:[%s8645_s10 + $0x64] sm:$0xf] }
 0x300   : > { %v2150_v7 = vpop.f32.mrf.mxu2  ;;  %v1013_v12 = vpop.f32.mrf.mxu0 }
 0x301   : > { %v2360_v19 = vadd.f32 %v11171_v30, %v2150_v7  ;;  %v3400_v35 = vpop.f32.mrf.mxu3  ;;  %v1223_v49 = vadd.f32 %v11174_v21, %v1013_v12  ;;  %v6068_v30 = vor.u32 %v8107_v5, %v6065_v31  ;;  %v8449_v31 = vld [vmem:[%s10997_s1 + $0x110] sm:$0xff]  ;;  %v11178_v5 = vld [vmem:[#allocation103_spill] sm:$0xff] }
 0x302   : > { %v9787_v0 = vadd.f32 %v3400_v35, %v3191_v40  ;;  %v3194_v4 = vpop.f32.mrf.mxu1  ;;  %v11175_v40 = vld [vmem:[#allocation101_spill] sm:$0xff]  ;;  %4237 = vmatpush.bf16.msra.mxu0 %v8449_v31  ;;  %v11181_v31 = vld [vmem:[#allocation107_spill] sm:$0xff] }
 0x303   : > { %v9789_v1 = vadd.f32 %v2360_v19, %v1309_v61  ;;  %v1310_v52 = vadd.f32 %v9689_v57, %v1223_v49  ;;  %v6488_v61 = vor.u32 %v8197_v54, %v6485_v33  ;;  %v7071_v49 = vld [vmem:[%s8645_s10 + $0x1f0] sm:$0xf]  ;;  %v8329_v54 = vld [vmem:[%s8645_s10 + $0x1f4] sm:$0xf] }
 0x304   : > { %11172 = vst [vmem:[#allocation95_spill] sm:$0xff] %v9787_v0  ;;  %v8109_v0 = vld [vmem:[%s8645_s10 + $0x74] sm:$0xf] }
 0x305   : > { %11173 = vst [vmem:[#allocation97_spill] sm:$0xff] %v9789_v1  ;;  %3233 = vmatmul.bf16.gmra.mxu1 %v7064_v60  ;;  %v8199_v1 = vld [vmem:[%s8645_s10 + $0x94] sm:$0xf] }
 0x306   : > { %7239 = vmatmul.msk.bf16.gmra.mxu3 %vm696_vm0, %v7068_v43  ;;  %v8330_v43 = vld [vmem:[%s8645_s10 + $0x1f4] sm:$0xf0] }
 0x308   : > { %v2152_v7 = vpop.f32.mrf.mxu2  ;;  %v1016_v2 = vpop.f32.mrf.mxu0 }
 0x309   : > { %v2362_v13 = vadd.f32 %v11175_v40, %v2152_v7  ;;  %v3403_v14 = vpop.f32.mrf.mxu3  ;;  %v1226_v60 = vadd.f32 %v11178_v5, %v1016_v2  ;;  %v11179_v7 = vld [vmem:[#allocation105_spill] sm:$0xff] }
 0x30a   : > { %v9799_v19 = vadd.f32 %v3403_v14, %v3194_v4  ;;  %v3196_v35 = vpop.f32.mrf.mxu1  ;;  %v7073_v4 = vld [vmem:[%s8645_s10 + $0x1f8] sm:$0xf0] }
 0x30b   : > { %v9801_v12 = vadd.f32 %v2362_v13, %v1310_v52  ;;  %6379 = vmatmul.msk.bf16.gmra.mxu0 %vm696_vm0, %v6068_v30  ;;  %v1311_v33 = vadd.f32 %v9689_v57, %v1226_v60  ;;  %v7072_v13 = vor.u32 %v8330_v43, %v7071_v49  ;;  %v6493_v60 = vld [vmem:[%s8645_s10 + $0x98] sm:$0xf0] }
 0x30c   : > { %11176 = vst [vmem:[#allocation99_spill] sm:$0xff] %v9799_v19  ;;  %v11182_v43 = vld [vmem:[#allocation109_spill] sm:$0xff] }
 0x30d   : > { %11177 = vst [vmem:[#allocation101_spill] sm:$0xff] %v9801_v12  ;;  %6799 = vmatmul.msk.bf16.gmra.mxu2 %vm696_vm0, %v6488_v61  ;;  %v7076_v61 = vor.u32 %v8329_v54, %v7073_v4  ;;  %v6073_v12 = vld [vmem:[%s8645_s10 + $0x78] sm:$0xf0] }
 0x30e   : > { %v6076_v49 = vor.u32 %v8109_v0, %v6073_v12  ;;  %v7079_v0 = vld [vmem:[%s8645_s10 + $0x200] sm:$0xf]  ;;  %v8331_v12 = vld [vmem:[%s8645_s10 + $0x204] sm:$0xf] }
 0x310   : > { %v2155_v21 = vpop.f32.mrf.mxu2  ;;  %v1018_v40 = vpop.f32.mrf.mxu0 }
 0x311   : > { %v2365_v30 = vadd.f32 %v11179_v7, %v2155_v21  ;;  %v3405_v52 = vpop.f32.mrf.mxu3  ;;  %v1228_v19 = vadd.f32 %v11181_v31, %v1018_v40  ;;  %v6496_v7 = vor.u32 %v8199_v1, %v6493_v60  ;;  %v11186_v60 = vld [vmem:[#allocation113_spill] sm:$0xff] }
 0x312   : > { %v9815_v14 = vadd.f32 %v3405_v52, %v3196_v35  ;;  %v3199_v2 = vpop.f32.mrf.mxu1 }
 0x313   : > { %v9817_v5 = vadd.f32 %v2365_v30, %v1311_v33  ;;  %v1312_v35 = vadd.f32 %v9689_v57, %v1228_v19  ;;  %v8332_v19 = vld [vmem:[%s8645_s10 + $0x204] sm:$0xf0] }
 0x314   : > { %11180 = vst [vmem:[#allocation103_spill] sm:$0xff] %v9815_v14  ;;  %v8111_v14 = vld [vmem:[%s8645_s10 + $0x84] sm:$0xf] }
 0x315   : > { %3238 = vmatmul.bf16.gmra.mxu1 %v7072_v13 }
 0x316   : > { %7240 = vmatmul.msk.bf16.gmra.mxu3 %vm696_vm0, %v7076_v61  ;;  %v11185_v61 = vld [vmem:[#allocation111_spill] sm:$0xff] }
 0x318   : > { %v2157_v21 = vpop.f32.mrf.mxu2  ;;  %v1021_v33 = vpop.f32.mrf.mxu0 }
 0x319   : > { %v2367_v54 = vadd.f32 %v11182_v43, %v2157_v21  ;;  %v3408_v4 = vpop.f32.mrf.mxu3  ;;  %v1231_v31 = vadd.f32 %v11185_v61, %v1021_v33  ;;  %v7081_v21 = vld [vmem:[%s8645_s10 + $0x208] sm:$0xf0]  ;;  %v11187_v61 = vld [vmem:[#allocation114_spill] sm:$0xff] }
 0x31a   : > { %v3409_v30 = vadd.f32 %v3408_v4, %v3199_v2  ;;  %v3201_v52 = vpop.f32.mrf.mxu1  ;;  %v7084_v33 = vor.u32 %v8331_v12, %v7081_v21 }
 0x31b   : > { %v9827_v40 = vadd.f32 %v2367_v54, %v1312_v35  ;;  %6380 = vmatmul.msk.bf16.gmra.mxu0 %vm696_vm0, %v6076_v49  ;;  %v1313_v2 = vadd.f32 %v9689_v57, %v1231_v31  ;;  %v7080_v49 = vor.u32 %v8332_v19, %v7079_v0  ;;  %v8201_v31 = vld [vmem:[%s8645_s10 + $0xa4] sm:$0xf] }
 0x31c   : > { %v9830_v13 = vadd.f32 %v3409_v30, %v9331_v8 }
 0x31d   : > { %11183 = vst [vmem:[#allocation105_spill] sm:$0xff] %v9827_v40  ;;  %6800 = vmatmul.msk.bf16.gmra.mxu2 %vm696_vm0, %v6496_v7  ;;  %v6081_v40 = vld [vmem:[%s8645_s10 + $0x88] sm:$0xf0] }
 0x31e   : > { %11184 = vst [vmem:[#allocation107_spill] sm:$0xff] %v9830_v13  ;;  %v6084_v0 = vor.u32 %v8111_v14, %v6081_v40  ;;  %v8453_v14 = vld [vmem:[%s10997_s1 + $0x130] sm:$0xff]  ;;  %v11189_v40 = vld [vmem:[#allocation2_spill] sm:$0xff] }
 0x31f   : > { %4450 = vmatpush.bf16.msra.mxu2 %v8453_v14  ;;  %v8448_v14 = vld [vmem:[%s10997_s1 + $0x108] sm:$0xff] }
 0x320   : > { %v2160_v1 = vpop.f32.mrf.mxu2  ;;  %v1023_v43 = vpop.f32.mrf.mxu0  ;;  %4238 = vmatpush.bf16.msra.mxu0 %v8448_v14  ;;  %v11196_v14 = vld [vmem:[#allocation6_spill] sm:$0xff] }
 0x321   : > { %v2370_v8 = vadd.f32 %v11186_v60, %v2160_v1  ;;  %v3410_v35 = vpop.f32.mrf.mxu3  ;;  %v1233_v13 = vadd.f32 %v11187_v61, %v1023_v43  ;;  %v6501_v1 = vld [vmem:[%s8645_s10 + $0xa8] sm:$0xf0] }
 0x322   : > { %v3411_v54 = vadd.f32 %v3410_v35, %v3201_v52  ;;  %v3204_v4 = vpop.f32.mrf.mxu1  ;;  %v6504_v21 = vor.u32 %v8201_v31, %v6501_v1  ;;  %v11190_v31 = vld [vmem:[#allocation3_spill] sm:$0xff] }
 0x323   : > { %v9841_v7 = vadd.f32 %v2370_v8, %v1313_v2  ;;  %v1314_v52 = vadd.f32 %v9689_v57, %v1233_v13 }
 0x324   : > { %v9844_v30 = vadd.f32 %v3411_v54, %v9343_v10  ;;  %v8334_v54 = vld [vmem:[%s8645_s10 + $0x214] sm:$0xf0] }
 0x325   : > { %3243 = vmatmul.bf16.gmra.mxu1 %v7080_v49  ;;  %v7087_v49 = vld [vmem:[%s8645_s10 + $0x210] sm:$0xf] }
 0x326   : > { %7241 = vmatmul.msk.bf16.gmra.mxu3 %vm696_vm0, %v7084_v33 }
 0x328   : > { %v2162_v60 = vpop.f32.mrf.mxu2  ;;  %v1035_v10 = vpop.f32.mrf.mxu0 }
 0x329   : > { %v2372_v19 = vadd.f32 %v9329_v38, %v2162_v60  ;;  %v3413_v12 = vpop.f32.mrf.mxu3  ;;  %v8536_v38 = vld [vmem:[%s10997_s1 + $0x148] sm:$0xff]  ;;  %v1036_v13 = vadd.f32 %v1035_v10, %v11189_v40 }
 0x32a   : > { %v3414_v2 = vadd.f32 %v3413_v12, %v3204_v4  ;;  %v3206_v8 = vpop.f32.mrf.mxu1  ;;  %5379 = vmatpush.bf16.msra.mxu1 %v8536_v38  ;;  %v7089_v4 = vld [vmem:[%s8645_s10 + $0x218] sm:$0xf0]  ;;  %v11192_v38 = vld [vmem:[#allocation4_spill] sm:$0xff] }
 0x32b   : > { %v9854_v35 = vadd.f32 %v2372_v19, %v1314_v52  ;;  %6381 = vmatmul.msk.bf16.gmra.mxu0 %vm696_vm0, %v6084_v0  ;;  %v1235_v61 = vadd.f32 %v9689_v57, %v1036_v13  ;;  %v7088_v52 = vor.u32 %v8334_v54, %v7087_v49  ;;  %v8113_v13 = vld [vmem:[%s8645_s10 + $0x94] sm:$0xf]  ;;  %v6509_v49 = vld [vmem:[%s8645_s10 + $0xb8] sm:$0xf0] }
 0x32c   : > { %v9857_v43 = vadd.f32 %v3414_v2, %v9357_v39  ;;  %v8333_v39 = vld [vmem:[%s8645_s10 + $0x214] sm:$0xf] }
 0x32d   : > { %6801 = vmatmul.msk.bf16.gmra.mxu2 %vm696_vm0, %v6504_v21  ;;  %v7092_v10 = vor.u32 %v8333_v39, %v7089_v4  ;;  %v11194_v4 = vld [vmem:[#allocation5_spill] sm:$0xff] }
 0x32e   : > { %11188 = vst [vmem:[#allocation109_spill] sm:$0xff] %v9857_v43 }
 0x330   : > { %v2174_v33 = vpop.f32.mrf.mxu2  ;;  %v1037_v0 = vpop.f32.mrf.mxu0 }
 0x331   : > { %v2175_v1 = vadd.f32 %v2174_v33, %v11190_v31  ;;  %v3415_v60 = vpop.f32.mrf.mxu3  ;;  %v1038_v40 = vadd.f32 %v1037_v0, %v11192_v38  ;;  %v6089_v33 = vld [vmem:[%s8645_s10 + $0x98] sm:$0xf0]  ;;  %v11193_v31 = vld [vmem:[#allocation115_spill] sm:$0xff] }
 0x332   : > { %v3416_v19 = vadd.f32 %v3415_v60, %v3206_v8  ;;  %v3209_v12 = vpop.f32.mrf.mxu1  ;;  %v8203_v8 = vld [vmem:[%s8645_s10 + $0xb4] sm:$0xf]  ;;  %v6092_v54 = vor.u32 %v8113_v13, %v6089_v33  ;;  %v7095_v13 = vld [vmem:[%s8645_s10 + $0x220] sm:$0xf]  ;;  %v8336_v33 = vld [vmem:[%s8645_s10 + $0x224] sm:$0xf0] }
 0x333   : > { %v2374_v21 = vadd.f32 %v2175_v1, %v1235_v61  ;;  %v1236_v39 = vadd.f32 %v9689_v57, %v1038_v40  ;;  %v6512_v0 = vor.u32 %v8203_v8, %v6509_v49 }
 0x334   : > { %v9875_v2 = vadd.f32 %v3416_v19, %v9369_v63 }
 0x335   : > { %3248 = vmatmul.bf16.gmra.mxu1 %v7088_v52  ;;  %v9884_v43 = vadd.f32 %v11193_v31, %v2374_v21  ;;  %v8335_v31 = vld [vmem:[%s8645_s10 + $0x224] sm:$0xf] }
 0x336   : > { %11191 = vst [vmem:[#allocation111_spill] sm:$0xff] %v9875_v2  ;;  %7242 = vmatmul.msk.bf16.gmra.mxu3 %vm696_vm0, %v7092_v10 }
 0x338   : > { %v2176_v63 = vpop.f32.mrf.mxu2  ;;  %v1040_v60 = vpop.f32.mrf.mxu0 }
 0x339   : > { %v2177_v61 = vadd.f32 %v2176_v63, %v11194_v4  ;;  %v3418_v1 = vpop.f32.mrf.mxu3  ;;  %v1041_v38 = vadd.f32 %v1040_v60, %v11196_v14  ;;  %v7096_v4 = vor.u32 %v8336_v33, %v7095_v13  ;;  %v8115_v14 = vld [vmem:[%s8645_s10 + $0xa4] sm:$0xf]  ;;  %v11200_v33 = vld [vmem:[#allocation9_spill] sm:$0xff] }
 0x33a   : > { %v3419_v52 = vadd.f32 %v3418_v1, %v3209_v12  ;;  %v3211_v19 = vpop.f32.mrf.mxu1  ;;  %v7097_v12 = vld [vmem:[%s8645_s10 + $0x228] sm:$0xf0] }
 0x33b   : > { %v2375_v21 = vadd.f32 %v2177_v61, %v1236_v39  ;;  %6382 = vmatmul.msk.bf16.gmra.mxu0 %vm696_vm0, %v6092_v54  ;;  %v1237_v49 = vadd.f32 %v9689_v57, %v1041_v38 }
 0x33c   : > { %v9892_v10 = vadd.f32 %v3419_v52, %v9380_v56  ;;  %v11197_v56 = vld [vmem:[#allocation7_spill] sm:$0xff]  ;;  %v11199_v52 = vld [vmem:[#allocation8_spill] sm:$0xff] }
 0x33d   : > { %6802 = vmatmul.msk.bf16.gmra.mxu2 %vm696_vm0, %v6512_v0  ;;  %v9898_v40 = vadd.f32 %v9355_v47, %v2375_v21  ;;  %v7100_v47 = vor.u32 %v8335_v31, %v7097_v12 }
 0x33e   : > { %11195 = vst [vmem:[#allocation113_spill] sm:$0xff] %v9892_v10  ;;  %v6097_v10 = vld [vmem:[%s8645_s10 + $0xa8] sm:$0xf0] }
 0x33f   : > { %v6100_v13 = vor.u32 %v8115_v14, %v6097_v10 }
 0x340   : > { %v2179_v8 = vpop.f32.mrf.mxu2  ;;  %v1042_v39 = vpop.f32.mrf.mxu0 }
 0x341   : > { %v2180_v63 = vadd.f32 %v2179_v8, %v11197_v56  ;;  %v3420_v54 = vpop.f32.mrf.mxu3  ;;  %v1043_v21 = vadd.f32 %v1042_v39, %v11199_v52  ;;  %v8205_v8 = vld [vmem:[%s8645_s10 + $0xc4] sm:$0xf]  ;;  %v6517_v56 = vld [vmem:[%s8645_s10 + $0xc8] sm:$0xf0]  ;;  %v8338_v52 = vld [vmem:[%s8645_s10 + $0x234] sm:$0xf0] }
 0x342   : > { %v3421_v61 = vadd.f32 %v3420_v54, %v3211_v19  ;;  %v3214_v1 = vpop.f32.mrf.mxu1 }
 0x343   : > { %v2376_v60 = vadd.f32 %v2180_v63, %v1237_v49  ;;  %v6520_v63 = vor.u32 %v8205_v8, %v6517_v56 }
 0x344   : > { %v9907_v0 = vadd.f32 %v3421_v61, %v9392_v45  ;;  %v1238_v45 = vadd.f32 %v9689_v57, %v1043_v21  ;;  %v11202_v61 = vld [vmem:[#allocation10_spill] sm:$0xff]  ;;  %v8337_v21 = vld [vmem:[%s8645_s10 + $0x234] sm:$0xf] }
 0x345   : > { %3253 = vmatmul.bf16.gmra.mxu1 %v7096_v4  ;;  %v9913_v38 = vadd.f32 %v9367_v34, %v2376_v60  ;;  %v7103_v60 = vld [vmem:[%s8645_s10 + $0x230] sm:$0xf] }
 0x346   : > { %11198 = vst [vmem:[#allocation114_spill] sm:$0xff] %v9907_v0  ;;  %7243 = vmatmul.msk.bf16.gmra.mxu3 %vm696_vm0, %v7100_v47 }
 0x348   : > { %v2181_v19 = vpop.f32.mrf.mxu2  ;;  %v1045_v49 = vpop.f32.mrf.mxu0 }
 0x349   : > { %v2182_v31 = vadd.f32 %v2181_v19, %v11200_v33  ;;  %v3423_v12 = vpop.f32.mrf.mxu3  ;;  %v1046_v47 = vadd.f32 %v1045_v49, %v11202_v61  ;;  %v6105_v61 = vld [vmem:[%s8645_s10 + $0xb8] sm:$0xf0] }
 0x34a   : > { %v3424_v54 = vadd.f32 %v3423_v12, %v3214_v1  ;;  %v3216_v34 = vpop.f32.mrf.mxu1  ;;  %v7105_v1 = vld [vmem:[%s8645_s10 + $0x238] sm:$0xf0] }
 0x34b   : > { %v2377_v39 = vadd.f32 %v2182_v31, %v1238_v45  ;;  %6383 = vmatmul.msk.bf16.gmra.mxu0 %vm696_vm0, %v6100_v13  ;;  %v1239_v8 = vadd.f32 %v9689_v57, %v1046_v47  ;;  %v7104_v45 = vor.u32 %v8338_v52, %v7103_v60 }
 0x34c   : > { %v9921_v4 = vadd.f32 %v3424_v54, %v9403_v23  ;;  %v11203_v23 = vld [vmem:[#allocation11_spill] sm:$0xff] }
 0x34d   : > { %6803 = vmatmul.msk.bf16.gmra.mxu2 %vm696_vm0, %v6520_v63  ;;  %v9927_v10 = vadd.f32 %v9378_v48, %v2377_v39  ;;  %v7108_v48 = vor.u32 %v8337_v21, %v7105_v1  ;;  %v11205_v63 = vld [vmem:[#allocation12_spill] sm:$0xff]  ;;  %v11206_v21 = vld [vmem:[#allocation13_spill] sm:$0xff] }
 0x34e   : > { %11201 = vst [vmem:[#allocation2_spill] sm:$0xff] %v9921_v4  ;;  %v8117_v39 = vld [vmem:[%s8645_s10 + $0xb4] sm:$0xf]  ;;  %v8380_v4 = vld [vmem:[%s8645_s10 + $0xd4] sm:$0xf0] }
 0x350   : > { %v2184_v14 = vpop.f32.mrf.mxu2  ;;  %v1047_v13 = vpop.f32.mrf.mxu0 }
 0x351   : > { %v2185_v56 = vadd.f32 %v2184_v14, %v11203_v23  ;;  %v3425_v19 = vpop.f32.mrf.mxu3  ;;  %v1048_v54 = vadd.f32 %v1047_v13, %v11205_v63  ;;  %v8207_v14 = vld [vmem:[%s8645_s10 + $0xd4] sm:$0xf]  ;;  %v6525_v23 = vld [vmem:[%s8645_s10 + $0xd8] sm:$0xf0] }
 0x352   : > { %v3426_v33 = vadd.f32 %v3425_v19, %v3216_v34  ;;  %v3219_v31 = vpop.f32.mrf.mxu1  ;;  %v8447_v34 = vld [vmem:[%s10997_s1 + $0x100] sm:$0xff] }
 0x353   : > { %v2378_v12 = vadd.f32 %v2185_v56, %v1239_v8  ;;  %4239 = vmatpush.bf16.msra.mxu0 %v8447_v34  ;;  %v1240_v52 = vadd.f32 %v9689_v57, %v1048_v54  ;;  %v6528_v56 = vor.u32 %v8207_v14, %v6525_v23  ;;  %v7111_v54 = vld [vmem:[%s8645_s10 + $0x240] sm:$0xf] }
 0x354   : > { %v9936_v49 = vadd.f32 %v3426_v33, %v9415_v51  ;;  %v6108_v51 = vor.u32 %v8117_v39, %v6105_v61  ;;  %v8340_v39 = vld [vmem:[%s8645_s10 + $0x244] sm:$0xf0]  ;;  %v8339_v61 = vld [vmem:[%s8645_s10 + $0x244] sm:$0xf] }
 0x355   : > { %3258 = vmatmul.bf16.gmra.mxu1 %v7104_v45  ;;  %v9942_v47 = vadd.f32 %v9390_v27, %v2378_v12 }
 0x356   : > { %11204 = vst [vmem:[#allocation3_spill] sm:$0xff] %v9936_v49  ;;  %7244 = vmatmul.msk.bf16.gmra.mxu3 %vm696_vm0, %v7108_v48  ;;  %v11208_v48 = vld [vmem:[#allocation14_spill] sm:$0xff] }
 0x358   : > { %v2186_v60 = vpop.f32.mrf.mxu2  ;;  %v1050_v8 = vpop.f32.mrf.mxu0 }
 0x359   : > { %v2187_v27 = vadd.f32 %v2186_v60, %v11206_v21  ;;  %v3428_v1 = vpop.f32.mrf.mxu3  ;;  %v1051_v12 = vadd.f32 %v1050_v8, %v11208_v48  ;;  %v6113_v48 = vld [vmem:[%s8645_s10 + $0xc8] sm:$0xf0] }
 0x35a   : > { %v3429_v19 = vadd.f32 %v3428_v1, %v3219_v31  ;;  %v3221_v13 = vpop.f32.mrf.mxu1  ;;  %v7113_v31 = vld [vmem:[%s8645_s10 + $0x248] sm:$0xf0] }
 0x35b   : > { %v2379_v45 = vadd.f32 %v2187_v27, %v1240_v52  ;;  %6384 = vmatmul.msk.bf16.gmra.mxu0 %vm696_vm0, %v6108_v51  ;;  %v1241_v23 = vadd.f32 %v9689_v57, %v1051_v12  ;;  %v7112_v52 = vor.u32 %v8340_v39, %v7111_v54  ;;  %v11212_v39 = vld [vmem:[#allocation17_spill] sm:$0xff] }
 0x35c   : > { %v9953_v33 = vadd.f32 %v3429_v19, %v9426_v55  ;;  %v11209_v55 = vld [vmem:[#allocation15_spill] sm:$0xff] }
 0x35d   : > { %6804 = vmatmul.msk.bf16.gmra.mxu2 %vm696_vm0, %v6528_v56  ;;  %v9959_v63 = vadd.f32 %v9401_v25, %v2379_v45  ;;  %v7116_v25 = vor.u32 %v8339_v61, %v7113_v31  ;;  %v11211_v56 = vld [vmem:[#allocation16_spill] sm:$0xff]  ;;  %v8119_v45 = vld [vmem:[%s8645_s10 + $0xc4] sm:$0xf] }
 0x35e   : > { %11207 = vst [vmem:[#allocation4_spill] sm:$0xff] %v9953_v33  ;;  %v6116_v54 = vor.u32 %v8119_v45, %v6113_v48  ;;  %v8341_v45 = vld [vmem:[%s8645_s10 + $0x254] sm:$0xf]  ;;  %v8378_v33 = vld [vmem:[%s8645_s10 + $0xc4] sm:$0xf0] }
 0x360   : > { %v2189_v14 = vpop.f32.mrf.mxu2  ;;  %v1052_v51 = vpop.f32.mrf.mxu0 }
 0x361   : > { %v2190_v34 = vadd.f32 %v2189_v14, %v11209_v55  ;;  %v3430_v60 = vpop.f32.mrf.mxu3  ;;  %v1053_v19 = vadd.f32 %v1052_v51, %v11211_v56  ;;  %v8209_v14 = vld [vmem:[%s8645_s10 + $0xe4] sm:$0xf]  ;;  %v6533_v55 = vld [vmem:[%s8645_s10 + $0xe8] sm:$0xf0]  ;;  %v7119_v56 = vld [vmem:[%s8645_s10 + $0x250] sm:$0xf] }
 0x362   : > { %v3431_v21 = vadd.f32 %v3430_v60, %v3221_v13  ;;  %v3224_v27 = vpop.f32.mrf.mxu1 }
 0x363   : > { %v2380_v1 = vadd.f32 %v2190_v34, %v1241_v23  ;;  %v6536_v34 = vor.u32 %v8209_v14, %v6533_v55 }
 0x364   : > { %v9968_v8 = vadd.f32 %v3431_v21, %v9438_v17  ;;  %v1242_v17 = vadd.f32 %v9689_v57, %v1053_v19  ;;  %v11214_v21 = vld [vmem:[#allocation18_spill] sm:$0xff]  ;;  %v8342_v19 = vld [vmem:[%s8645_s10 + $0x254] sm:$0xf0] }
 0x365   : > { %3263 = vmatmul.bf16.gmra.mxu1 %v7112_v52  ;;  %v9974_v12 = vadd.f32 %v9413_v20, %v2380_v1 }
 0x366   : > { %11210 = vst [vmem:[#allocation115_spill] sm:$0xff] %v9968_v8  ;;  %7245 = vmatmul.msk.bf16.gmra.mxu3 %vm696_vm0, %v7116_v25 }
 0x368   : > { %v2191_v13 = vpop.f32.mrf.mxu2  ;;  %v1055_v23 = vpop.f32.mrf.mxu0 }
 0x369   : > { %v2192_v61 = vadd.f32 %v2191_v13, %v11212_v39  ;;  %v3433_v31 = vpop.f32.mrf.mxu3  ;;  %v1056_v25 = vadd.f32 %v1055_v23, %v11214_v21  ;;  %v6121_v21 = vld [vmem:[%s8645_s10 + $0xd8] sm:$0xf0] }
 0x36a   : > { %v3434_v60 = vadd.f32 %v3433_v31, %v3224_v27  ;;  %v3226_v20 = vpop.f32.mrf.mxu1  ;;  %v7121_v27 = vld [vmem:[%s8645_s10 + $0x258] sm:$0xf0] }
 0x36b   : > { %v2381_v51 = vadd.f32 %v2192_v61, %v1242_v17  ;;  %6385 = vmatmul.msk.bf16.gmra.mxu0 %vm696_vm0, %v6116_v54  ;;  %v1243_v14 = vadd.f32 %v9689_v57, %v1056_v25  ;;  %v7120_v17 = vor.u32 %v8342_v19, %v7119_v56  ;;  %v11218_v25 = vld [vmem:[#allocation116_spill] sm:$0xff] }
 0x36c   : > { %v9982_v52 = vadd.f32 %v3434_v60, %v9449_v53  ;;  %v11215_v53 = vld [vmem:[#allocation19_spill] sm:$0xff] }
 0x36d   : > { %6805 = vmatmul.msk.bf16.gmra.mxu2 %vm696_vm0, %v6536_v34  ;;  %v9988_v1 = vadd.f32 %v9424_v9, %v2381_v51  ;;  %v7124_v9 = vor.u32 %v8341_v45, %v7121_v27  ;;  %v11217_v34 = vld [vmem:[#allocation20_spill] sm:$0xff]  ;;  %v11219_v45 = vld [vmem:[#allocation21_spill] sm:$0xff] }
 0x36e   : > { %11213 = vst [vmem:[#allocation5_spill] sm:$0xff] %v9982_v52  ;;  %v8121_v51 = vld [vmem:[%s8645_s10 + $0xd4] sm:$0xf] }
 0x370   : > { %v2194_v48 = vpop.f32.mrf.mxu2  ;;  %v1057_v54 = vpop.f32.mrf.mxu0 }
 0x371   : > { %v2195_v55 = vadd.f32 %v2194_v48, %v11215_v53  ;;  %v3435_v13 = vpop.f32.mrf.mxu3  ;;  %v1058_v60 = vadd.f32 %v1057_v54, %v11217_v34  ;;  %v8211_v48 = vld [vmem:[%s8645_s10 + $0xf4] sm:$0xf]  ;;  %v6541_v53 = vld [vmem:[%s8645_s10 + $0xf8] sm:$0xf0] }
 0x372   : > { %v3436_v39 = vadd.f32 %v3435_v13, %v3226_v20  ;;  %v3229_v61 = vpop.f32.mrf.mxu1  ;;  %v6124_v20 = vor.u32 %v8121_v51, %v6121_v21  ;;  %v7127_v51 = vld [vmem:[%s8645_s10 + $0x260] sm:$0xf]  ;;  %v8343_v21 = vld [vmem:[%s8645_s10 + $0x264] sm:$0xf] }
 0x373   : > { %v2382_v31 = vadd.f32 %v2195_v55, %v1243_v14  ;;  %v1244_v19 = vadd.f32 %v9689_v57, %v1058_v60  ;;  %v6544_v55 = vor.u32 %v8211_v48, %v6541_v53  ;;  %v8446_v60 = vld [vmem:[%s10997_s1 + $0xf8] sm:$0xff] }
 0x374   : > { %v9997_v23 = vadd.f32 %v3436_v39, %v9461_v11  ;;  %4240 = vmatpush.bf16.msra.mxu0 %v8446_v60  ;;  %v6129_v60 = vld [vmem:[%s8645_s10 + $0xe8] sm:$0xf0] }
 0x375   : > { %3268 = vmatmul.bf16.gmra.mxu1 %v7120_v17  ;;  %v10003_v52 = vadd.f32 %v11218_v25, %v2382_v31  ;;  %v11221_v31 = vld [vmem:[#allocation22_spill] sm:$0xff]  ;;  %v7129_v25 = vld [vmem:[%s8645_s10 + $0x268] sm:$0xf0] }
 0x376   : > { %11216 = vst [vmem:[#allocation6_spill] sm:$0xff] %v9997_v23  ;;  %7246 = vmatmul.msk.bf16.gmra.mxu3 %vm696_vm0, %v7124_v9  ;;  %v8535_v9 = vld [vmem:[%s10997_s1 + $0x140] sm:$0xff]  ;;  %v8376_v23 = vld [vmem:[%s8645_s10 + $0xb4] sm:$0xf0] }
 0x377   : > { %5380 = vmatpush.bf16.msra.mxu1 %v8535_v9 }
 0x378   : > { %v2196_v56 = vpop.f32.mrf.mxu2  ;;  %v1060_v14 = vpop.f32.mrf.mxu0 }
 0x379   : > { %v2197_v11 = vadd.f32 %v2196_v56, %v11219_v45  ;;  %v3438_v27 = vpop.f32.mrf.mxu3  ;;  %v1061_v34 = vadd.f32 %v1060_v14, %v11221_v31  ;;  %v11222_v56 = vld [vmem:[#allocation23_spill] sm:$0xff]  ;;  %v7132_v14 = vor.u32 %v8343_v21, %v7129_v25  ;;  %v8123_v31 = vld [vmem:[%s8645_s10 + $0xe4] sm:$0xf] }
 0x37a   : > { %v3439_v13 = vadd.f32 %v3438_v27, %v3229_v61  ;;  %v3231_v54 = vpop.f32.mrf.mxu1 }
 0x37b   : > { %v2383_v17 = vadd.f32 %v2197_v11, %v1244_v19  ;;  %6386 = vmatmul.msk.bf16.gmra.mxu0 %vm696_vm0, %v6124_v20  ;;  %v1245_v53 = vadd.f32 %v9689_v57, %v1061_v34 }
 0x37c   : > { %v10011_v39 = vadd.f32 %v3439_v13, %v9475_v46  ;;  %v8344_v46 = vld [vmem:[%s8645_s10 + $0x264] sm:$0xf0] }
 0x37d   : > { %6806 = vmatmul.msk.bf16.gmra.mxu2 %vm696_vm0, %v6544_v55  ;;  %v10023_v61 = vadd.f32 %v9447_v29, %v2383_v17  ;;  %v7128_v11 = vor.u32 %v8344_v46, %v7127_v51  ;;  %v11224_v17 = vld [vmem:[#allocation24_spill] sm:$0xff]  ;;  %v6132_v51 = vor.u32 %v8123_v31, %v6129_v60  ;;  %v11225_v46 = vld [vmem:[#allocation25_spill] sm:$0xff] }
 0x37e   : > { %11220 = vst [vmem:[#allocation7_spill] sm:$0xff] %v10011_v39  ;;  %v8345_v31 = vld [vmem:[%s8645_s10 + $0x274] sm:$0xf] }
 0x380   : > { %v2199_v48 = vpop.f32.mrf.mxu2  ;;  %v1062_v45 = vpop.f32.mrf.mxu0 }
 0x381   : > { %v2200_v20 = vadd.f32 %v2199_v48, %v11222_v56  ;;  %v3440_v19 = vpop.f32.mrf.mxu3  ;;  %v1063_v9 = vadd.f32 %v1062_v45, %v11224_v17  ;;  %v8213_v48 = vld [vmem:[%s8645_s10 + $0x104] sm:$0xf]  ;;  %v6549_v56 = vld [vmem:[%s8645_s10 + $0x108] sm:$0xf0]  ;;  %v7135_v17 = vld [vmem:[%s8645_s10 + $0x270] sm:$0xf] }
 0x382   : > { %v3441_v29 = vadd.f32 %v3440_v19, %v3231_v54  ;;  %v3234_v27 = vpop.f32.mrf.mxu1 }
 0x383   : > { %v2384_v55 = vadd.f32 %v2200_v20, %v1245_v53  ;;  %v6552_v20 = vor.u32 %v8213_v48, %v6549_v56 }
 0x384   : > { %v10032_v13 = vadd.f32 %v3441_v29, %v9487_v18  ;;  %v1246_v18 = vadd.f32 %v9689_v57, %v1063_v9  ;;  %v11227_v29 = vld [vmem:[#allocation26_spill] sm:$0xff]  ;;  %v8346_v9 = vld [vmem:[%s8645_s10 + $0x274] sm:$0xf0] }
 0x385   : > { %3273 = vmatmul.bf16.gmra.mxu1 %v7128_v11  ;;  %v10038_v34 = vadd.f32 %v9459_v59, %v2384_v55 }
 0x386   : > { %11223 = vst [vmem:[#allocation8_spill] sm:$0xff] %v10032_v13  ;;  %7247 = vmatmul.msk.bf16.gmra.mxu3 %vm696_vm0, %v7132_v14  ;;  %v8374_v13 = vld [vmem:[%s8645_s10 + $0xa4] sm:$0xf0] }
 0x388   : > { %v2201_v54 = vpop.f32.mrf.mxu2  ;;  %v1065_v53 = vpop.f32.mrf.mxu0 }
 0x389   : > { %v2202_v21 = vadd.f32 %v2201_v54, %v11225_v46  ;;  %v3443_v25 = vpop.f32.mrf.mxu3  ;;  %v1066_v14 = vadd.f32 %v1065_v53, %v11227_v29  ;;  %v6137_v29 = vld [vmem:[%s8645_s10 + $0xf8] sm:$0xf0] }
 0x38a   : > { %v3444_v19 = vadd.f32 %v3443_v25, %v3234_v27  ;;  %v3236_v59 = vpop.f32.mrf.mxu1  ;;  %v7137_v27 = vld [vmem:[%s8645_s10 + $0x278] sm:$0xf0] }
 0x38b   : > { %v2385_v45 = vadd.f32 %v2202_v21, %v1246_v18  ;;  %6387 = vmatmul.msk.bf16.gmra.mxu0 %vm696_vm0, %v6132_v51  ;;  %v1247_v48 = vadd.f32 %v9689_v57, %v1066_v14  ;;  %v7136_v18 = vor.u32 %v8346_v9, %v7135_v17  ;;  %v11231_v9 = vld [vmem:[#allocation29_spill] sm:$0xff] }
 0x38c   : > { %v10046_v11 = vadd.f32 %v3444_v19, %v9498_v6  ;;  %v11228_v6 = vld [vmem:[#allocation27_spill] sm:$0xff] }
 0x38d   : > { %6807 = vmatmul.msk.bf16.gmra.mxu2 %vm696_vm0, %v6552_v20  ;;  %v10052_v55 = vadd.f32 %v9473_v36, %v2385_v45  ;;  %v7140_v36 = vor.u32 %v8345_v31, %v7137_v27  ;;  %v11230_v20 = vld [vmem:[#allocation28_spill] sm:$0xff] }
 0x38e   : > { %11226 = vst [vmem:[#allocation9_spill] sm:$0xff] %v10046_v11  ;;  %v8125_v45 = vld [vmem:[%s8645_s10 + $0xf4] sm:$0xf] }
 0x38f   : > { %v6140_v17 = vor.u32 %v8125_v45, %v6137_v29  ;;  %v8347_v45 = vld [vmem:[%s8645_s10 + $0x284] sm:$0xf]  ;;  %v7145_v29 = vld [vmem:[%s8645_s10 + $0x288] sm:$0xf0] }
 0x390   : > { %v2204_v60 = vpop.f32.mrf.mxu2  ;;  %v1067_v51 = vpop.f32.mrf.mxu0 }
 0x391   : > { %v2205_v56 = vadd.f32 %v2204_v60, %v11228_v6  ;;  %v3445_v54 = vpop.f32.mrf.mxu3  ;;  %v1068_v19 = vadd.f32 %v1067_v51, %v11230_v20  ;;  %v8215_v60 = vld [vmem:[%s8645_s10 + $0x114] sm:$0xf]  ;;  %v6557_v6 = vld [vmem:[%s8645_s10 + $0x118] sm:$0xf0]  ;;  %v7143_v20 = vld [vmem:[%s8645_s10 + $0x280] sm:$0xf] }
 0x392   : > { %v3446_v46 = vadd.f32 %v3445_v54, %v3236_v59  ;;  %v3239_v21 = vpop.f32.mrf.mxu1 }
 0x393   : > { %v2386_v25 = vadd.f32 %v2205_v56, %v1247_v48  ;;  %v6560_v56 = vor.u32 %v8215_v60, %v6557_v6 }
 0x394   : > { %v10061_v53 = vadd.f32 %v3446_v46, %v9510_v15  ;;  %v1248_v15 = vadd.f32 %v9689_v57, %v1068_v19  ;;  %v11233_v46 = vld [vmem:[#allocation30_spill] sm:$0xff]  ;;  %v8348_v19 = vld [vmem:[%s8645_s10 + $0x284] sm:$0xf0] }
 0x395   : > { %3278 = vmatmul.bf16.gmra.mxu1 %v7136_v18  ;;  %v10067_v14 = vadd.f32 %v9485_v42, %v2386_v25 }
 0x396   : > { %11229 = vst [vmem:[#allocation10_spill] sm:$0xff] %v10061_v53  ;;  %7248 = vmatmul.msk.bf16.gmra.mxu3 %vm696_vm0, %v7140_v36  ;;  %v8372_v53 = vld [vmem:[%s8645_s10 + $0x94] sm:$0xf0] }
 0x398   : > { %v2206_v59 = vpop.f32.mrf.mxu2  ;;  %v1070_v48 = vpop.f32.mrf.mxu0 }
 0x399   : > { %v2207_v31 = vadd.f32 %v2206_v59, %v11231_v9  ;;  %v3448_v27 = vpop.f32.mrf.mxu3  ;;  %v1071_v36 = vadd.f32 %v1070_v48, %v11233_v46  ;;  %v6145_v46 = vld [vmem:[%s8645_s10 + $0x108] sm:$0xf0] }
 0x39a   : > { %v3449_v54 = vadd.f32 %v3448_v27, %v3239_v21  ;;  %v3241_v42 = vpop.f32.mrf.mxu1 }
 0x39b   : > { %v2387_v51 = vadd.f32 %v2207_v31, %v1248_v15  ;;  %6388 = vmatmul.msk.bf16.gmra.mxu0 %vm696_vm0, %v6140_v17  ;;  %v1249_v60 = vadd.f32 %v9689_v57, %v1071_v36  ;;  %v7144_v15 = vor.u32 %v8348_v19, %v7143_v20  ;;  %v6565_v20 = vld [vmem:[%s8645_s10 + $0x128] sm:$0xf0] }
 0x39c   : > { %v10075_v18 = vadd.f32 %v3449_v54, %v9521_v58  ;;  %v11234_v58 = vld [vmem:[#allocation31_spill] sm:$0xff]  ;;  %v11236_v54 = vld [vmem:[#allocation32_spill] sm:$0xff] }
 0x39d   : > { %6808 = vmatmul.msk.bf16.gmra.mxu2 %vm696_vm0, %v6560_v56  ;;  %v10081_v25 = vadd.f32 %v9496_v22, %v2387_v51  ;;  %v7148_v22 = vor.u32 %v8347_v45, %v7145_v29  ;;  %v8445_v56 = vld [vmem:[%s10997_s1 + $0xf0] sm:$0xff]  ;;  %v8127_v51 = vld [vmem:[%s8645_s10 + $0x104] sm:$0xf]  ;;  %v10107_v45 = vld [vmem:[%s10998_s2] ss:$0 sm:$0xff] }
 0x39e   : > { %11232 = vst [vmem:[#allocation11_spill] sm:$0xff] %v10075_v18  ;;  %4241 = vmatpush.bf16.msra.mxu0 %v8445_v56 }
 0x3a0   : > { %v2209_v21 = vpop.f32.mrf.mxu2  ;;  %v1072_v17 = vpop.f32.mrf.mxu0 }
 0x3a1   : > { %v2210_v6 = vadd.f32 %v2209_v21, %v11234_v58  ;;  %v3450_v59 = vpop.f32.mrf.mxu3  ;;  %v1073_v57 = vadd.f32 %v1072_v17, %v11236_v54  ;;  %v11237_v21 = vld [vmem:[#allocation33_spill] sm:$0xff]  ;;  %v7151_v54 = vld [vmem:[%s8645_s10 + $0x290] sm:$0xf] }
 0x3a2   : > { %v3451_v9 = vadd.f32 %v3450_v59, %v3241_v42  ;;  %v3244_v31 = vpop.f32.mrf.mxu1  ;;  %v8217_v42 = vld [vmem:[%s8645_s10 + $0x124] sm:$0xf] }
 0x3a3   : > { %v2388_v27 = vadd.f32 %v2210_v6, %v1249_v60  ;;  %v1250_v29 = vadd.f32 %v10107_v45, %v1073_v57  ;;  %v6568_v6 = vor.u32 %v8217_v42, %v6565_v20  ;;  %v8350_v57 = vld [vmem:[%s8645_s10 + $0x294] sm:$0xf0] }
 0x3a4   : > { %v10090_v48 = vadd.f32 %v3451_v9, %v9533_v16  ;;  %v6148_v16 = vor.u32 %v8127_v51, %v6145_v46  ;;  %v8349_v51 = vld [vmem:[%s8645_s10 + $0x294] sm:$0xf] }
 0x3a5   : > { %3283 = vmatmul.bf16.gmra.mxu1 %v7144_v15  ;;  %v10099_v36 = vadd.f32 %v9508_v3, %v2388_v27 }
 0x3a6   : > { %11235 = vst [vmem:[#allocation12_spill] sm:$0xff] %v10090_v48  ;;  %7249 = vmatmul.msk.bf16.gmra.mxu3 %vm696_vm0, %v7148_v22  ;;  %v11239_v22 = vld [vmem:[#allocation34_spill] sm:$0xff]  ;;  %v8370_v48 = vld [vmem:[%s8645_s10 + $0x84] sm:$0xf0] }
 0x3a8   : > { %v2211_v19 = vpop.f32.mrf.mxu2  ;;  %v1075_v58 = vpop.f32.mrf.mxu0 }
 0x3a9   : > { %v2212_v3 = vadd.f32 %v2211_v19, %v11237_v21  ;;  %v3453_v60 = vpop.f32.mrf.mxu3  ;;  %v1076_v27 = vadd.f32 %v1075_v58, %v11239_v22  ;;  %v6153_v22 = vld [vmem:[%s8645_s10 + $0x118] sm:$0xf0] }
 0x3aa   : > { %v3454_v59 = vadd.f32 %v3453_v60, %v3244_v31  ;;  %v3246_v17 = vpop.f32.mrf.mxu1  ;;  %v7153_v31 = vld [vmem:[%s8645_s10 + $0x298] sm:$0xf0] }
 0x3ab   : > { %v2389_v15 = vadd.f32 %v2212_v3, %v1250_v29  ;;  %6389 = vmatmul.msk.bf16.gmra.mxu0 %vm696_vm0, %v6148_v16  ;;  %v1251_v42 = vadd.f32 %v10107_v45, %v1076_v27  ;;  %v7152_v29 = vor.u32 %v8350_v57, %v7151_v54  ;;  %v11243_v57 = vld [vmem:[#allocation37_spill] sm:$0xff] }
 0x3ac   : > { %v10112_v9 = vadd.f32 %v3454_v59, %v9544_v37  ;;  %v11240_v37 = vld [vmem:[#allocation35_spill] sm:$0xff] }
 0x3ad   : > { %6809 = vmatmul.msk.bf16.gmra.mxu2 %vm696_vm0, %v6568_v6  ;;  %v10118_v56 = vadd.f32 %v9519_v28, %v2389_v15  ;;  %v7156_v28 = vor.u32 %v8349_v51, %v7153_v31  ;;  %v11242_v6 = vld [vmem:[#allocation36_spill] sm:$0xff] }
 0x3ae   : > { %11238 = vst [vmem:[#allocation13_spill] sm:$0xff] %v10112_v9  ;;  %v8129_v15 = vld [vmem:[%s8645_s10 + $0x114] sm:$0xf] }
 0x3af   : > { %v6156_v54 = vor.u32 %v8129_v15, %v6153_v22  ;;  %v8351_v15 = vld [vmem:[%s8645_s10 + $0x2a4] sm:$0xf] }
 0x3b0   : > { %v2214_v46 = vpop.f32.mrf.mxu2  ;;  %v1077_v16 = vpop.f32.mrf.mxu0 }
 0x3b1   : > { %v2215_v20 = vadd.f32 %v2214_v46, %v11240_v37  ;;  %v3455_v19 = vpop.f32.mrf.mxu3  ;;  %v1078_v59 = vadd.f32 %v1077_v16, %v11242_v6  ;;  %v8219_v46 = vld [vmem:[%s8645_s10 + $0x134] sm:$0xf]  ;;  %v6573_v37 = vld [vmem:[%s8645_s10 + $0x138] sm:$0xf0]  ;;  %v7159_v6 = vld [vmem:[%s8645_s10 + $0x2a0] sm:$0xf] }
 0x3b2   : > { %v3456_v21 = vadd.f32 %v3455_v19, %v3246_v17  ;;  %v3249_v3 = vpop.f32.mrf.mxu1 }
 0x3b3   : > { %v2390_v60 = vadd.f32 %v2215_v20, %v1251_v42  ;;  %v6576_v20 = vor.u32 %v8219_v46, %v6573_v37 }
 0x3b4   : > { %v10127_v58 = vadd.f32 %v3456_v21, %v9556_v41  ;;  %v1252_v41 = vadd.f32 %v10107_v45, %v1078_v59  ;;  %v11245_v21 = vld [vmem:[#allocation38_spill] sm:$0xff]  ;;  %v8352_v59 = vld [vmem:[%s8645_s10 + $0x2a4] sm:$0xf0] }
 0x3b5   : > { %3288 = vmatmul.bf16.gmra.mxu1 %v7152_v29  ;;  %v10133_v27 = vadd.f32 %v9531_v24, %v2390_v60 }
 0x3b6   : > { %11241 = vst [vmem:[#allocation14_spill] sm:$0xff] %v10127_v58  ;;  %7250 = vmatmul.msk.bf16.gmra.mxu3 %vm696_vm0, %v7156_v28  ;;  %v8368_v58 = vld [vmem:[%s8645_s10 + $0x74] sm:$0xf0] }
 0x3b8   : > { %v2216_v17 = vpop.f32.mrf.mxu2  ;;  %v1080_v42 = vpop.f32.mrf.mxu0 }
 0x3b9   : > { %v2217_v51 = vadd.f32 %v2216_v17, %v11243_v57  ;;  %v3458_v31 = vpop.f32.mrf.mxu3  ;;  %v1081_v28 = vadd.f32 %v1080_v42, %v11245_v21  ;;  %v6161_v21 = vld [vmem:[%s8645_s10 + $0x128] sm:$0xf0] }
 0x3ba   : > { %v3459_v19 = vadd.f32 %v3458_v31, %v3249_v3  ;;  %v3251_v24 = vpop.f32.mrf.mxu1  ;;  %v7161_v3 = vld [vmem:[%s8645_s10 + $0x2a8] sm:$0xf0] }
 0x3bb   : > { %v2391_v16 = vadd.f32 %v2217_v51, %v1252_v41  ;;  %6390 = vmatmul.msk.bf16.gmra.mxu0 %vm696_vm0, %v6156_v54  ;;  %v1253_v46 = vadd.f32 %v10107_v45, %v1081_v28  ;;  %v7160_v41 = vor.u32 %v8352_v59, %v7159_v6  ;;  %v11249_v59 = vld [vmem:[#allocation41_spill] sm:$0xff] }
 0x3bc   : > { %v10141_v29 = vadd.f32 %v3459_v19, %v9567_v50  ;;  %v11246_v50 = vld [vmem:[#allocation39_spill] sm:$0xff] }
 0x3bd   : > { %6810 = vmatmul.msk.bf16.gmra.mxu2 %vm696_vm0, %v6576_v20  ;;  %v10147_v60 = vadd.f32 %v9542_v62, %v2391_v16  ;;  %v7164_v62 = vor.u32 %v8351_v15, %v7161_v3  ;;  %v11248_v20 = vld [vmem:[#allocation40_spill] sm:$0xff]  ;;  %v8131_v16 = vld [vmem:[%s8645_s10 + $0x124] sm:$0xf] }
 0x3be   : > { %11244 = vst [vmem:[#allocation15_spill] sm:$0xff] %v10141_v29  ;;  %v6164_v6 = vor.u32 %v8131_v16, %v6161_v21  ;;  %v8354_v16 = vld [vmem:[%s8645_s10 + $0x2b4] sm:$0xf0]  ;;  %v8353_v21 = vld [vmem:[%s8645_s10 + $0x2b4] sm:$0xf] }
 0x3c0   : > { %v2219_v22 = vpop.f32.mrf.mxu2  ;;  %v1082_v54 = vpop.f32.mrf.mxu0 }
 0x3c1   : > { %v2220_v37 = vadd.f32 %v2219_v22, %v11246_v50  ;;  %v3460_v17 = vpop.f32.mrf.mxu3  ;;  %v1083_v19 = vadd.f32 %v1082_v54, %v11248_v20  ;;  %v8221_v22 = vld [vmem:[%s8645_s10 + $0x144] sm:$0xf]  ;;  %v6581_v50 = vld [vmem:[%s8645_s10 + $0x148] sm:$0xf0] }
 0x3c2   : > { %v3461_v57 = vadd.f32 %v3460_v17, %v3251_v24  ;;  %v3254_v51 = vpop.f32.mrf.mxu1 }
 0x3c3   : > { %v2392_v31 = vadd.f32 %v2220_v37, %v1253_v46  ;;  %v6584_v37 = vor.u32 %v8221_v22, %v6581_v50 }
 0x3c4   : > { %v10156_v42 = vadd.f32 %v3461_v57, %v9582_v26  ;;  %v1254_v26 = vadd.f32 %v10107_v45, %v1083_v19  ;;  %v11251_v57 = vld [vmem:[#allocation42_spill] sm:$0xff]  ;;  %v7167_v19 = vld [vmem:[%s8645_s10 + $0x2b0] sm:$0xf] }
 0x3c5   : > { %3293 = vmatmul.bf16.gmra.mxu1 %v7160_v41  ;;  %v10162_v28 = vadd.f32 %v9554_v32, %v2392_v31  ;;  %v11252_v31 = vld [vmem:[#allocation117_spill] sm:$0xff] }
 0x3c6   : > { %11247 = vst [vmem:[#allocation16_spill] sm:$0xff] %v10156_v42  ;;  %7251 = vmatmul.msk.bf16.gmra.mxu3 %vm696_vm0, %v7164_v62  ;;  %v8366_v42 = vld [vmem:[%s8645_s10 + $0x64] sm:$0xf0] }
 0x3c8   : > { %v2221_v24 = vpop.f32.mrf.mxu2  ;;  %v1085_v46 = vpop.f32.mrf.mxu0 }
 0x3c9   : > { %v2222_v15 = vadd.f32 %v2221_v24, %v11249_v59  ;;  %v3463_v3 = vpop.f32.mrf.mxu3  ;;  %v1086_v62 = vadd.f32 %v1085_v46, %v11251_v57  ;;  %v7168_v59 = vor.u32 %v8354_v16, %v7167_v19  ;;  %v11256_v57 = vld [vmem:[#allocation46_spill] sm:$0xff] }
 0x3ca   : > { %v3464_v17 = vadd.f32 %v3463_v3, %v3254_v51  ;;  %v3256_v32 = vpop.f32.mrf.mxu1  ;;  %v7169_v51 = vld [vmem:[%s8645_s10 + $0x2b8] sm:$0xf0] }
 0x3cb   : > { %v2393_v54 = vadd.f32 %v2222_v15, %v1254_v26  ;;  %6391 = vmatmul.msk.bf16.gmra.mxu0 %vm696_vm0, %v6164_v6  ;;  %v1255_v50 = vadd.f32 %v10107_v45, %v1086_v62  ;;  %v7172_v46 = vor.u32 %v8353_v21, %v7169_v51  ;;  %v11257_v62 = vld [vmem:[#allocation118_spill] sm:$0xff]  ;;  %v11258_v21 = vld [vmem:[#allocation48_spill] sm:$0xff] }
 0x3cc   : > { %v10170_v41 = vadd.f32 %v3464_v17, %v9596_v44  ;;  %v11253_v44 = vld [vmem:[#allocation44_spill] sm:$0xff]  ;;  %v11254_v17 = vld [vmem:[#allocation45_spill] sm:$0xff] }
 0x3cd   : > { %6811 = vmatmul.msk.bf16.gmra.mxu2 %vm696_vm0, %v6584_v37  ;;  %v10176_v20 = vadd.f32 %v11252_v31, %v2393_v54 }
 0x3ce   : > { %11250 = vst [vmem:[#allocation17_spill] sm:$0xff] %v10170_v41  ;;  %v7275_v41 = vld [vmem:[%s8645_s10 + $0x60] sm:$0xf] }
 0x3cf   : > { %v7276_v19 = vor.u32 %v8366_v42, %v7275_v41  ;;  %v11262_v42 = vld [vmem:[#allocation119_spill] sm:$0xff] }
 0x3d0   : > { %v2224_v22 = vpop.f32.mrf.mxu2  ;;  %v1087_v26 = vpop.f32.mrf.mxu0 }
 0x3d1   : > { %v2225_v24 = vadd.f32 %v2224_v22, %v11253_v44  ;;  %v3465_v6 = vpop.f32.mrf.mxu3  ;;  %v1088_v31 = vadd.f32 %v1087_v26, %v11256_v57  ;;  %v8365_v22 = vld [vmem:[%s8645_s10 + $0x64] sm:$0xf]  ;;  %v7277_v44 = vld [vmem:[%s8645_s10 + $0x68] sm:$0xf0] }
 0x3d2   : > { %v3466_v15 = vadd.f32 %v3465_v6, %v3256_v32  ;;  %v3259_v3 = vpop.f32.mrf.mxu1  ;;  %v7280_v6 = vor.u32 %v8365_v22, %v7277_v44  ;;  %v7697_v22 = vld [vmem:[%s8645_s10 + $0x88] sm:$0xf0] }
 0x3d3   : > { %v2394_v37 = vadd.f32 %v2225_v24, %v1255_v50  ;;  %v1256_v16 = vadd.f32 %v10107_v45, %v1088_v31  ;;  %v7695_v31 = vld [vmem:[%s8645_s10 + $0x80] sm:$0xf] }
 0x3d4   : > { %v10185_v54 = vadd.f32 %v3466_v15, %v11254_v17  ;;  %v11261_v17 = vld [vmem:[#allocation50_spill] sm:$0xff] }
 0x3d5   : > { %3298 = vmatmul.bf16.gmra.mxu1 %v7168_v59  ;;  %v10191_v29 = vadd.f32 %v11257_v62, %v2394_v37  ;;  %v11259_v37 = vld [vmem:[#allocation49_spill] sm:$0xff]  ;;  %v8456_v62 = vld [vmem:[%s8645_s10 + $0x84] sm:$0xf0] }
 0x3d6   : > { %11255 = vst [vmem:[#allocation18_spill] sm:$0xff] %v10185_v54  ;;  %7252 = vmatmul.msk.bf16.gmra.mxu3 %vm696_vm0, %v7172_v46  ;;  %v7283_v54 = vld [vmem:[%s8645_s10 + $0x70] sm:$0xf] }
 0x3d8   : > { %v2226_v32 = vpop.f32.mrf.mxu2  ;;  %v1090_v24 = vpop.f32.mrf.mxu0 }
 0x3d9   : > { %v2227_v51 = vadd.f32 %v2226_v32, %v11258_v21  ;;  %v3468_v50 = vpop.f32.mrf.mxu3  ;;  %v1091_v57 = vadd.f32 %v1090_v24, %v11261_v17  ;;  %v8455_v32 = vld [vmem:[%s8645_s10 + $0x84] sm:$0xf] }
 0x3da   : > { %v3469_v26 = vadd.f32 %v3468_v50, %v3259_v3  ;;  %v3261_v59 = vpop.f32.mrf.mxu1  ;;  %v7696_v50 = vor.u32 %v8456_v62, %v7695_v31  ;;  %v7284_v31 = vor.u32 %v8368_v58, %v7283_v54  ;;  %v11272_v58 = vld [vmem:[#allocation47_spill] sm:$0xff] }
 0x3db   : > { %v2395_v15 = vadd.f32 %v2227_v51, %v1256_v16  ;;  %4242 = vmatmul.bf16.vlgmr.msra.gmra.mxu0 %v7276_v19  ;;  %v1257_v44 = vadd.f32 %v10107_v45, %v1091_v57  ;;  %v11263_v16 = vld [vmem:[#allocation52_spill] sm:$0xff]  ;;  %v11267_v57 = vld [vmem:[#allocation43_spill] sm:$0xff] }
 0x3dc   : > { %v10199_v46 = vadd.f32 %v3469_v26, %v11259_v37  ;;  %v7700_v26 = vor.u32 %v8455_v32, %v7697_v22  ;;  %v11264_v37 = vld [vmem:[#allocation53_spill] sm:$0xff]  ;;  %v11268_v32 = vld [vmem:[#allocation56_spill] sm:$0xff] }
 0x3dd   : > { %7633 = vmatmul.msk.bf16.vlgmr.msra.gmra.mxu2 %vm696_vm0, %v7280_v6  ;;  %v10204_v41 = vadd.f32 %v11262_v42, %v2395_v15  ;;  %v11266_v42 = vld [vmem:[#allocation54_spill] sm:$0xff] }
 0x3de   : > { %11260 = vst [vmem:[#allocation19_spill] sm:$0xff] %v10199_v46 }
 0x3e0   : > { %v2229_v3 = vpop.f32.mrf.mxu2  ;;  %v1092_v51 = vpop.f32.mrf.mxu0 }
 0x3e1   : > { %v2230_v21 = vadd.f32 %v2229_v3, %v11263_v16  ;;  %v3470_v19 = vpop.f32.mrf.mxu3  ;;  %v1093_v46 = vadd.f32 %v1092_v51, %v11266_v42  ;;  %v8367_v3 = vld [vmem:[%s8645_s10 + $0x74] sm:$0xf]  ;;  %v7285_v16 = vld [vmem:[%s8645_s10 + $0x78] sm:$0xf0] }
 0x3e2   : > { %v3471_v24 = vadd.f32 %v3470_v19, %v3261_v59  ;;  %v3264_v6 = vpop.f32.mrf.mxu1  ;;  %v7288_v19 = vor.u32 %v8367_v3, %v7285_v16  ;;  %v7705_v3 = vld [vmem:[%s8645_s10 + $0x98] sm:$0xf0] }
 0x3e3   : > { %v2396_v15 = vadd.f32 %v2230_v21, %v1257_v44  ;;  %v1258_v62 = vadd.f32 %v10107_v45, %v1093_v46  ;;  %v7703_v46 = vld [vmem:[%s8645_s10 + $0x90] sm:$0xf] }
 0x3e4   : > { %v10213_v17 = vadd.f32 %v3471_v24, %v11264_v37  ;;  %v11271_v37 = vld [vmem:[#allocation58_spill] sm:$0xff] }
 0x3e5   : > { %5381 = vmatmul.bf16.vlgmr.msra.gmra.mxu1 %v7696_v50  ;;  %v10219_v9 = vadd.f32 %v11267_v57, %v2396_v15  ;;  %v11269_v15 = vld [vmem:[#allocation57_spill] sm:$0xff] }
 0x3e6   : > { %11265 = vst [vmem:[#allocation20_spill] sm:$0xff] %v10213_v17  ;;  %8053 = vmatmul.msk.bf16.vlgmr.msra.gmra.mxu3 %vm696_vm0, %v7700_v26  ;;  %v8458_v57 = vld [vmem:[%s8645_s10 + $0x94] sm:$0xf0]  ;;  %v7291_v17 = vld [vmem:[%s8645_s10 + $0x80] sm:$0xf] }
 0x3e8   : > { %v2231_v59 = vpop.f32.mrf.mxu2  ;;  %v1095_v21 = vpop.f32.mrf.mxu0 }
 0x3e9   : > { %v2232_v22 = vadd.f32 %v2231_v59, %v11268_v32  ;;  %v3473_v44 = vpop.f32.mrf.mxu3  ;;  %v1096_v42 = vadd.f32 %v1095_v21, %v11271_v37  ;;  %v8457_v59 = vld [vmem:[%s8645_s10 + $0x94] sm:$0xf] }
 0x3ea   : > { %v3474_v51 = vadd.f32 %v3473_v44, %v3264_v6  ;;  %v3266_v50 = vpop.f32.mrf.mxu1  ;;  %v7704_v44 = vor.u32 %v8458_v57, %v7703_v46  ;;  %v7292_v46 = vor.u32 %v8370_v48, %v7291_v17  ;;  %v11282_v48 = vld [vmem:[#allocation55_spill] sm:$0xff] }
 0x3eb   : > { %v2397_v24 = vadd.f32 %v2232_v22, %v1258_v62  ;;  %4247 = vmatmul.bf16.gmra.mxu0 %v7284_v31  ;;  %v1259_v16 = vadd.f32 %v10107_v45, %v1096_v42  ;;  %v11273_v62 = vld [vmem:[#allocation60_spill] sm:$0xff]  ;;  %v11277_v42 = vld [vmem:[#allocation51_spill] sm:$0xff] }
 0x3ec   : > { %v10227_v26 = vadd.f32 %v3474_v51, %v11269_v15  ;;  %v7708_v51 = vor.u32 %v8457_v59, %v7705_v3  ;;  %v11274_v15 = vld [vmem:[#allocation61_spill] sm:$0xff]  ;;  %v11278_v59 = vld [vmem:[#allocation64_spill] sm:$0xff] }
 0x3ed   : > { %7634 = vmatmul.msk.bf16.gmra.mxu2 %vm696_vm0, %v7288_v19  ;;  %v10232_v54 = vadd.f32 %v11272_v58, %v2397_v24  ;;  %v11276_v58 = vld [vmem:[#allocation62_spill] sm:$0xff] }
 0x3ee   : > { %11270 = vst [vmem:[#allocation116_spill] sm:$0xff] %v10227_v26 }
 0x3f0   : > { %v2234_v6 = vpop.f32.mrf.mxu2  ;;  %v1097_v22 = vpop.f32.mrf.mxu0 }
 0x3f1   : > { %v2235_v32 = vadd.f32 %v2234_v6, %v11273_v62  ;;  %v3475_v31 = vpop.f32.mrf.mxu3  ;;  %v1098_v26 = vadd.f32 %v1097_v22, %v11276_v58  ;;  %v8369_v6 = vld [vmem:[%s8645_s10 + $0x84] sm:$0xf]  ;;  %v7293_v62 = vld [vmem:[%s8645_s10 + $0x88] sm:$0xf0] }
 0x3f2   : > { %v3476_v21 = vadd.f32 %v3475_v31, %v3266_v50  ;;  %v3269_v19 = vpop.f32.mrf.mxu1  ;;  %v7296_v31 = vor.u32 %v8369_v6, %v7293_v62  ;;  %v7713_v6 = vld [vmem:[%s8645_s10 + $0xa8] sm:$0xf0] }
 0x3f3   : > { %v2398_v24 = vadd.f32 %v2235_v32, %v1259_v16  ;;  %v1260_v57 = vadd.f32 %v10107_v45, %v1098_v26  ;;  %v7711_v26 = vld [vmem:[%s8645_s10 + $0xa0] sm:$0xf] }
 0x3f4   : > { %v10241_v37 = vadd.f32 %v3476_v21, %v11274_v15  ;;  %v11281_v15 = vld [vmem:[#allocation66_spill] sm:$0xff] }
 0x3f5   : > { %5386 = vmatmul.bf16.gmra.mxu1 %v7704_v44  ;;  %v10247_v18 = vadd.f32 %v11277_v42, %v2398_v24  ;;  %v11279_v24 = vld [vmem:[#allocation65_spill] sm:$0xff]  ;;  %v8460_v42 = vld [vmem:[%s8645_s10 + $0xa4] sm:$0xf0] }
 0x3f6   : > { %11275 = vst [vmem:[#allocation21_spill] sm:$0xff] %v10241_v37  ;;  %8054 = vmatmul.msk.bf16.gmra.mxu3 %vm696_vm0, %v7708_v51  ;;  %v7299_v37 = vld [vmem:[%s8645_s10 + $0x90] sm:$0xf] }
 0x3f8   : > { %v2236_v50 = vpop.f32.mrf.mxu2  ;;  %v1100_v32 = vpop.f32.mrf.mxu0 }
 0x3f9   : > { %v2237_v3 = vadd.f32 %v2236_v50, %v11278_v59  ;;  %v3478_v16 = vpop.f32.mrf.mxu3  ;;  %v1101_v58 = vadd.f32 %v1100_v32, %v11281_v15  ;;  %v8459_v50 = vld [vmem:[%s8645_s10 + $0xa4] sm:$0xf] }
 0x3fa   : > { %v3479_v22 = vadd.f32 %v3478_v16, %v3269_v19  ;;  %v3271_v44 = vpop.f32.mrf.mxu1  ;;  %v7712_v16 = vor.u32 %v8460_v42, %v7711_v26  ;;  %v7300_v26 = vor.u32 %v8372_v53, %v7299_v37  ;;  %v11292_v53 = vld [vmem:[#allocation63_spill] sm:$0xff] }
 0x3fb   : > { %v2399_v21 = vadd.f32 %v2237_v3, %v1260_v57  ;;  %4252 = vmatmul.bf16.gmra.mxu0 %v7292_v46  ;;  %v1261_v62 = vadd.f32 %v10107_v45, %v1101_v58  ;;  %v11283_v57 = vld [vmem:[#allocation68_spill] sm:$0xff]  ;;  %v11287_v58 = vld [vmem:[#allocation59_spill] sm:$0xff] }
 0x3fc   : > { %v10255_v51 = vadd.f32 %v3479_v22, %v11279_v24  ;;  %v7716_v22 = vor.u32 %v8459_v50, %v7713_v6  ;;  %v11284_v24 = vld [vmem:[#allocation69_spill] sm:$0xff]  ;;  %v11288_v50 = vld [vmem:[#allocation72_spill] sm:$0xff] }
 0x3fd   : > { %7635 = vmatmul.msk.bf16.gmra.mxu2 %vm696_vm0, %v7296_v31  ;;  %v10260_v17 = vadd.f32 %v11282_v48, %v2399_v21  ;;  %v11286_v48 = vld [vmem:[#allocation70_spill] sm:$0xff] }
 0x3fe   : > { %11280 = vst [vmem:[#allocation22_spill] sm:$0xff] %v10255_v51 }
 0x400   : > { %v2239_v19 = vpop.f32.mrf.mxu2  ;;  %v1102_v3 = vpop.f32.mrf.mxu0 }
 0x401   : > { %v2240_v59 = vadd.f32 %v2239_v19, %v11283_v57  ;;  %v3480_v46 = vpop.f32.mrf.mxu3  ;;  %v1103_v51 = vadd.f32 %v1102_v3, %v11286_v48  ;;  %v8371_v19 = vld [vmem:[%s8645_s10 + $0x94] sm:$0xf]  ;;  %v7301_v57 = vld [vmem:[%s8645_s10 + $0x98] sm:$0xf0] }
 0x402   : > { %v3481_v32 = vadd.f32 %v3480_v46, %v3271_v44  ;;  %v3274_v31 = vpop.f32.mrf.mxu1  ;;  %v7304_v46 = vor.u32 %v8371_v19, %v7301_v57  ;;  %v7721_v19 = vld [vmem:[%s8645_s10 + $0xb8] sm:$0xf0] }
 0x403   : > { %v2400_v21 = vadd.f32 %v2240_v59, %v1261_v62  ;;  %v1262_v42 = vadd.f32 %v10107_v45, %v1103_v51  ;;  %v7719_v51 = vld [vmem:[%s8645_s10 + $0xb0] sm:$0xf] }
 0x404   : > { %v10269_v15 = vadd.f32 %v3481_v32, %v11284_v24  ;;  %v11291_v24 = vld [vmem:[#allocation74_spill] sm:$0xff] }
 0x405   : > { %5391 = vmatmul.bf16.gmra.mxu1 %v7712_v16  ;;  %v10275_v11 = vadd.f32 %v11287_v58, %v2400_v21  ;;  %v11289_v21 = vld [vmem:[#allocation73_spill] sm:$0xff] }
 0x406   : > { %11285 = vst [vmem:[#allocation23_spill] sm:$0xff] %v10269_v15  ;;  %8055 = vmatmul.msk.bf16.gmra.mxu3 %vm696_vm0, %v7716_v22  ;;  %v8462_v58 = vld [vmem:[%s8645_s10 + $0xb4] sm:$0xf0]  ;;  %v7307_v15 = vld [vmem:[%s8645_s10 + $0xa0] sm:$0xf] }
 0x408   : > { %v2241_v44 = vpop.f32.mrf.mxu2  ;;  %v1105_v59 = vpop.f32.mrf.mxu0 }
 0x409   : > { %v2242_v6 = vadd.f32 %v2241_v44, %v11288_v50  ;;  %v3483_v62 = vpop.f32.mrf.mxu3  ;;  %v1106_v48 = vadd.f32 %v1105_v59, %v11291_v24  ;;  %v8461_v44 = vld [vmem:[%s8645_s10 + $0xb4] sm:$0xf] }
 0x40a   : > { %v3484_v3 = vadd.f32 %v3483_v62, %v3274_v31  ;;  %v3276_v16 = vpop.f32.mrf.mxu1  ;;  %v7720_v62 = vor.u32 %v8462_v58, %v7719_v51  ;;  %v7308_v51 = vor.u32 %v8374_v13, %v7307_v15  ;;  %v11302_v13 = vld [vmem:[#allocation71_spill] sm:$0xff] }
 0x40b   : > { %v2401_v32 = vadd.f32 %v2242_v6, %v1262_v42  ;;  %4257 = vmatmul.bf16.gmra.mxu0 %v7300_v26  ;;  %v1263_v57 = vadd.f32 %v10107_v45, %v1106_v48  ;;  %v11293_v42 = vld [vmem:[#allocation76_spill] sm:$0xff]  ;;  %v11297_v48 = vld [vmem:[#allocation67_spill] sm:$0xff] }
 0x40c   : > { %v10283_v22 = vadd.f32 %v3484_v3, %v11289_v21  ;;  %v7724_v3 = vor.u32 %v8461_v44, %v7721_v19  ;;  %v11294_v21 = vld [vmem:[#allocation77_spill] sm:$0xff]  ;;  %v11298_v44 = vld [vmem:[#allocation80_spill] sm:$0xff] }
 0x40d   : > { %7636 = vmatmul.msk.bf16.gmra.mxu2 %vm696_vm0, %v7304_v46  ;;  %v10288_v37 = vadd.f32 %v11292_v53, %v2401_v32  ;;  %v11296_v53 = vld [vmem:[#allocation78_spill] sm:$0xff] }
 0x40e   : > { %11290 = vst [vmem:[#allocation24_spill] sm:$0xff] %v10283_v22 }
 0x410   : > { %v2244_v31 = vpop.f32.mrf.mxu2  ;;  %v1107_v6 = vpop.f32.mrf.mxu0 }
 0x411   : > { %v2245_v50 = vadd.f32 %v2244_v31, %v11293_v42  ;;  %v3485_v26 = vpop.f32.mrf.mxu3  ;;  %v1108_v22 = vadd.f32 %v1107_v6, %v11296_v53  ;;  %v8373_v31 = vld [vmem:[%s8645_s10 + $0xa4] sm:$0xf]  ;;  %v7309_v42 = vld [vmem:[%s8645_s10 + $0xa8] sm:$0xf0] }
 0x412   : > { %v3486_v59 = vadd.f32 %v3485_v26, %v3276_v16  ;;  %v3279_v46 = vpop.f32.mrf.mxu1  ;;  %v7312_v26 = vor.u32 %v8373_v31, %v7309_v42  ;;  %v7729_v31 = vld [vmem:[%s8645_s10 + $0xc8] sm:$0xf0] }
 0x413   : > { %v2402_v32 = vadd.f32 %v2245_v50, %v1263_v57  ;;  %v1264_v58 = vadd.f32 %v10107_v45, %v1108_v22  ;;  %v7727_v22 = vld [vmem:[%s8645_s10 + $0xc0] sm:$0xf] }
 0x414   : > { %v10297_v24 = vadd.f32 %v3486_v59, %v11294_v21  ;;  %v11301_v21 = vld [vmem:[#allocation82_spill] sm:$0xff] }
 0x415   : > { %5396 = vmatmul.bf16.gmra.mxu1 %v7720_v62  ;;  %v10303_v39 = vadd.f32 %v11297_v48, %v2402_v32  ;;  %v11299_v32 = vld [vmem:[#allocation81_spill] sm:$0xff]  ;;  %v8464_v48 = vld [vmem:[%s8645_s10 + $0xc4] sm:$0xf0] }
 0x416   : > { %11295 = vst [vmem:[#allocation25_spill] sm:$0xff] %v10297_v24  ;;  %8056 = vmatmul.msk.bf16.gmra.mxu3 %vm696_vm0, %v7724_v3  ;;  %v7315_v24 = vld [vmem:[%s8645_s10 + $0xb0] sm:$0xf] }
 0x418   : > { %v2246_v16 = vpop.f32.mrf.mxu2  ;;  %v1110_v50 = vpop.f32.mrf.mxu0 }
 0x419   : > { %v2247_v19 = vadd.f32 %v2246_v16, %v11298_v44  ;;  %v3488_v57 = vpop.f32.mrf.mxu3  ;;  %v1111_v53 = vadd.f32 %v1110_v50, %v11301_v21  ;;  %v8463_v16 = vld [vmem:[%s8645_s10 + $0xc4] sm:$0xf] }
 0x41a   : > { %v3489_v6 = vadd.f32 %v3488_v57, %v3279_v46  ;;  %v3281_v62 = vpop.f32.mrf.mxu1  ;;  %v7728_v57 = vor.u32 %v8464_v48, %v7727_v22  ;;  %v7316_v22 = vor.u32 %v8376_v23, %v7315_v24  ;;  %v11312_v23 = vld [vmem:[#allocation79_spill] sm:$0xff] }
 0x41b   : > { %v2403_v59 = vadd.f32 %v2247_v19, %v1264_v58  ;;  %4262 = vmatmul.bf16.gmra.mxu0 %v7308_v51  ;;  %v1265_v42 = vadd.f32 %v10107_v45, %v1111_v53  ;;  %v11303_v58 = vld [vmem:[#allocation84_spill] sm:$0xff]  ;;  %v11307_v53 = vld [vmem:[#allocation75_spill] sm:$0xff] }
 0x41c   : > { %v10311_v3 = vadd.f32 %v3489_v6, %v11299_v32  ;;  %v7732_v6 = vor.u32 %v8463_v16, %v7729_v31  ;;  %v11304_v32 = vld [vmem:[#allocation85_spill] sm:$0xff]  ;;  %v11308_v16 = vld [vmem:[#allocation88_spill] sm:$0xff] }
 0x41d   : > { %7637 = vmatmul.msk.bf16.gmra.mxu2 %vm696_vm0, %v7312_v26  ;;  %v10316_v15 = vadd.f32 %v11302_v13, %v2403_v59  ;;  %v11306_v13 = vld [vmem:[#allocation86_spill] sm:$0xff] }
 0x41e   : > { %11300 = vst [vmem:[#allocation26_spill] sm:$0xff] %v10311_v3 }
 0x420   : > { %v2249_v46 = vpop.f32.mrf.mxu2  ;;  %v1112_v19 = vpop.f32.mrf.mxu0 }
 0x421   : > { %v2250_v44 = vadd.f32 %v2249_v46, %v11303_v58  ;;  %v3490_v51 = vpop.f32.mrf.mxu3  ;;  %v1113_v3 = vadd.f32 %v1112_v19, %v11306_v13  ;;  %v8375_v46 = vld [vmem:[%s8645_s10 + $0xb4] sm:$0xf]  ;;  %v7317_v58 = vld [vmem:[%s8645_s10 + $0xb8] sm:$0xf0] }
 0x422   : > { %v3491_v50 = vadd.f32 %v3490_v51, %v3281_v62  ;;  %v3284_v26 = vpop.f32.mrf.mxu1  ;;  %v7320_v51 = vor.u32 %v8375_v46, %v7317_v58  ;;  %v7737_v46 = vld [vmem:[%s8645_s10 + $0xd8] sm:$0xf0] }
 0x423   : > { %v2404_v59 = vadd.f32 %v2250_v44, %v1265_v42  ;;  %v1266_v48 = vadd.f32 %v10107_v45, %v1113_v3  ;;  %v7735_v3 = vld [vmem:[%s8645_s10 + $0xd0] sm:$0xf] }
 0x424   : > { %v10325_v21 = vadd.f32 %v3491_v50, %v11304_v32  ;;  %v11311_v32 = vld [vmem:[#allocation90_spill] sm:$0xff] }
 0x425   : > { %5401 = vmatmul.bf16.gmra.mxu1 %v7728_v57  ;;  %v10331_v8 = vadd.f32 %v11307_v53, %v2404_v59  ;;  %v11309_v59 = vld [vmem:[#allocation89_spill] sm:$0xff] }
 0x426   : > { %11305 = vst [vmem:[#allocation27_spill] sm:$0xff] %v10325_v21  ;;  %8057 = vmatmul.msk.bf16.gmra.mxu3 %vm696_vm0, %v7732_v6  ;;  %v8466_v53 = vld [vmem:[%s8645_s10 + $0xd4] sm:$0xf0]  ;;  %v7323_v21 = vld [vmem:[%s8645_s10 + $0xc0] sm:$0xf] }
 0x428   : > { %v2251_v62 = vpop.f32.mrf.mxu2  ;;  %v1115_v44 = vpop.f32.mrf.mxu0 }
 0x429   : > { %v2252_v31 = vadd.f32 %v2251_v62, %v11308_v16  ;;  %v3493_v42 = vpop.f32.mrf.mxu3  ;;  %v1116_v13 = vadd.f32 %v1115_v44, %v11311_v32  ;;  %v8465_v62 = vld [vmem:[%s8645_s10 + $0xd4] sm:$0xf] }
 0x42a   : > { %v3494_v19 = vadd.f32 %v3493_v42, %v3284_v26  ;;  %v3286_v57 = vpop.f32.mrf.mxu1  ;;  %v7736_v42 = vor.u32 %v8466_v53, %v7735_v3  ;;  %v7324_v3 = vor.u32 %v8378_v33, %v7323_v21  ;;  %v11322_v33 = vld [vmem:[#allocation87_spill] sm:$0xff] }
 0x42b   : > { %v2405_v50 = vadd.f32 %v2252_v31, %v1266_v48  ;;  %4267 = vmatmul.bf16.gmra.mxu0 %v7316_v22  ;;  %v1267_v58 = vadd.f32 %v10107_v45, %v1116_v13  ;;  %v11313_v48 = vld [vmem:[#allocation92_spill] sm:$0xff]  ;;  %v11317_v13 = vld [vmem:[#allocation83_spill] sm:$0xff] }
 0x42c   : > { %v10339_v6 = vadd.f32 %v3494_v19, %v11309_v59  ;;  %v7740_v19 = vor.u32 %v8465_v62, %v7737_v46  ;;  %v11314_v59 = vld [vmem:[#allocation93_spill] sm:$0xff]  ;;  %v11318_v62 = vld [vmem:[#allocation96_spill] sm:$0xff] }
 0x42d   : > { %7638 = vmatmul.msk.bf16.gmra.mxu2 %vm696_vm0, %v7320_v51  ;;  %v10344_v24 = vadd.f32 %v11312_v23, %v2405_v50  ;;  %v11316_v23 = vld [vmem:[#allocation94_spill] sm:$0xff] }
 0x42e   : > { %11310 = vst [vmem:[#allocation28_spill] sm:$0xff] %v10339_v6 }
 0x430   : > { %v2254_v26 = vpop.f32.mrf.mxu2  ;;  %v1117_v31 = vpop.f32.mrf.mxu0 }
 0x431   : > { %v2255_v16 = vadd.f32 %v2254_v26, %v11313_v48  ;;  %v3495_v22 = vpop.f32.mrf.mxu3  ;;  %v1118_v6 = vadd.f32 %v1117_v31, %v11316_v23  ;;  %v8377_v26 = vld [vmem:[%s8645_s10 + $0xc4] sm:$0xf]  ;;  %v7325_v48 = vld [vmem:[%s8645_s10 + $0xc8] sm:$0xf0] }
 0x432   : > { %v3496_v44 = vadd.f32 %v3495_v22, %v3286_v57  ;;  %v3289_v51 = vpop.f32.mrf.mxu1  ;;  %v7328_v22 = vor.u32 %v8377_v26, %v7325_v48  ;;  %v7745_v26 = vld [vmem:[%s8645_s10 + $0xe8] sm:$0xf0] }
 0x433   : > { %v2406_v50 = vadd.f32 %v2255_v16, %v1267_v58  ;;  %v1268_v53 = vadd.f32 %v10107_v45, %v1118_v6  ;;  %v7743_v6 = vld [vmem:[%s8645_s10 + $0xe0] sm:$0xf] }
 0x434   : > { %v10353_v32 = vadd.f32 %v3496_v44, %v11314_v59  ;;  %v11321_v59 = vld [vmem:[#allocation98_spill] sm:$0xff] }
 0x435   : > { %5406 = vmatmul.bf16.gmra.mxu1 %v7736_v42  ;;  %v10359_v49 = vadd.f32 %v11317_v13, %v2406_v50  ;;  %v11319_v50 = vld [vmem:[#allocation97_spill] sm:$0xff]  ;;  %v8468_v13 = vld [vmem:[%s8645_s10 + $0xe4] sm:$0xf0] }
 0x436   : > { %11315 = vst [vmem:[#allocation29_spill] sm:$0xff] %v10353_v32  ;;  %8058 = vmatmul.msk.bf16.gmra.mxu3 %vm696_vm0, %v7740_v19  ;;  %v7331_v32 = vld [vmem:[%s8645_s10 + $0xd0] sm:$0xf] }
 0x438   : > { %v2256_v57 = vpop.f32.mrf.mxu2  ;;  %v1120_v16 = vpop.f32.mrf.mxu0 }
 0x439   : > { %v2257_v46 = vadd.f32 %v2256_v57, %v11318_v62  ;;  %v3498_v58 = vpop.f32.mrf.mxu3  ;;  %v1121_v23 = vadd.f32 %v1120_v16, %v11321_v59  ;;  %v8467_v57 = vld [vmem:[%s8645_s10 + $0xe4] sm:$0xf] }
 0x43a   : > { %v3499_v31 = vadd.f32 %v3498_v58, %v3289_v51  ;;  %v3291_v42 = vpop.f32.mrf.mxu1  ;;  %v7744_v58 = vor.u32 %v8468_v13, %v7743_v6  ;;  %v7332_v6 = vor.u32 %v8380_v4, %v7331_v32  ;;  %v11331_v4 = vld [vmem:[#allocation95_spill] sm:$0xff] }
 0x43b   : > { %v2407_v44 = vadd.f32 %v2257_v46, %v1268_v53  ;;  %4272 = vmatmul.bf16.gmra.mxu0 %v7324_v3  ;;  %v1269_v48 = vadd.f32 %v10107_v45, %v1121_v23  ;;  %v11323_v53 = vld [vmem:[#allocation100_spill] sm:$0xff]  ;;  %v11327_v23 = vld [vmem:[#allocation91_spill] sm:$0xff] }
 0x43c   : > { %v10367_v19 = vadd.f32 %v3499_v31, %v11319_v50  ;;  %v7748_v31 = vor.u32 %v8467_v57, %v7745_v26  ;;  %v11324_v50 = vld [vmem:[#allocation101_spill] sm:$0xff]  ;;  %v11328_v57 = vld [vmem:[#allocation104_spill] sm:$0xff] }
 0x43d   : > { %7639 = vmatmul.msk.bf16.gmra.mxu2 %vm696_vm0, %v7328_v22  ;;  %v10372_v21 = vadd.f32 %v11322_v33, %v2407_v44  ;;  %v11326_v33 = vld [vmem:[#allocation102_spill] sm:$0xff] }
 0x43e   : > { %11320 = vst [vmem:[#allocation30_spill] sm:$0xff] %v10367_v19 }
 0x440   : > { %v2259_v51 = vpop.f32.mrf.mxu2  ;;  %v1122_v46 = vpop.f32.mrf.mxu0 }
 0x441   : > { %v2260_v62 = vadd.f32 %v2259_v51, %v11323_v53  ;;  %v3500_v3 = vpop.f32.mrf.mxu3  ;;  %v1123_v19 = vadd.f32 %v1122_v46, %v11326_v33  ;;  %v8379_v51 = vld [vmem:[%s8645_s10 + $0xd4] sm:$0xf]  ;;  %v7333_v53 = vld [vmem:[%s8645_s10 + $0xd8] sm:$0xf0]  ;;  %v8470_v33 = vld [vmem:[%s8645_s10 + $0xf4] sm:$0xf0] }
 0x442   : > { %v3501_v16 = vadd.f32 %v3500_v3, %v3291_v42  ;;  %v3294_v22 = vpop.f32.mrf.mxu1  ;;  %v7336_v3 = vor.u32 %v8379_v51, %v7333_v53  ;;  %v7753_v51 = vld [vmem:[%s8645_s10 + $0xf8] sm:$0xf0] }
 0x443   : > { %v2408_v44 = vadd.f32 %v2260_v62, %v1269_v48  ;;  %v1270_v13 = vadd.f32 %v10107_v45, %v1123_v19  ;;  %v7751_v19 = vld [vmem:[%s8645_s10 + $0xf0] sm:$0xf] }
 0x444   : > { %v10381_v59 = vadd.f32 %v3501_v16, %v11324_v50 }
 0x445   : > { %5411 = vmatmul.bf16.gmra.mxu1 %v7744_v58  ;;  %v10387_v0 = vadd.f32 %v11327_v23, %v2408_v44  ;;  %v11330_v44 = vld [vmem:[#allocation106_spill] sm:$0xff]  ;;  %v8469_v23 = vld [vmem:[%s8645_s10 + $0xf4] sm:$0xf] }
 0x446   : > { %11325 = vst [vmem:[#allocation31_spill] sm:$0xff] %v10381_v59  ;;  %8059 = vmatmul.msk.bf16.gmra.mxu3 %vm696_vm0, %v7748_v31  ;;  %v8382_v59 = vld [vmem:[%s8645_s10 + $0xe4] sm:$0xf0] }
 0x448   : > { %v2261_v42 = vpop.f32.mrf.mxu2  ;;  %v1125_v62 = vpop.f32.mrf.mxu0 }
 0x449   : > { %v2262_v26 = vadd.f32 %v2261_v42, %v11328_v57  ;;  %v3503_v48 = vpop.f32.mrf.mxu3  ;;  %v1126_v50 = vadd.f32 %v1125_v62, %v11330_v44  ;;  %v11332_v42 = vld [vmem:[#allocation108_spill] sm:$0xff]  ;;  %v7752_v57 = vor.u32 %v8470_v33, %v7751_v19  ;;  %v7756_v62 = vor.u32 %v8469_v23, %v7753_v51  ;;  %v11334_v44 = vld [vmem:[#allocation110_spill] sm:$0xff]  ;;  %v7341_v19 = vld [vmem:[%s8645_s10 + $0xe8] sm:$0xf0] }
 0x44a   : > { %v3504_v46 = vadd.f32 %v3503_v48, %v3294_v22  ;;  %v3296_v58 = vpop.f32.mrf.mxu1  ;;  %v11336_v51 = vld [vmem:[#allocation112_spill] sm:$0xff] }
 0x44b   : > { %v2409_v16 = vadd.f32 %v2262_v26, %v1270_v13  ;;  %4277 = vmatmul.bf16.gmra.mxu0 %v7332_v6  ;;  %v1271_v53 = vadd.f32 %v10107_v45, %v1126_v50  ;;  %v11335_v50 = vld [vmem:[#allocation99_spill] sm:$0xff] }
 0x44c   : > { %v10395_v31 = vadd.f32 %v3504_v46, %v9817_v5  ;;  %v11333_v46 = vld [vmem:[#allocation105_spill] sm:$0xff] }
 0x44d   : > { %7640 = vmatmul.msk.bf16.gmra.mxu2 %vm696_vm0, %v7336_v3  ;;  %v10400_v32 = vadd.f32 %v11331_v4, %v2409_v16 }
 0x44e   : > { %11329 = vst [vmem:[#allocation32_spill] sm:$0xff] %v10395_v31  ;;  %v7339_v31 = vld [vmem:[%s8645_s10 + $0xe0] sm:$0xf] }
 0x44f   : > { %v7340_v33 = vor.u32 %v8382_v59, %v7339_v31  ;;  %v8472_v31 = vld [vmem:[%s8645_s10 + $0x104] sm:$0xf0] }
 0x450   : > { %v2264_v22 = vpop.f32.mrf.mxu2  ;;  %v1127_v13 = vpop.f32.mrf.mxu0 }
 0x451   : > { %v2265_v5 = vadd.f32 %v2264_v22, %v11332_v42  ;;  %v3505_v6 = vpop.f32.mrf.mxu3  ;;  %v1128_v4 = vadd.f32 %v1127_v13, %v11334_v44  ;;  %v8381_v22 = vld [vmem:[%s8645_s10 + $0xe4] sm:$0xf]  ;;  %v7761_v44 = vld [vmem:[%s8645_s10 + $0x108] sm:$0xf0] }
 0x452   : > { %v3506_v26 = vadd.f32 %v3505_v6, %v3296_v58  ;;  %v3299_v48 = vpop.f32.mrf.mxu1 }
 0x453   : > { %v2410_v3 = vadd.f32 %v2265_v5, %v1271_v53  ;;  %v1272_v23 = vadd.f32 %v10107_v45, %v1128_v4  ;;  %v7344_v5 = vor.u32 %v8381_v22, %v7341_v19  ;;  %v7759_v45 = vld [vmem:[%s8645_s10 + $0x100] sm:$0xf] }
 0x454   : > { %v10409_v16 = vadd.f32 %v3506_v26, %v11333_v46  ;;  %v8471_v46 = vld [vmem:[%s8645_s10 + $0x104] sm:$0xf] }
 0x455   : > { %5416 = vmatmul.bf16.gmra.mxu1 %v7752_v57  ;;  %v10415_v2 = vadd.f32 %v11335_v50, %v2410_v3  ;;  %v11337_v3 = vld [vmem:[#allocation103_spill] sm:$0xff]  ;;  %v7760_v50 = vor.u32 %v8472_v31, %v7759_v45 }
 0x456   : > { %8060 = vmatmul.msk.bf16.gmra.mxu3 %vm696_vm0, %v7756_v62 }
 0x458   : > { %v2266_v58 = vpop.f32.mrf.mxu2  ;;  %v4243_v6 = vpop.f32.mrf.mxu0 }
 0x459   : > { %v2267_v53 = vadd.f32 %v2266_v58, %v11336_v51  ;;  %v3508_v42 = vpop.f32.mrf.mxu3  ;;  %v7764_v58 = vor.u32 %v8471_v46, %v7761_v44  ;;  %v8384_v51 = vld [vmem:[%s8645_s10 + $0xf4] sm:$0xf0] }
 0x45a   : > { %v3509_v13 = vadd.f32 %v3508_v42, %v3299_v48  ;;  %v3301_v57 = vpop.f32.mrf.mxu1  ;;  %v8383_v42 = vld [vmem:[%s8645_s10 + $0xf4] sm:$0xf] }
 0x45b   : > { %v2411_v26 = vadd.f32 %v2267_v53, %v1272_v23  ;;  %4282 = vmatmul.bf16.gmra.mxu0 %v7340_v33  ;;  %v7347_v23 = vld [vmem:[%s8645_s10 + $0xf0] sm:$0xf] }
 0x45c   : > { %v10423_v62 = vadd.f32 %v3509_v13, %v9841_v7 }
 0x45d   : > { %7641 = vmatmul.msk.bf16.gmra.mxu2 %vm696_vm0, %v7344_v5  ;;  %v10427_v59 = vadd.f32 %v11337_v3, %v2411_v26  ;;  %v7349_v5 = vld [vmem:[%s8645_s10 + $0xf8] sm:$0xf0]  ;;  %v7348_v26 = vor.u32 %v8384_v51, %v7347_v23 }
 0x45e   : > { %v7352_v3 = vor.u32 %v8383_v42, %v7349_v5 }
 0x460   : > { %v4452_v48 = vpop.f32.mrf.mxu2  ;;  %v4245_v7 = vpop.f32.mrf.mxu0 }
 0x461   : > { %v3510_v4 = vpop.f32.mrf.mxu3  ;;  %v4453_v53 = vadd.f32 %v4452_v48, %v4243_v6  ;;  %v7767_v48 = vld [vmem:[%s8645_s10 + $0x110] sm:$0xf] }
 0x462   : > { %v3511_v22 = vadd.f32 %v3510_v4, %v3301_v57  ;;  %v5382_v19 = vpop.f32.mrf.mxu1  ;;  %v8474_v4 = vld [vmem:[%s8645_s10 + $0x114] sm:$0xf0] }
 0x464   : > { %v10434_v33 = vadd.f32 %v3511_v22, %v9854_v35  ;;  %v4652_v35 = vadd.f32 %v4453_v53, %v9884_v43  ;;  %v8473_v43 = vld [vmem:[%s8645_s10 + $0x114] sm:$0xf] }
 0x465   : > { %5421 = vmatmul.bf16.gmra.mxu1 %v7760_v50  ;;  %v7769_v50 = vld [vmem:[%s8645_s10 + $0x118] sm:$0xf0] }
 0x466   : > { %8061 = vmatmul.msk.bf16.gmra.mxu3 %vm696_vm0, %v7764_v58  ;;  %v7768_v58 = vor.u32 %v8474_v4, %v7767_v48 }
 0x468   : > { %v4454_v13 = vpop.f32.mrf.mxu2  ;;  %v4248_v45 = vpop.f32.mrf.mxu0 }
 0x469   : > { %v5591_v57 = vpop.f32.mrf.mxu3  ;;  %v4455_v44 = vadd.f32 %v4454_v13, %v4245_v7  ;;  %v7772_v7 = vor.u32 %v8473_v43, %v7769_v50  ;;  %v7355_v13 = vld [vmem:[%s8645_s10 + $0x100] sm:$0xf] }
 0x46a   : > { %v5592_v31 = vadd.f32 %v5591_v57, %v5382_v19  ;;  %v5384_v46 = vpop.f32.mrf.mxu1 }
 0x46b   : > { %4287 = vmatmul.bf16.gmra.mxu0 %v7348_v26  ;;  %v4653_v51 = vadd.f32 %v4455_v44, %v9898_v40  ;;  %v8386_v26 = vld [vmem:[%s8645_s10 + $0x104] sm:$0xf0] }
 0x46c   : > { %v5791_v6 = vadd.f32 %v5592_v31, %v4652_v35  ;;  %v7357_v35 = vld [vmem:[%s8645_s10 + $0x108] sm:$0xf0]  ;;  %v7356_v40 = vor.u32 %v8386_v26, %v7355_v13 }
 0x46d   : > { %7642 = vmatmul.msk.bf16.gmra.mxu2 %vm696_vm0, %v7352_v3  ;;  %v8385_v3 = vld [vmem:[%s8645_s10 + $0x104] sm:$0xf] }
 0x46e   : > { %5871 = vst.msk [vmem:[%s10446_s30] sm:$0xff] %vm696_vm0, %v5791_v6  ;;  %v7360_v6 = vor.u32 %v8385_v3, %v7357_v35  ;;  %v7363_v3 = vld [vmem:[%s8645_s10 + $0x110] sm:$0xf]  ;;  %v8388_v35 = vld [vmem:[%s8645_s10 + $0x114] sm:$0xf0] }
 0x470   : > { %v4457_v22 = vpop.f32.mrf.mxu2  ;;  %v4250_v23 = vpop.f32.mrf.mxu0 }
 0x471   : > { %v5593_v19 = vpop.f32.mrf.mxu3  ;;  %v4458_v57 = vadd.f32 %v4457_v22, %v4248_v45  ;;  %v7775_v22 = vld [vmem:[%s8645_s10 + $0x120] sm:$0xf] }
 0x472   : > { %v5594_v53 = vadd.f32 %v5593_v19, %v5384_v46  ;;  %v5387_v42 = vpop.f32.mrf.mxu1  ;;  %v8476_v19 = vld [vmem:[%s8645_s10 + $0x124] sm:$0xf0] }
 0x473   : > { %v4654_v48 = vadd.f32 %v4458_v57, %v9913_v38 }
 0x474   : > { %v5792_v5 = vadd.f32 %v5594_v53, %v4653_v51  ;;  %v7777_v51 = vld [vmem:[%s8645_s10 + $0x128] sm:$0xf0] }
 0x475   : > { %5426 = vmatmul.bf16.gmra.mxu1 %v7768_v58  ;;  %v8475_v58 = vld [vmem:[%s8645_s10 + $0x124] sm:$0xf] }
 0x476   : > { %5872 = vst.msk [vmem:[%s10446_s30 + $0x8] sm:$0xff] %vm696_vm0, %v5792_v5  ;;  %8062 = vmatmul.msk.bf16.gmra.mxu3 %vm696_vm0, %v7772_v7 }
 0x478   : > { %v4459_v31 = vpop.f32.mrf.mxu2  ;;  %v4253_v44 = vpop.f32.mrf.mxu0 }
 0x479   : > { %v5596_v46 = vpop.f32.mrf.mxu3  ;;  %v4460_v50 = vadd.f32 %v4459_v31, %v4250_v23  ;;  %v7780_v23 = vor.u32 %v8475_v58, %v7777_v51  ;;  %v7783_v58 = vld [vmem:[%s8645_s10 + $0x130] sm:$0xf]  ;;  %v8478_v51 = vld [vmem:[%s8645_s10 + $0x134] sm:$0xf0] }
 0x47a   : > { %v5597_v4 = vadd.f32 %v5596_v46, %v5387_v42  ;;  %v5389_v45 = vpop.f32.mrf.mxu1  ;;  %v7776_v42 = vor.u32 %v8476_v19, %v7775_v22  ;;  %v7365_v46 = vld [vmem:[%s8645_s10 + $0x118] sm:$0xf0] }
 0x47b   : > { %4292 = vmatmul.bf16.gmra.mxu0 %v7356_v40  ;;  %v4655_v5 = vadd.f32 %v4460_v50, %v9927_v10  ;;  %v8387_v40 = vld [vmem:[%s8645_s10 + $0x114] sm:$0xf]  ;;  %v7364_v10 = vor.u32 %v8388_v35, %v7363_v3  ;;  %v7371_v35 = vld [vmem:[%s8645_s10 + $0x120] sm:$0xf] }
 0x47c   : > { %v5793_v43 = vadd.f32 %v5597_v4, %v4654_v48  ;;  %v7368_v4 = vor.u32 %v8387_v40, %v7365_v46  ;;  %v8389_v46 = vld [vmem:[%s8645_s10 + $0x124] sm:$0xf] }
 0x47d   : > { %7643 = vmatmul.msk.bf16.gmra.mxu2 %vm696_vm0, %v7360_v6 }
 0x47e   : > { %5873 = vst.msk [vmem:[%s10446_s30 + $0x10] sm:$0xff] %vm696_vm0, %v5793_v43 }
 0x480   : > { %v4462_v53 = vpop.f32.mrf.mxu2  ;;  %v4255_v7 = vpop.f32.mrf.mxu0 }
 0x481   : > { %v5598_v38 = vpop.f32.mrf.mxu3  ;;  %v4463_v31 = vadd.f32 %v4462_v53, %v4253_v44  ;;  %v8477_v53 = vld [vmem:[%s8645_s10 + $0x134] sm:$0xf] }
 0x482   : > { %v5599_v13 = vadd.f32 %v5598_v38, %v5389_v45  ;;  %v5392_v26 = vpop.f32.mrf.mxu1  ;;  %v7785_v38 = vld [vmem:[%s8645_s10 + $0x138] sm:$0xf0] }
 0x483   : > { %v4656_v43 = vadd.f32 %v4463_v31, %v9942_v47  ;;  %v8390_v31 = vld [vmem:[%s8645_s10 + $0x124] sm:$0xf0] }
 0x484   : > { %v5794_v57 = vadd.f32 %v5599_v13, %v4655_v5  ;;  %v7784_v5 = vor.u32 %v8478_v51, %v7783_v58  ;;  %v7791_v58 = vld [vmem:[%s8645_s10 + $0x140] sm:$0xf]  ;;  %v8480_v51 = vld [vmem:[%s8645_s10 + $0x144] sm:$0xf0] }
 0x485   : > { %5431 = vmatmul.bf16.gmra.mxu1 %v7776_v42 }
 0x486   : > { %5874 = vst.msk [vmem:[%s10446_s30 + $0x18] sm:$0xff] %vm696_vm0, %v5794_v57  ;;  %8063 = vmatmul.msk.bf16.gmra.mxu3 %vm696_vm0, %v7780_v23 }
 0x488   : > { %v4464_v6 = vpop.f32.mrf.mxu2  ;;  %v4258_v45 = vpop.f32.mrf.mxu0 }
 0x489   : > { %v5601_v48 = vpop.f32.mrf.mxu3  ;;  %v4465_v19 = vadd.f32 %v4464_v6, %v4255_v7  ;;  %v7788_v7 = vor.u32 %v8477_v53, %v7785_v38  ;;  %v7373_v6 = vld [vmem:[%s8645_s10 + $0x128] sm:$0xf0]  ;;  %v8479_v53 = vld [vmem:[%s8645_s10 + $0x144] sm:$0xf] }
 0x48a   : > { %v5602_v50 = vadd.f32 %v5601_v48, %v5392_v26  ;;  %v5394_v44 = vpop.f32.mrf.mxu1  ;;  %v7793_v38 = vld [vmem:[%s8645_s10 + $0x148] sm:$0xf0] }
 0x48b   : > { %4297 = vmatmul.bf16.gmra.mxu0 %v7364_v10  ;;  %v4657_v26 = vadd.f32 %v4465_v19, %v9959_v63  ;;  %v7372_v63 = vor.u32 %v8390_v31, %v7371_v35  ;;  %v8392_v35 = vld [vmem:[%s8645_s10 + $0x134] sm:$0xf0] }
 0x48c   : > { %v5795_v22 = vadd.f32 %v5602_v50, %v4656_v43 }
 0x48d   : > { %7644 = vmatmul.msk.bf16.gmra.mxu2 %vm696_vm0, %v7368_v4  ;;  %v7376_v4 = vor.u32 %v8389_v46, %v7373_v6  ;;  %v7381_v46 = vld [vmem:[%s8645_s10 + $0x138] sm:$0xf0] }
 0x48e   : > { %5875 = vst.msk [vmem:[%s10446_s30 + $0x20] sm:$0xff] %vm696_vm0, %v5795_v22 }
 0x490   : > { %v4467_v42 = vpop.f32.mrf.mxu2  ;;  %v4260_v13 = vpop.f32.mrf.mxu0 }
 0x491   : > { %v5603_v47 = vpop.f32.mrf.mxu3  ;;  %v4468_v40 = vadd.f32 %v4467_v42, %v4258_v45 }
 0x492   : > { %v5604_v23 = vadd.f32 %v5603_v47, %v5394_v44  ;;  %v5397_v57 = vpop.f32.mrf.mxu1  ;;  %v7792_v47 = vor.u32 %v8480_v51, %v7791_v58  ;;  %v8481_v58 = vld [vmem:[%s8645_s10 + $0x154] sm:$0xf]  ;;  %v7801_v51 = vld [vmem:[%s8645_s10 + $0x158] sm:$0xf0] }
 0x493   : > { %v4658_v50 = vadd.f32 %v4468_v40, %v9974_v12  ;;  %v8391_v40 = vld [vmem:[%s8645_s10 + $0x134] sm:$0xf] }
 0x494   : > { %v5796_v3 = vadd.f32 %v5604_v23, %v4657_v26 }
 0x495   : > { %5436 = vmatmul.bf16.gmra.mxu1 %v7784_v5 }
 0x496   : > { %5876 = vst.msk [vmem:[%s10446_s30 + $0x28] sm:$0xff] %vm696_vm0, %v5796_v3  ;;  %8064 = vmatmul.msk.bf16.gmra.mxu3 %vm696_vm0, %v7788_v7  ;;  %v7379_v3 = vld [vmem:[%s8645_s10 + $0x130] sm:$0xf] }
 0x498   : > { %v4469_v10 = vpop.f32.mrf.mxu2  ;;  %v4263_v43 = vpop.f32.mrf.mxu0 }
 0x499   : > { %v5606_v48 = vpop.f32.mrf.mxu3  ;;  %v4470_v19 = vadd.f32 %v4469_v10, %v4260_v13  ;;  %v7796_v13 = vor.u32 %v8479_v53, %v7793_v38 }
 0x49a   : > { %v5607_v44 = vadd.f32 %v5606_v48, %v5397_v57  ;;  %v5399_v45 = vpop.f32.mrf.mxu1 }
 0x49b   : > { %4302 = vmatmul.bf16.gmra.mxu0 %v7372_v63  ;;  %v4659_v26 = vadd.f32 %v4470_v19, %v9988_v1  ;;  %v7380_v1 = vor.u32 %v8392_v35, %v7379_v3  ;;  %v7384_v63 = vor.u32 %v8391_v40, %v7381_v46  ;;  %v8482_v19 = vld [vmem:[%s8645_s10 + $0x154] sm:$0xf0]  ;;  %v8393_v3 = vld [vmem:[%s8645_s10 + $0x144] sm:$0xf]  ;;  %v7389_v35 = vld [vmem:[%s8645_s10 + $0x148] sm:$0xf0] }
 0x49c   : > { %v5797_v22 = vadd.f32 %v5607_v44, %v4658_v50  ;;  %v7392_v46 = vor.u32 %v8393_v3, %v7389_v35 }
 0x49d   : > { %7645 = vmatmul.msk.bf16.gmra.mxu2 %vm696_vm0, %v7376_v4 }
 0x49e   : > { %5877 = vst.msk [vmem:[%s10446_s30 + $0x30] sm:$0xff] %vm696_vm0, %v5797_v22  ;;  %v7799_v22 = vld [vmem:[%s8645_s10 + $0x150] sm:$0xf] }
 0x49f   : > { %v7800_v38 = vor.u32 %v8482_v19, %v7799_v22 }
 0x4a0   : > { %v4472_v42 = vpop.f32.mrf.mxu2  ;;  %v4265_v5 = vpop.f32.mrf.mxu0 }
 0x4a1   : > { %v5608_v12 = vpop.f32.mrf.mxu3  ;;  %v4473_v31 = vadd.f32 %v4472_v42, %v4263_v43 }
 0x4a2   : > { %v5609_v23 = vadd.f32 %v5608_v12, %v5399_v45  ;;  %v5402_v57 = vpop.f32.mrf.mxu1 }
 0x4a3   : > { %v4660_v4 = vadd.f32 %v4473_v31, %v10003_v52 }
 0x4a4   : > { %v5798_v7 = vadd.f32 %v5609_v23, %v4659_v26 }
 0x4a5   : > { %5441 = vmatmul.bf16.gmra.mxu1 %v7792_v47 }
 0x4a6   : > { %5878 = vst.msk [vmem:[%s10446_s30 + $0x38] sm:$0xff] %vm696_vm0, %v5798_v7  ;;  %8065 = vmatmul.msk.bf16.gmra.mxu3 %vm696_vm0, %v7796_v13  ;;  %v8394_v13 = vld [vmem:[%s8645_s10 + $0x144] sm:$0xf0] }
 0x4a8   : > { %v4474_v6 = vpop.f32.mrf.mxu2  ;;  %v4268_v48 = vpop.f32.mrf.mxu0 }
 0x4a9   : > { %v5611_v10 = vpop.f32.mrf.mxu3  ;;  %v4475_v45 = vadd.f32 %v4474_v6, %v4265_v5  ;;  %v7804_v5 = vor.u32 %v8481_v58, %v7801_v51 }
 0x4aa   : > { %v5612_v50 = vadd.f32 %v5611_v10, %v5402_v57  ;;  %v5404_v43 = vpop.f32.mrf.mxu1  ;;  %v7387_v57 = vld [vmem:[%s8645_s10 + $0x140] sm:$0xf] }
 0x4ab   : > { %4307 = vmatmul.bf16.gmra.mxu0 %v7380_v1  ;;  %v4661_v12 = vadd.f32 %v4475_v45, %v10023_v61  ;;  %v7388_v61 = vor.u32 %v8394_v13, %v7387_v57  ;;  %v7809_v45 = vld [vmem:[%s8645_s10 + $0x168] sm:$0xf0] }
 0x4ac   : > { %v5799_v44 = vadd.f32 %v5612_v50, %v4660_v4  ;;  %v7807_v50 = vld [vmem:[%s8645_s10 + $0x160] sm:$0xf] }
 0x4ad   : > { %7646 = vmatmul.msk.bf16.gmra.mxu2 %vm696_vm0, %v7384_v63 }
 0x4ae   : > { %5879 = vst.msk [vmem:[%s10446_s30 + $0x40] sm:$0xff] %vm696_vm0, %v5799_v44  ;;  %v8483_v44 = vld [vmem:[%s8645_s10 + $0x164] sm:$0xf] }
 0x4b0   : > { %v4477_v53 = vpop.f32.mrf.mxu2  ;;  %v4270_v42 = vpop.f32.mrf.mxu0 }
 0x4b1   : > { %v5613_v52 = vpop.f32.mrf.mxu3  ;;  %v4478_v7 = vadd.f32 %v4477_v53, %v4268_v48 }
 0x4b2   : > { %v5614_v47 = vadd.f32 %v5613_v52, %v5404_v43  ;;  %v5407_v26 = vpop.f32.mrf.mxu1  ;;  %v8484_v43 = vld [vmem:[%s8645_s10 + $0x164] sm:$0xf0] }
 0x4b3   : > { %v4662_v1 = vadd.f32 %v4478_v7, %v10038_v34  ;;  %v7808_v19 = vor.u32 %v8484_v43, %v7807_v50 }
 0x4b4   : > { %v5800_v23 = vadd.f32 %v5614_v47, %v4661_v12  ;;  %v7395_v12 = vld [vmem:[%s8645_s10 + $0x150] sm:$0xf]  ;;  %v8396_v47 = vld [vmem:[%s8645_s10 + $0x154] sm:$0xf0] }
 0x4b5   : > { %5446 = vmatmul.bf16.gmra.mxu1 %v7800_v38  ;;  %v7812_v38 = vor.u32 %v8483_v44, %v7809_v45 }
 0x4b6   : > { %5880 = vst.msk [vmem:[%s10446_s30 + $0x48] sm:$0xff] %vm696_vm0, %v5800_v23  ;;  %8066 = vmatmul.msk.bf16.gmra.mxu3 %vm696_vm0, %v7804_v5  ;;  %v8395_v5 = vld [vmem:[%s8645_s10 + $0x154] sm:$0xf]  ;;  %v7397_v23 = vld [vmem:[%s8645_s10 + $0x158] sm:$0xf0] }
 0x4b7   : > { %v7400_v7 = vor.u32 %v8395_v5, %v7397_v23 }
 0x4b8   : > { %v4479_v31 = vpop.f32.mrf.mxu2  ;;  %v4273_v6 = vpop.f32.mrf.mxu0 }
 0x4b9   : > { %v5616_v40 = vpop.f32.mrf.mxu3  ;;  %v4480_v4 = vadd.f32 %v4479_v31, %v4270_v42 }
 0x4ba   : > { %v5617_v10 = vadd.f32 %v5616_v40, %v5407_v26  ;;  %v5409_v63 = vpop.f32.mrf.mxu1 }
 0x4bb   : > { %4312 = vmatmul.bf16.gmra.mxu0 %v7388_v61  ;;  %v4663_v51 = vadd.f32 %v4480_v4, %v10052_v55  ;;  %v7396_v55 = vor.u32 %v8396_v47, %v7395_v12 }
 0x4bc   : > { %v5801_v48 = vadd.f32 %v5617_v10, %v4662_v1  ;;  %v8486_v1 = vld [vmem:[%s8645_s10 + $0x174] sm:$0xf0]  ;;  %v8485_v10 = vld [vmem:[%s8645_s10 + $0x174] sm:$0xf] }
 0x4bd   : > { %7647 = vmatmul.msk.bf16.gmra.mxu2 %vm696_vm0, %v7392_v46 }
 0x4be   : > { %5881 = vst.msk [vmem:[%s10446_s30 + $0x50] sm:$0xff] %vm696_vm0, %v5801_v48 }
 0x4c0   : > { %v4482_v22 = vpop.f32.mrf.mxu2  ;;  %v4275_v58 = vpop.f32.mrf.mxu0 }
 0x4c1   : > { %v5618_v34 = vpop.f32.mrf.mxu3  ;;  %v4483_v26 = vadd.f32 %v4482_v22, %v4273_v6  ;;  %v7815_v6 = vld [vmem:[%s8645_s10 + $0x170] sm:$0xf] }
 0x4c2   : > { %v5619_v53 = vadd.f32 %v5618_v34, %v5409_v63  ;;  %v5412_v52 = vpop.f32.mrf.mxu1  ;;  %v7817_v63 = vld [vmem:[%s8645_s10 + $0x178] sm:$0xf0]  ;;  %v7816_v4 = vor.u32 %v8486_v1, %v7815_v6 }
 0x4c3   : > { %v4664_v35 = vadd.f32 %v4483_v26, %v10067_v14  ;;  %v7820_v22 = vor.u32 %v8485_v10, %v7817_v63 }
 0x4c4   : > { %v5802_v42 = vadd.f32 %v5619_v53, %v4663_v51  ;;  %v8397_v53 = vld [vmem:[%s8645_s10 + $0x164] sm:$0xf] }
 0x4c5   : > { %5451 = vmatmul.bf16.gmra.mxu1 %v7808_v19  ;;  %v7403_v19 = vld [vmem:[%s8645_s10 + $0x160] sm:$0xf] }
 0x4c6   : > { %5882 = vst.msk [vmem:[%s10446_s30 + $0x58] sm:$0xff] %vm696_vm0, %v5802_v42  ;;  %8067 = vmatmul.msk.bf16.gmra.mxu3 %vm696_vm0, %v7812_v38 }
 0x4c8   : > { %v4484_v57 = vpop.f32.mrf.mxu2  ;;  %v4278_v3 = vpop.f32.mrf.mxu0 }
 0x4c9   : > { %v5621_v13 = vpop.f32.mrf.mxu3  ;;  %v4485_v46 = vadd.f32 %v4484_v57, %v4275_v58  ;;  %v8398_v58 = vld [vmem:[%s8645_s10 + $0x164] sm:$0xf0] }
 0x4ca   : > { %v5622_v31 = vadd.f32 %v5621_v13, %v5412_v52  ;;  %v5414_v61 = vpop.f32.mrf.mxu1  ;;  %v7405_v52 = vld [vmem:[%s8645_s10 + $0x168] sm:$0xf0]  ;;  %v7823_v13 = vld [vmem:[%s8645_s10 + $0x180] sm:$0xf] }
 0x4cb   : > { %4317 = vmatmul.bf16.gmra.mxu0 %v7396_v55  ;;  %v4665_v43 = vadd.f32 %v4485_v46, %v10081_v25  ;;  %v7404_v25 = vor.u32 %v8398_v58, %v7403_v19  ;;  %v7408_v12 = vor.u32 %v8397_v53, %v7405_v52 }
 0x4cc   : > { %v5803_v40 = vadd.f32 %v5622_v31, %v4664_v35  ;;  %v7825_v35 = vld [vmem:[%s8645_s10 + $0x188] sm:$0xf0] }
 0x4cd   : > { %7648 = vmatmul.msk.bf16.gmra.mxu2 %vm696_vm0, %v7400_v7  ;;  %v8488_v7 = vld [vmem:[%s8645_s10 + $0x184] sm:$0xf0] }
 0x4ce   : > { %5883 = vst.msk [vmem:[%s10446_s30 + $0x60] sm:$0xff] %vm696_vm0, %v5803_v40 }
 0x4d0   : > { %v4487_v48 = vpop.f32.mrf.mxu2  ;;  %v4280_v50 = vpop.f32.mrf.mxu0 }
 0x4d1   : > { %v5623_v14 = vpop.f32.mrf.mxu3  ;;  %v4488_v51 = vadd.f32 %v4487_v48, %v4278_v3  ;;  %v8487_v3 = vld [vmem:[%s8645_s10 + $0x184] sm:$0xf]  ;;  %v7411_v48 = vld [vmem:[%s8645_s10 + $0x170] sm:$0xf] }
 0x4d2   : > { %v5624_v44 = vadd.f32 %v5623_v14, %v5414_v61  ;;  %v5417_v45 = vpop.f32.mrf.mxu1  ;;  %v7824_v61 = vor.u32 %v8488_v7, %v7823_v13  ;;  %v7828_v10 = vor.u32 %v8487_v3, %v7825_v35  ;;  %v8400_v14 = vld [vmem:[%s8645_s10 + $0x174] sm:$0xf0]  ;;  %v7419_v3 = vld [vmem:[%s8645_s10 + $0x180] sm:$0xf]  ;;  %v8402_v35 = vld [vmem:[%s8645_s10 + $0x184] sm:$0xf0] }
 0x4d3   : > { %v4666_v26 = vadd.f32 %v4488_v51, %v10099_v36 }
 0x4d4   : > { %v5804_v34 = vadd.f32 %v5624_v44, %v4665_v43  ;;  %v7413_v43 = vld [vmem:[%s8645_s10 + $0x178] sm:$0xf0] }
 0x4d5   : > { %5456 = vmatmul.bf16.gmra.mxu1 %v7816_v4 }
 0x4d6   : > { %5884 = vst.msk [vmem:[%s10446_s30 + $0x68] sm:$0xff] %vm696_vm0, %v5804_v34  ;;  %8068 = vmatmul.msk.bf16.gmra.mxu3 %vm696_vm0, %v7820_v22 }
 0x4d8   : > { %v4489_v38 = vpop.f32.mrf.mxu2  ;;  %v4283_v47 = vpop.f32.mrf.mxu0 }
 0x4d9   : > { %v5626_v42 = vpop.f32.mrf.mxu3  ;;  %v4490_v55 = vadd.f32 %v4489_v38, %v4280_v50  ;;  %v8399_v50 = vld [vmem:[%s8645_s10 + $0x174] sm:$0xf]  ;;  %v7831_v38 = vld [vmem:[%s8645_s10 + $0x190] sm:$0xf] }
 0x4da   : > { %v5627_v5 = vadd.f32 %v5626_v42, %v5417_v45  ;;  %v5419_v23 = vpop.f32.mrf.mxu1  ;;  %v7416_v22 = vor.u32 %v8399_v50, %v7413_v43  ;;  %v8489_v42 = vld [vmem:[%s8645_s10 + $0x194] sm:$0xf]  ;;  %v7839_v50 = vld [vmem:[%s8645_s10 + $0x1a0] sm:$0xf]  ;;  %v8492_v43 = vld [vmem:[%s8645_s10 + $0x1a4] sm:$0xf0] }
 0x4db   : > { %4322 = vmatmul.bf16.gmra.mxu0 %v7404_v25  ;;  %v4667_v46 = vadd.f32 %v4490_v55, %v10118_v56  ;;  %v7412_v56 = vor.u32 %v8400_v14, %v7411_v48  ;;  %v8490_v25 = vld [vmem:[%s8645_s10 + $0x194] sm:$0xf0] }
 0x4dc   : > { %v5805_v57 = vadd.f32 %v5627_v5, %v4666_v26  ;;  %v7832_v26 = vor.u32 %v8490_v25, %v7831_v38  ;;  %v7427_v38 = vld [vmem:[%s8645_s10 + $0x190] sm:$0xf]  ;;  %v8404_v25 = vld [vmem:[%s8645_s10 + $0x194] sm:$0xf0] }
 0x4dd   : > { %7649 = vmatmul.msk.bf16.gmra.mxu2 %vm696_vm0, %v7408_v12  ;;  %v7833_v12 = vld [vmem:[%s8645_s10 + $0x198] sm:$0xf0] }
 0x4de   : > { %5885 = vst.msk [vmem:[%s10446_s30 + $0x70] sm:$0xff] %vm696_vm0, %v5805_v57  ;;  %v7836_v13 = vor.u32 %v8489_v42, %v7833_v12  ;;  %v8403_v12 = vld [vmem:[%s8645_s10 + $0x194] sm:$0xf] }
 0x4e0   : > { %v4492_v31 = vpop.f32.mrf.mxu2  ;;  %v4285_v40 = vpop.f32.mrf.mxu0 }
 0x4e1   : > { %v5628_v36 = vpop.f32.mrf.mxu3  ;;  %v4493_v4 = vadd.f32 %v4492_v31, %v4283_v47 }
 0x4e2   : > { %v5629_v6 = vadd.f32 %v5628_v36, %v5419_v23  ;;  %v5422_v1 = vpop.f32.mrf.mxu1  ;;  %v8401_v36 = vld [vmem:[%s8645_s10 + $0x184] sm:$0xf] }
 0x4e3   : > { %v4668_v19 = vadd.f32 %v4493_v4, %v10133_v27 }
 0x4e4   : > { %v5806_v63 = vadd.f32 %v5629_v6, %v4667_v46 }
 0x4e5   : > { %5461 = vmatmul.bf16.gmra.mxu1 %v7824_v61  ;;  %v7421_v61 = vld [vmem:[%s8645_s10 + $0x188] sm:$0xf0] }
 0x4e6   : > { %5886 = vst.msk [vmem:[%s10446_s30 + $0x78] sm:$0xff] %vm696_vm0, %v5806_v63  ;;  %8069 = vmatmul.msk.bf16.gmra.mxu3 %vm696_vm0, %v7828_v10  ;;  %v7424_v6 = vor.u32 %v8401_v36, %v7421_v61  ;;  %v8493_v36 = vld [vmem:[%s8645_s10 + $0x1b4] sm:$0xf]  ;;  %v7849_v61 = vld [vmem:[%s8645_s10 + $0x1b8] sm:$0xf0] }
 0x4e8   : > { %v4494_v44 = vpop.f32.mrf.mxu2  ;;  %v4288_v34 = vpop.f32.mrf.mxu0 }
 0x4e9   : > { %v5631_v45 = vpop.f32.mrf.mxu3  ;;  %v4495_v52 = vadd.f32 %v4494_v44, %v4285_v40  ;;  %v8491_v44 = vld [vmem:[%s8645_s10 + $0x1a4] sm:$0xf] }
 0x4ea   : > { %v5632_v58 = vadd.f32 %v5631_v45, %v5422_v1  ;;  %v5424_v51 = vpop.f32.mrf.mxu1 }
 0x4eb   : > { %4327 = vmatmul.bf16.gmra.mxu0 %v7412_v56  ;;  %v4669_v23 = vadd.f32 %v4495_v52, %v10147_v60  ;;  %v7420_v60 = vor.u32 %v8402_v35, %v7419_v3  ;;  %v7841_v56 = vld [vmem:[%s8645_s10 + $0x1a8] sm:$0xf0]  ;;  %v7847_v35 = vld [vmem:[%s8645_s10 + $0x1b0] sm:$0xf] }
 0x4ec   : > { %v5807_v53 = vadd.f32 %v5632_v58, %v4668_v19 }
 0x4ed   : > { %7650 = vmatmul.msk.bf16.gmra.mxu2 %vm696_vm0, %v7416_v22  ;;  %v7840_v22 = vor.u32 %v8492_v43, %v7839_v50  ;;  %v8405_v43 = vld [vmem:[%s8645_s10 + $0x1a4] sm:$0xf] }
 0x4ee   : > { %5887 = vst.msk [vmem:[%s10446_s30 + $0x80] sm:$0xff] %vm696_vm0, %v5807_v53  ;;  %v7844_v53 = vor.u32 %v8491_v44, %v7841_v56  ;;  %v7437_v44 = vld [vmem:[%s8645_s10 + $0x1a8] sm:$0xf0] }
 0x4f0   : > { %v4497_v47 = vpop.f32.mrf.mxu2  ;;  %v4290_v5 = vpop.f32.mrf.mxu0 }
 0x4f1   : > { %v5633_v27 = vpop.f32.mrf.mxu3  ;;  %v4498_v31 = vadd.f32 %v4497_v47, %v4288_v34  ;;  %v7429_v47 = vld [vmem:[%s8645_s10 + $0x198] sm:$0xf0] }
 0x4f2   : > { %v5634_v57 = vadd.f32 %v5633_v27, %v5424_v51  ;;  %v5427_v55 = vpop.f32.mrf.mxu1 }
 0x4f3   : > { %v4670_v10 = vadd.f32 %v4498_v31, %v10162_v28  ;;  %v8494_v31 = vld [vmem:[%s8645_s10 + $0x1b4] sm:$0xf0] }
 0x4f4   : > { %v5808_v7 = vadd.f32 %v5634_v57, %v4669_v23 }
 0x4f5   : > { %5466 = vmatmul.bf16.gmra.mxu1 %v7832_v26 }
 0x4f6   : > { %5888 = vst.msk [vmem:[%s10446_s30 + $0x88] sm:$0xff] %vm696_vm0, %v5808_v7  ;;  %8070 = vmatmul.msk.bf16.gmra.mxu3 %vm696_vm0, %v7836_v13 }
 0x4f8   : > { %v4499_v40 = vpop.f32.mrf.mxu2  ;;  %v4293_v1 = vpop.f32.mrf.mxu0 }
 0x4f9   : > { %v5636_v46 = vpop.f32.mrf.mxu3  ;;  %v4500_v4 = vadd.f32 %v4499_v40, %v4290_v5  ;;  %v7432_v5 = vor.u32 %v8403_v12, %v7429_v47 }
 0x4fa   : > { %v5637_v63 = vadd.f32 %v5636_v46, %v5427_v55  ;;  %v5429_v48 = vpop.f32.mrf.mxu1 }
 0x4fb   : > { %4332 = vmatmul.bf16.gmra.mxu0 %v7420_v60  ;;  %v4671_v19 = vadd.f32 %v4500_v4, %v10176_v20  ;;  %v7428_v20 = vor.u32 %v8404_v25, %v7427_v38  ;;  %v7848_v60 = vor.u32 %v8494_v31, %v7847_v35  ;;  %v8406_v4 = vld [vmem:[%s8645_s10 + $0x1a4] sm:$0xf0]  ;;  %v8495_v25 = vld [vmem:[%s8645_s10 + $0x1c4] sm:$0xf]  ;;  %v7445_v35 = vld [vmem:[%s8645_s10 + $0x1b8] sm:$0xf0] }
 0x4fc   : > { %v5809_v14 = vadd.f32 %v5637_v63, %v4670_v10  ;;  %v7852_v63 = vor.u32 %v8493_v36, %v7849_v61  ;;  %v8496_v38 = vld [vmem:[%s8645_s10 + $0x1c4] sm:$0xf0] }
 0x4fd   : > { %7651 = vmatmul.msk.bf16.gmra.mxu2 %vm696_vm0, %v7424_v6 }
 0x4fe   : > { %5889 = vst.msk [vmem:[%s10446_s30 + $0x90] sm:$0xff] %vm696_vm0, %v5809_v14  ;;  %v7435_v14 = vld [vmem:[%s8645_s10 + $0x1a0] sm:$0xf] }
 0x500   : > { %v4502_v45 = vpop.f32.mrf.mxu2  ;;  %v4295_v34 = vpop.f32.mrf.mxu0 }
 0x501   : > { %v5638_v28 = vpop.f32.mrf.mxu3  ;;  %v4503_v42 = vadd.f32 %v4502_v45, %v4293_v1 }
 0x502   : > { %v5639_v58 = vadd.f32 %v5638_v28, %v5429_v48  ;;  %v5432_v51 = vpop.f32.mrf.mxu1  ;;  %v7440_v28 = vor.u32 %v8405_v43, %v7437_v44 }
 0x503   : > { %v4672_v57 = vadd.f32 %v4503_v42, %v10191_v29  ;;  %v7857_v42 = vld [vmem:[%s8645_s10 + $0x1c8] sm:$0xf0] }
 0x504   : > { %v5810_v52 = vadd.f32 %v5639_v58, %v4671_v19 }
 0x505   : > { %5471 = vmatmul.bf16.gmra.mxu1 %v7840_v22 }
 0x506   : > { %5890 = vst.msk [vmem:[%s10446_s30 + $0x98] sm:$0xff] %vm696_vm0, %v5810_v52  ;;  %8071 = vmatmul.msk.bf16.gmra.mxu3 %vm696_vm0, %v7844_v53  ;;  %v7855_v52 = vld [vmem:[%s8645_s10 + $0x1c0] sm:$0xf] }
 0x507   : > { %v7856_v47 = vor.u32 %v8496_v38, %v7855_v52 }
 0x508   : > { %v4504_v27 = vpop.f32.mrf.mxu2  ;;  %v4298_v23 = vpop.f32.mrf.mxu0 }
 0x509   : > { %v5641_v26 = vpop.f32.mrf.mxu3  ;;  %v4505_v3 = vadd.f32 %v4504_v27, %v4295_v34 }
 0x50a   : > { %v5642_v55 = vadd.f32 %v5641_v26, %v5432_v51  ;;  %v5434_v13 = vpop.f32.mrf.mxu1 }
 0x50b   : > { %4337 = vmatmul.bf16.gmra.mxu0 %v7428_v20  ;;  %v4673_v6 = vadd.f32 %v4505_v3, %v10204_v41  ;;  %v7436_v41 = vor.u32 %v8406_v4, %v7435_v14  ;;  %v8407_v3 = vld [vmem:[%s8645_s10 + $0x1b4] sm:$0xf]  ;;  %v7865_v14 = vld [vmem:[%s8645_s10 + $0x1d8] sm:$0xf0] }
 0x50c   : > { %v5811_v7 = vadd.f32 %v5642_v55, %v4672_v57  ;;  %v7443_v55 = vld [vmem:[%s8645_s10 + $0x1b0] sm:$0xf]  ;;  %v7448_v61 = vor.u32 %v8407_v3, %v7445_v35 }
 0x50d   : > { %7652 = vmatmul.msk.bf16.gmra.mxu2 %vm696_vm0, %v7432_v5 }
 0x50e   : > { %5891 = vst.msk [vmem:[%s10446_s30 + $0xa0] sm:$0xff] %vm696_vm0, %v5811_v7 }
 0x510   : > { %v4507_v40 = vpop.f32.mrf.mxu2  ;;  %v4300_v46 = vpop.f32.mrf.mxu0 }
 0x511   : > { %v5643_v29 = vpop.f32.mrf.mxu3  ;;  %v4508_v50 = vadd.f32 %v4507_v40, %v4298_v23  ;;  %v7860_v23 = vor.u32 %v8495_v25, %v7857_v42 }
 0x512   : > { %v5644_v1 = vadd.f32 %v5643_v29, %v5434_v13  ;;  %v5437_v10 = vpop.f32.mrf.mxu1  ;;  %v8408_v13 = vld [vmem:[%s8645_s10 + $0x1b4] sm:$0xf0] }
 0x513   : > { %v4674_v34 = vadd.f32 %v4508_v50, %v10219_v9 }
 0x514   : > { %v5812_v48 = vadd.f32 %v5644_v1, %v4673_v6 }
 0x515   : > { %5476 = vmatmul.bf16.gmra.mxu1 %v7848_v60 }
 0x516   : > { %5892 = vst.msk [vmem:[%s10446_s30 + $0xa8] sm:$0xff] %vm696_vm0, %v5812_v48  ;;  %8072 = vmatmul.msk.bf16.gmra.mxu3 %vm696_vm0, %v7852_v63  ;;  %v8498_v63 = vld [vmem:[%s8645_s10 + $0x1d4] sm:$0xf0]  ;;  %v8497_v48 = vld [vmem:[%s8645_s10 + $0x1d4] sm:$0xf] }
 0x518   : > { %v4509_v56 = vpop.f32.mrf.mxu2  ;;  %v4303_v22 = vpop.f32.mrf.mxu0 }
 0x519   : > { %v5646_v45 = vpop.f32.mrf.mxu3  ;;  %v4510_v53 = vadd.f32 %v4509_v56, %v4300_v46 }
 0x51a   : > { %v5647_v19 = vadd.f32 %v5646_v45, %v5437_v10  ;;  %v5439_v58 = vpop.f32.mrf.mxu1  ;;  %v7863_v10 = vld [vmem:[%s8645_s10 + $0x1d0] sm:$0xf]  ;;  %v7868_v45 = vor.u32 %v8497_v48, %v7865_v14 }
 0x51b   : > { %4342 = vmatmul.bf16.gmra.mxu0 %v7436_v41  ;;  %v4675_v20 = vadd.f32 %v4510_v53, %v10232_v54  ;;  %v7444_v54 = vor.u32 %v8408_v13, %v7443_v55  ;;  %v7864_v50 = vor.u32 %v8498_v63, %v7863_v10 }
 0x51c   : > { %v5813_v51 = vadd.f32 %v5647_v19, %v4674_v34  ;;  %v8410_v34 = vld [vmem:[%s8645_s10 + $0x1c4] sm:$0xf0] }
 0x51d   : > { %7653 = vmatmul.msk.bf16.gmra.mxu2 %vm696_vm0, %v7440_v28 }
 0x51e   : > { %5893 = vst.msk [vmem:[%s10446_s30 + $0xb0] sm:$0xff] %vm696_vm0, %v5813_v51  ;;  %v7453_v51 = vld [vmem:[%s8645_s10 + $0x1c8] sm:$0xf0] }
 0x520   : > { %v4512_v12 = vpop.f32.mrf.mxu2  ;;  %v4305_v27 = vpop.f32.mrf.mxu0 }
 0x521   : > { %v5648_v9 = vpop.f32.mrf.mxu3  ;;  %v4513_v7 = vadd.f32 %v4512_v12, %v4303_v22  ;;  %v7451_v22 = vld [vmem:[%s8645_s10 + $0x1c0] sm:$0xf] }
 0x522   : > { %v5649_v26 = vadd.f32 %v5648_v9, %v5439_v58  ;;  %v5442_v5 = vpop.f32.mrf.mxu1  ;;  %v8409_v58 = vld [vmem:[%s8645_s10 + $0x1c4] sm:$0xf] }
 0x523   : > { %v4676_v29 = vadd.f32 %v4513_v7, %v10247_v18  ;;  %v7456_v38 = vor.u32 %v8409_v58, %v7453_v51 }
 0x524   : > { %v5814_v57 = vadd.f32 %v5649_v26, %v4675_v20  ;;  %v7871_v20 = vld [vmem:[%s8645_s10 + $0x1e0] sm:$0xf]  ;;  %v8500_v26 = vld [vmem:[%s8645_s10 + $0x1e4] sm:$0xf0] }
 0x525   : > { %5481 = vmatmul.bf16.gmra.mxu1 %v7856_v47  ;;  %v7872_v55 = vor.u32 %v8500_v26, %v7871_v20 }
 0x526   : > { %5894 = vst.msk [vmem:[%s10446_s30 + $0xb8] sm:$0xff] %vm696_vm0, %v5814_v57  ;;  %8073 = vmatmul.msk.bf16.gmra.mxu3 %vm696_vm0, %v7860_v23  ;;  %v7873_v23 = vld [vmem:[%s8645_s10 + $0x1e8] sm:$0xf0] }
 0x528   : > { %v4514_v31 = vpop.f32.mrf.mxu2  ;;  %v4308_v40 = vpop.f32.mrf.mxu0 }
 0x529   : > { %v5651_v36 = vpop.f32.mrf.mxu3  ;;  %v4515_v1 = vadd.f32 %v4514_v31, %v4305_v27 }
 0x52a   : > { %v5652_v60 = vadd.f32 %v5651_v36, %v5442_v5  ;;  %v5444_v46 = vpop.f32.mrf.mxu1  ;;  %v8499_v5 = vld [vmem:[%s8645_s10 + $0x1e4] sm:$0xf]  ;;  %v7459_v36 = vld [vmem:[%s8645_s10 + $0x1d0] sm:$0xf] }
 0x52b   : > { %4347 = vmatmul.bf16.gmra.mxu0 %v7444_v54  ;;  %v4677_v44 = vadd.f32 %v4515_v1, %v10260_v17  ;;  %v7452_v17 = vor.u32 %v8410_v34, %v7451_v22  ;;  %v7876_v31 = vor.u32 %v8499_v5, %v7873_v23 }
 0x52c   : > { %v5815_v6 = vadd.f32 %v5652_v60, %v4676_v29  ;;  %v8411_v29 = vld [vmem:[%s8645_s10 + $0x1d4] sm:$0xf]  ;;  %v7461_v60 = vld [vmem:[%s8645_s10 + $0x1d8] sm:$0xf0] }
 0x52d   : > { %7654 = vmatmul.msk.bf16.gmra.mxu2 %vm696_vm0, %v7448_v61  ;;  %v8412_v61 = vld [vmem:[%s8645_s10 + $0x1d4] sm:$0xf0]  ;;  %v7464_v1 = vor.u32 %v8411_v29, %v7461_v60  ;;  %v7475_v29 = vld [vmem:[%s8645_s10 + $0x1f0] sm:$0xf] }
 0x52e   : > { %5895 = vst.msk [vmem:[%s10446_s30 + $0xc0] sm:$0xff] %vm696_vm0, %v5815_v6  ;;  %v8416_v60 = vld [vmem:[%s8645_s10 + $0x1f4] sm:$0xf0] }
 0x530   : > { %v4517_v4 = vpop.f32.mrf.mxu2  ;;  %v4310_v43 = vpop.f32.mrf.mxu0 }
 0x531   : > { %v5653_v18 = vpop.f32.mrf.mxu3  ;;  %v4518_v19 = vadd.f32 %v4517_v4, %v4308_v40 }
 0x532   : > { %v5654_v56 = vadd.f32 %v5653_v18, %v5444_v46  ;;  %v5447_v41 = vpop.f32.mrf.mxu1 }
 0x533   : > { %v4678_v42 = vadd.f32 %v4518_v19, %v10275_v11 }
 0x534   : > { %v5816_v28 = vadd.f32 %v5654_v56, %v4677_v44  ;;  %v8501_v44 = vld [vmem:[%s8645_s10 + $0x1f4] sm:$0xf]  ;;  %v7881_v56 = vld [vmem:[%s8645_s10 + $0x1f8] sm:$0xf0] }
 0x535   : > { %5486 = vmatmul.bf16.gmra.mxu1 %v7864_v50  ;;  %v7879_v50 = vld [vmem:[%s8645_s10 + $0x1f0] sm:$0xf]  ;;  %v7884_v58 = vor.u32 %v8501_v44, %v7881_v56  ;;  %v8506_v56 = vld [vmem:[%s8645_s10 + $0x214] sm:$0xf0] }
 0x536   : > { %5896 = vst.msk [vmem:[%s10446_s30 + $0xc8] sm:$0xff] %vm696_vm0, %v5816_v28  ;;  %8074 = vmatmul.msk.bf16.gmra.mxu3 %vm696_vm0, %v7868_v45  ;;  %v7895_v44 = vld [vmem:[%s8645_s10 + $0x210] sm:$0xf] }
 0x538   : > { %v4519_v53 = vpop.f32.mrf.mxu2  ;;  %v4313_v25 = vpop.f32.mrf.mxu0 }
 0x539   : > { %v5656_v52 = vpop.f32.mrf.mxu3  ;;  %v4520_v27 = vadd.f32 %v4519_v53, %v4310_v43  ;;  %v8502_v43 = vld [vmem:[%s8645_s10 + $0x1f4] sm:$0xf0]  ;;  %v7467_v53 = vld [vmem:[%s8645_s10 + $0x1e0] sm:$0xf] }
 0x53a   : > { %v5657_v12 = vadd.f32 %v5656_v52, %v5447_v41  ;;  %v5449_v9 = vpop.f32.mrf.mxu1  ;;  %v7880_v45 = vor.u32 %v8502_v43, %v7879_v50 }
 0x53b   : > { %4352 = vmatmul.bf16.gmra.mxu0 %v7452_v17  ;;  %v4679_v7 = vadd.f32 %v4520_v27, %v10288_v37  ;;  %v7460_v37 = vor.u32 %v8412_v61, %v7459_v36  ;;  %v8414_v17 = vld [vmem:[%s8645_s10 + $0x1e4] sm:$0xf0] }
 0x53c   : > { %v5817_v47 = vadd.f32 %v5657_v12, %v4678_v42 }
 0x53d   : > { %7655 = vmatmul.msk.bf16.gmra.mxu2 %vm696_vm0, %v7456_v38  ;;  %v8413_v38 = vld [vmem:[%s8645_s10 + $0x1e4] sm:$0xf] }
 0x53e   : > { %5897 = vst.msk [vmem:[%s10446_s30 + $0xd0] sm:$0xff] %vm696_vm0, %v5817_v47 }
 0x540   : > { %v4522_v57 = vpop.f32.mrf.mxu2  ;;  %v4315_v13 = vpop.f32.mrf.mxu0 }
 0x541   : > { %v5658_v11 = vpop.f32.mrf.mxu3  ;;  %v4523_v40 = vadd.f32 %v4522_v57, %v4313_v25  ;;  %v7469_v25 = vld [vmem:[%s8645_s10 + $0x1e8] sm:$0xf0]  ;;  %v7887_v57 = vld [vmem:[%s8645_s10 + $0x200] sm:$0xf] }
 0x542   : > { %v5659_v3 = vadd.f32 %v5658_v11, %v5449_v9  ;;  %v5452_v35 = vpop.f32.mrf.mxu1  ;;  %v7472_v9 = vor.u32 %v8413_v38, %v7469_v25  ;;  %v8504_v11 = vld [vmem:[%s8645_s10 + $0x204] sm:$0xf0]  ;;  %v8417_v25 = vld [vmem:[%s8645_s10 + $0x204] sm:$0xf] }
 0x543   : > { %v4680_v63 = vadd.f32 %v4523_v40, %v10303_v39 }
 0x544   : > { %v5818_v54 = vadd.f32 %v5659_v3, %v4679_v7  ;;  %v7888_v3 = vor.u32 %v8504_v11, %v7887_v57  ;;  %v7903_v57 = vld [vmem:[%s8645_s10 + $0x220] sm:$0xf]  ;;  %v8508_v11 = vld [vmem:[%s8645_s10 + $0x224] sm:$0xf0] }
 0x545   : > { %5491 = vmatmul.bf16.gmra.mxu1 %v7872_v55  ;;  %v8503_v55 = vld [vmem:[%s8645_s10 + $0x204] sm:$0xf] }
 0x546   : > { %5898 = vst.msk [vmem:[%s10446_s30 + $0xd8] sm:$0xff] %vm696_vm0, %v5818_v54  ;;  %8075 = vmatmul.msk.bf16.gmra.mxu3 %vm696_vm0, %v7876_v31 }
 0x548   : > { %v4524_v46 = vpop.f32.mrf.mxu2  ;;  %v4318_v10 = vpop.f32.mrf.mxu0 }
 0x549   : > { %v5661_v6 = vpop.f32.mrf.mxu3  ;;  %v4525_v18 = vadd.f32 %v4524_v46, %v4315_v13  ;;  %v7889_v13 = vld [vmem:[%s8645_s10 + $0x208] sm:$0xf0] }
 0x54a   : > { %v5662_v48 = vadd.f32 %v5661_v6, %v5452_v35  ;;  %v5454_v14 = vpop.f32.mrf.mxu1  ;;  %v7892_v61 = vor.u32 %v8503_v55, %v7889_v13  ;;  %v7477_v6 = vld [vmem:[%s8645_s10 + $0x1f8] sm:$0xf0]  ;;  %v8507_v55 = vld [vmem:[%s8645_s10 + $0x224] sm:$0xf]  ;;  %v7905_v13 = vld [vmem:[%s8645_s10 + $0x228] sm:$0xf0] }
 0x54b   : > { %4357 = vmatmul.bf16.gmra.mxu0 %v7460_v37  ;;  %v4681_v22 = vadd.f32 %v4525_v18, %v10316_v15  ;;  %v7468_v15 = vor.u32 %v8414_v17, %v7467_v53  ;;  %v8415_v37 = vld [vmem:[%s8645_s10 + $0x1f4] sm:$0xf]  ;;  %v7483_v17 = vld [vmem:[%s8645_s10 + $0x200] sm:$0xf] }
 0x54c   : > { %v5819_v4 = vadd.f32 %v5662_v48, %v4680_v63  ;;  %v7480_v63 = vor.u32 %v8415_v37, %v7477_v6  ;;  %v7493_v37 = vld [vmem:[%s8645_s10 + $0x218] sm:$0xf0] }
 0x54d   : > { %7656 = vmatmul.msk.bf16.gmra.mxu2 %vm696_vm0, %v7464_v1 }
 0x54e   : > { %5899 = vst.msk [vmem:[%s10446_s30 + $0xe0] sm:$0xff] %vm696_vm0, %v5819_v4 }
 0x550   : > { %v4527_v41 = vpop.f32.mrf.mxu2  ;;  %v4320_v28 = vpop.f32.mrf.mxu0 }
 0x551   : > { %v5663_v39 = vpop.f32.mrf.mxu3  ;;  %v4528_v52 = vadd.f32 %v4527_v41, %v4318_v10  ;;  %v8505_v41 = vld [vmem:[%s8645_s10 + $0x214] sm:$0xf] }
 0x552   : > { %v5664_v34 = vadd.f32 %v5663_v39, %v5454_v14  ;;  %v5457_v19 = vpop.f32.mrf.mxu1  ;;  %v7897_v39 = vld [vmem:[%s8645_s10 + $0x218] sm:$0xf0] }
 0x553   : > { %v4682_v27 = vadd.f32 %v4528_v52, %v10331_v8  ;;  %v8418_v52 = vld [vmem:[%s8645_s10 + $0x204] sm:$0xf0] }
 0x554   : > { %v5820_v51 = vadd.f32 %v5664_v34, %v4681_v22 }
 0x555   : > { %5496 = vmatmul.bf16.gmra.mxu1 %v7880_v45 }
 0x556   : > { %5900 = vst.msk [vmem:[%s10446_s30 + $0xe8] sm:$0xff] %vm696_vm0, %v5820_v51  ;;  %8076 = vmatmul.msk.bf16.gmra.mxu3 %vm696_vm0, %v7884_v58  ;;  %v7900_v51 = vor.u32 %v8505_v41, %v7897_v39 }
 0x558   : > { %v4529_v42 = vpop.f32.mrf.mxu2  ;;  %v4323_v47 = vpop.f32.mrf.mxu0 }
 0x559   : > { %v5666_v12 = vpop.f32.mrf.mxu3  ;;  %v4530_v23 = vadd.f32 %v4529_v42, %v4320_v28  ;;  %v7896_v28 = vor.u32 %v8506_v56, %v7895_v44  ;;  %v7485_v42 = vld [vmem:[%s8645_s10 + $0x208] sm:$0xf0]  ;;  %v8509_v44 = vld [vmem:[%s8645_s10 + $0x234] sm:$0xf]  ;;  %v7913_v56 = vld [vmem:[%s8645_s10 + $0x238] sm:$0xf0] }
 0x55a   : > { %v5667_v20 = vadd.f32 %v5666_v12, %v5457_v19  ;;  %v5459_v26 = vpop.f32.mrf.mxu1 }
 0x55b   : > { %4362 = vmatmul.bf16.gmra.mxu0 %v7468_v15  ;;  %v4683_v31 = vadd.f32 %v4530_v23, %v10344_v24  ;;  %v7476_v24 = vor.u32 %v8416_v60, %v7475_v29  ;;  %v8420_v29 = vld [vmem:[%s8645_s10 + $0x214] sm:$0xf0] }
 0x55c   : > { %v5821_v5 = vadd.f32 %v5667_v20, %v4682_v27 }
 0x55d   : > { %7657 = vmatmul.msk.bf16.gmra.mxu2 %vm696_vm0, %v7472_v9  ;;  %v7488_v9 = vor.u32 %v8417_v25, %v7485_v42 }
 0x55e   : > { %5901 = vst.msk [vmem:[%s10446_s30 + $0xf0] sm:$0xff] %vm696_vm0, %v5821_v5 }
 0x560   : > { %v4532_v7 = vpop.f32.mrf.mxu2  ;;  %v4325_v35 = vpop.f32.mrf.mxu0 }
 0x561   : > { %v5668_v8 = vpop.f32.mrf.mxu3  ;;  %v4533_v46 = vadd.f32 %v4532_v7, %v4323_v47 }
 0x562   : > { %v5669_v54 = vadd.f32 %v5668_v8, %v5459_v26  ;;  %v5462_v36 = vpop.f32.mrf.mxu1  ;;  %v7904_v8 = vor.u32 %v8508_v11, %v7903_v57  ;;  %v7921_v57 = vld [vmem:[%s8645_s10 + $0x248] sm:$0xf0] }
 0x563   : > { %v4684_v14 = vadd.f32 %v4533_v46, %v10359_v49  ;;  %v8419_v46 = vld [vmem:[%s8645_s10 + $0x214] sm:$0xf] }
 0x564   : > { %v5822_v40 = vadd.f32 %v5669_v54, %v4683_v31 }
 0x565   : > { %5501 = vmatmul.bf16.gmra.mxu1 %v7888_v3 }
 0x566   : > { %5902 = vst.msk [vmem:[%s10446_s30 + $0xf8] sm:$0xff] %vm696_vm0, %v5822_v40  ;;  %8077 = vmatmul.msk.bf16.gmra.mxu3 %vm696_vm0, %v7892_v61  ;;  %v7491_v40 = vld [vmem:[%s8645_s10 + $0x210] sm:$0xf] }
 0x568   : > { %v4534_v1 = vpop.f32.mrf.mxu2  ;;  %v4328_v48 = vpop.f32.mrf.mxu0 }
 0x569   : > { %v5671_v10 = vpop.f32.mrf.mxu3  ;;  %v4535_v43 = vadd.f32 %v4534_v1, %v4325_v35 }
 0x56a   : > { %v5672_v4 = vadd.f32 %v5671_v10, %v5462_v36  ;;  %v5464_v18 = vpop.f32.mrf.mxu1  ;;  %v7908_v36 = vor.u32 %v8507_v55, %v7905_v13 }
 0x56b   : > { %4367 = vmatmul.bf16.gmra.mxu0 %v7476_v24  ;;  %v4685_v34 = vadd.f32 %v4535_v43, %v10372_v21  ;;  %v7484_v21 = vor.u32 %v8418_v52, %v7483_v17  ;;  %v7496_v24 = vor.u32 %v8419_v46, %v7493_v37  ;;  %v8510_v43 = vld [vmem:[%s8645_s10 + $0x234] sm:$0xf0]  ;;  %v8421_v17 = vld [vmem:[%s8645_s10 + $0x224] sm:$0xf]  ;;  %v7501_v52 = vld [vmem:[%s8645_s10 + $0x228] sm:$0xf0] }
 0x56c   : > { %v5823_v50 = vadd.f32 %v5672_v4, %v4684_v14  ;;  %v7504_v42 = vor.u32 %v8421_v17, %v7501_v52 }
 0x56d   : > { %7658 = vmatmul.msk.bf16.gmra.mxu2 %vm696_vm0, %v7480_v63 }
 0x56e   : > { %5903 = vst.msk [vmem:[%s10446_s30 + $0x100] sm:$0xff] %vm696_vm0, %v5823_v50  ;;  %v7911_v50 = vld [vmem:[%s8645_s10 + $0x230] sm:$0xf] }
 0x56f   : > { %v7912_v39 = vor.u32 %v8510_v43, %v7911_v50  ;;  %v7929_v50 = vld [vmem:[%s8645_s10 + $0x258] sm:$0xf0] }
 0x570   : > { %v4537_v45 = vpop.f32.mrf.mxu2  ;;  %v4330_v22 = vpop.f32.mrf.mxu0 }
 0x571   : > { %v5673_v49 = vpop.f32.mrf.mxu3  ;;  %v4538_v38 = vadd.f32 %v4537_v45, %v4328_v48 }
 0x572   : > { %v5674_v19 = vadd.f32 %v5673_v49, %v5464_v18  ;;  %v5467_v58 = vpop.f32.mrf.mxu1 }
 0x573   : > { %v4686_v27 = vadd.f32 %v4538_v38, %v10387_v0 }
 0x574   : > { %v5824_v53 = vadd.f32 %v5674_v19, %v4685_v34  ;;  %v7916_v34 = vor.u32 %v8509_v44, %v7913_v56 }
 0x575   : > { %5506 = vmatmul.bf16.gmra.mxu1 %v7896_v28 }
 0x576   : > { %5904 = vst.msk [vmem:[%s10446_s30 + $0x108] sm:$0xff] %vm696_vm0, %v5824_v53  ;;  %8078 = vmatmul.msk.bf16.gmra.mxu3 %vm696_vm0, %v7900_v51  ;;  %v8422_v51 = vld [vmem:[%s8645_s10 + $0x224] sm:$0xf0] }
 0x578   : > { %v4539_v15 = vpop.f32.mrf.mxu2  ;;  %v4333_v47 = vpop.f32.mrf.mxu0 }
 0x579   : > { %v5676_v12 = vpop.f32.mrf.mxu3  ;;  %v4540_v23 = vadd.f32 %v4539_v15, %v4330_v22 }
 0x57a   : > { %v5677_v20 = vadd.f32 %v5676_v12, %v5467_v58  ;;  %v5469_v26 = vpop.f32.mrf.mxu1  ;;  %v7499_v58 = vld [vmem:[%s8645_s10 + $0x220] sm:$0xf] }
 0x57b   : > { %4372 = vmatmul.bf16.gmra.mxu0 %v7484_v21  ;;  %v4687_v35 = vadd.f32 %v4540_v23, %v10400_v32  ;;  %v7492_v32 = vor.u32 %v8420_v29, %v7491_v40  ;;  %v11338_v21 = vld [vmem:[#allocation107_spill] sm:$0xff]  ;;  %v8511_v23 = vld [vmem:[%s8645_s10 + $0x244] sm:$0xf]  ;;  %v8423_v40 = vld [vmem:[%s8645_s10 + $0x234] sm:$0xf] }
 0x57c   : > { %v5825_v5 = vadd.f32 %v5677_v20, %v4686_v27  ;;  %v7509_v29 = vld [vmem:[%s8645_s10 + $0x238] sm:$0xf0] }
 0x57d   : > { %7659 = vmatmul.msk.bf16.gmra.mxu2 %vm696_vm0, %v7488_v9  ;;  %v7512_v37 = vor.u32 %v8423_v40, %v7509_v29  ;;  %v7525_v40 = vld [vmem:[%s8645_s10 + $0x258] sm:$0xf0] }
 0x57e   : > { %5905 = vst.msk [vmem:[%s10446_s30 + $0x110] sm:$0xff] %vm696_vm0, %v5825_v5  ;;  %v8512_v5 = vld [vmem:[%s8645_s10 + $0x244] sm:$0xf0] }
 0x580   : > { %v4542_v7 = vpop.f32.mrf.mxu2  ;;  %v4335_v3 = vpop.f32.mrf.mxu0 }
 0x581   : > { %v5678_v0 = vpop.f32.mrf.mxu3  ;;  %v4543_v60 = vadd.f32 %v4542_v7, %v4333_v47 }
 0x582   : > { %v5679_v31 = vadd.f32 %v5678_v0, %v5469_v26  ;;  %v5472_v54 = vpop.f32.mrf.mxu1  ;;  %v7919_v26 = vld [vmem:[%s8645_s10 + $0x240] sm:$0xf] }
 0x583   : > { %v4688_v63 = vadd.f32 %v4543_v60, %v10415_v2  ;;  %v7920_v13 = vor.u32 %v8512_v5, %v7919_v26  ;;  %v8515_v26 = vld [vmem:[%s8645_s10 + $0x264] sm:$0xf]  ;;  %v7937_v5 = vld [vmem:[%s8645_s10 + $0x268] sm:$0xf0] }
 0x584   : > { %v5826_v61 = vadd.f32 %v5679_v31, %v4687_v35  ;;  %v7924_v35 = vor.u32 %v8511_v23, %v7921_v57 }
 0x585   : > { %5511 = vmatmul.bf16.gmra.mxu1 %v7904_v8 }
 0x586   : > { %5906 = vst.msk [vmem:[%s10446_s30 + $0x118] sm:$0xff] %vm696_vm0, %v5826_v61  ;;  %8079 = vmatmul.msk.bf16.gmra.mxu3 %vm696_vm0, %v7908_v36  ;;  %v8424_v36 = vld [vmem:[%s8645_s10 + $0x234] sm:$0xf0] }
 0x588   : > { %v4544_v6 = vpop.f32.mrf.mxu2  ;;  %v4338_v10 = vpop.f32.mrf.mxu0 }
 0x589   : > { %v5681_v1 = vpop.f32.mrf.mxu3  ;;  %v4545_v18 = vadd.f32 %v4544_v6, %v4335_v3 }
 0x58a   : > { %v5682_v48 = vadd.f32 %v5681_v1, %v5472_v54  ;;  %v5474_v14 = vpop.f32.mrf.mxu1  ;;  %v7507_v54 = vld [vmem:[%s8645_s10 + $0x230] sm:$0xf] }
 0x58b   : > { %4377 = vmatmul.bf16.gmra.mxu0 %v7492_v32  ;;  %v4689_v49 = vadd.f32 %v4545_v18, %v10427_v59  ;;  %v7500_v59 = vor.u32 %v8422_v51, %v7499_v58  ;;  %v11339_v32 = vld [vmem:[#allocation109_spill] sm:$0xff]  ;;  %v8513_v18 = vld [vmem:[%s8645_s10 + $0x254] sm:$0xf]  ;;  %v8425_v51 = vld [vmem:[%s8645_s10 + $0x244] sm:$0xf] }
 0x58c   : > { %v5827_v4 = vadd.f32 %v5682_v48, %v4688_v63 }
 0x58d   : > { %7660 = vmatmul.msk.bf16.gmra.mxu2 %vm696_vm0, %v7496_v24 }
 0x58e   : > { %5907 = vst.msk [vmem:[%s10446_s30 + $0x120] sm:$0xff] %vm696_vm0, %v5827_v4  ;;  %v8514_v4 = vld [vmem:[%s8645_s10 + $0x254] sm:$0xf0] }
 0x590   : > { %v4547_v41 = vpop.f32.mrf.mxu2  ;;  %v4340_v45 = vpop.f32.mrf.mxu0 }
 0x591   : > { %v5683_v2 = vpop.f32.mrf.mxu3  ;;  %v4548_v53 = vadd.f32 %v4547_v41, %v4338_v10 }
 0x592   : > { %v5684_v28 = vadd.f32 %v5683_v2, %v5474_v14  ;;  %v5477_v22 = vpop.f32.mrf.mxu1  ;;  %v7927_v14 = vld [vmem:[%s8645_s10 + $0x250] sm:$0xf]  ;;  %v11340_v2 = vld [vmem:[#allocation111_spill] sm:$0xff] }
 0x593   : > { %v4690_v12 = vadd.f32 %v4548_v53, %v11338_v21  ;;  %v7928_v56 = vor.u32 %v8514_v4, %v7927_v14  ;;  %v7517_v53 = vld [vmem:[%s8645_s10 + $0x248] sm:$0xf0]  ;;  %v8518_v14 = vld [vmem:[%s8645_s10 + $0x274] sm:$0xf0]  ;;  %v8517_v4 = vld [vmem:[%s8645_s10 + $0x274] sm:$0xf] }
 0x594   : > { %v5828_v19 = vadd.f32 %v5684_v28, %v4689_v49  ;;  %v7932_v28 = vor.u32 %v8513_v18, %v7929_v50  ;;  %v7945_v18 = vld [vmem:[%s8645_s10 + $0x278] sm:$0xf0] }
 0x595   : > { %5516 = vmatmul.bf16.gmra.mxu1 %v7912_v39 }
 0x596   : > { %5908 = vst.msk [vmem:[%s10446_s30 + $0x128] sm:$0xff] %vm696_vm0, %v5828_v19  ;;  %8080 = vmatmul.msk.bf16.gmra.mxu3 %vm696_vm0, %v7916_v34  ;;  %v7515_v34 = vld [vmem:[%s8645_s10 + $0x240] sm:$0xf]  ;;  %v8426_v19 = vld [vmem:[%s8645_s10 + $0x244] sm:$0xf0] }
 0x597   : > { %v7516_v52 = vor.u32 %v8426_v19, %v7515_v34  ;;  %v8430_v34 = vld [vmem:[%s8645_s10 + $0x264] sm:$0xf0] }
 0x598   : > { %v4549_v38 = vpop.f32.mrf.mxu2  ;;  %v4343_v15 = vpop.f32.mrf.mxu0 }
 0x599   : > { %v5686_v25 = vpop.f32.mrf.mxu3  ;;  %v4550_v20 = vadd.f32 %v4549_v38, %v4340_v45 }
 0x59a   : > { %v5687_v9 = vadd.f32 %v5686_v25, %v5477_v22  ;;  %v5479_v47 = vpop.f32.mrf.mxu1 }
 0x59b   : > { %4382 = vmatmul.bf16.gmra.mxu0 %v7500_v59  ;;  %v4691_v0 = vadd.f32 %v4550_v20, %v9844_v30  ;;  %v7508_v30 = vor.u32 %v8424_v36, %v7507_v54  ;;  %v7520_v59 = vor.u32 %v8425_v51, %v7517_v53  ;;  %v8516_v20 = vld [vmem:[%s8645_s10 + $0x264] sm:$0xf0]  ;;  %v8428_v54 = vld [vmem:[%s8645_s10 + $0x254] sm:$0xf0]  ;;  %v7533_v51 = vld [vmem:[%s8645_s10 + $0x268] sm:$0xf0] }
 0x59c   : > { %v5829_v27 = vadd.f32 %v5687_v9, %v4690_v12 }
 0x59d   : > { %7661 = vmatmul.msk.bf16.gmra.mxu2 %vm696_vm0, %v7504_v42  ;;  %v11341_v42 = vld [vmem:[#allocation113_spill] sm:$0xff] }
 0x59e   : > { %5909 = vst.msk [vmem:[%s10446_s30 + $0x130] sm:$0xff] %vm696_vm0, %v5829_v27  ;;  %v7935_v27 = vld [vmem:[%s8645_s10 + $0x260] sm:$0xf] }
 0x5a0   : > { %v4552_v11 = vpop.f32.mrf.mxu2  ;;  %v4345_v7 = vpop.f32.mrf.mxu0 }
 0x5a1   : > { %v5688_v55 = vpop.f32.mrf.mxu3  ;;  %v4553_v61 = vadd.f32 %v4552_v11, %v4343_v15  ;;  %v7936_v11 = vor.u32 %v8516_v20, %v7935_v27  ;;  %v8520_v27 = vld [vmem:[%s8645_s10 + $0x284] sm:$0xf0]  ;;  %v8519_v20 = vld [vmem:[%s8645_s10 + $0x284] sm:$0xf] }
 0x5a2   : > { %v5689_v8 = vadd.f32 %v5688_v55, %v5479_v47  ;;  %v5482_v3 = vpop.f32.mrf.mxu1 }
 0x5a3   : > { %v4692_v1 = vadd.f32 %v4553_v61, %v11339_v32  ;;  %v8427_v61 = vld [vmem:[%s8645_s10 + $0x254] sm:$0xf] }
 0x5a4   : > { %v5830_v31 = vadd.f32 %v5689_v8, %v4691_v0 }
 0x5a5   : > { %5521 = vmatmul.bf16.gmra.mxu1 %v7920_v13  ;;  %v11342_v13 = vld [vmem:[#allocation114_spill] sm:$0xff] }
 0x5a6   : > { %5910 = vst.msk [vmem:[%s10446_s30 + $0x138] sm:$0xff] %vm696_vm0, %v5830_v31  ;;  %8081 = vmatmul.msk.bf16.gmra.mxu3 %vm696_vm0, %v7924_v35  ;;  %v7523_v31 = vld [vmem:[%s8645_s10 + $0x250] sm:$0xf] }
 0x5a8   : > { %v4554_v60 = vpop.f32.mrf.mxu2  ;;  %v4348_v6 = vpop.f32.mrf.mxu0 }
 0x5a9   : > { %v5691_v46 = vpop.f32.mrf.mxu3  ;;  %v4555_v48 = vadd.f32 %v4554_v60, %v4345_v7  ;;  %v7524_v60 = vor.u32 %v8428_v54, %v7523_v31  ;;  %v8432_v31 = vld [vmem:[%s8645_s10 + $0x274] sm:$0xf0] }
 0x5aa   : > { %v5692_v24 = vadd.f32 %v5691_v46, %v5482_v3  ;;  %v5484_v10 = vpop.f32.mrf.mxu1  ;;  %v7940_v3 = vor.u32 %v8515_v26, %v7937_v5  ;;  %v7528_v46 = vor.u32 %v8427_v61, %v7525_v40  ;;  %v7953_v26 = vld [vmem:[%s8645_s10 + $0x288] sm:$0xf0]  ;;  %v7541_v61 = vld [vmem:[%s8645_s10 + $0x278] sm:$0xf0] }
 0x5ab   : > { %4387 = vmatmul.bf16.gmra.mxu0 %v7508_v30  ;;  %v4693_v39 = vadd.f32 %v4555_v48, %v11340_v2  ;;  %v7943_v48 = vld [vmem:[%s8645_s10 + $0x270] sm:$0xf] }
 0x5ac   : > { %v5831_v63 = vadd.f32 %v5692_v24, %v4692_v1 }
 0x5ad   : > { %7662 = vmatmul.msk.bf16.gmra.mxu2 %vm696_vm0, %v7512_v37 }
 0x5ae   : > { %5911 = vst.msk [vmem:[%s10446_s30 + $0x140] sm:$0xff] %vm696_vm0, %v5831_v63 }
 0x5b0   : > { %v4557_v43 = vpop.f32.mrf.mxu2  ;;  %v4350_v41 = vpop.f32.mrf.mxu0 }
 0x5b1   : > { %v5693_v44 = vpop.f32.mrf.mxu3  ;;  %v4558_v58 = vadd.f32 %v4557_v43, %v4348_v6  ;;  %v11343_v6 = vld [vmem:[#allocation2_spill] sm:$0xff] }
 0x5b2   : > { %v5694_v45 = vadd.f32 %v5693_v44, %v5484_v10  ;;  %v5487_v49 = vpop.f32.mrf.mxu1  ;;  %v7944_v44 = vor.u32 %v8518_v14, %v7943_v48  ;;  %v8522_v48 = vld [vmem:[%s8645_s10 + $0x294] sm:$0xf0]  ;;  %v8521_v14 = vld [vmem:[%s8645_s10 + $0x294] sm:$0xf] }
 0x5b3   : > { %v4694_v15 = vadd.f32 %v4558_v58, %v11341_v42  ;;  %v8429_v58 = vld [vmem:[%s8645_s10 + $0x264] sm:$0xf] }
 0x5b4   : > { %v5832_v22 = vadd.f32 %v5694_v45, %v4693_v39 }
 0x5b5   : > { %5526 = vmatmul.bf16.gmra.mxu1 %v7928_v56 }
 0x5b6   : > { %5912 = vst.msk [vmem:[%s10446_s30 + $0x148] sm:$0xff] %vm696_vm0, %v5832_v22  ;;  %8082 = vmatmul.msk.bf16.gmra.mxu3 %vm696_vm0, %v7932_v28  ;;  %v7531_v22 = vld [vmem:[%s8645_s10 + $0x260] sm:$0xf] }
 0x5b8   : > { %v4559_v17 = vpop.f32.mrf.mxu2  ;;  %v4353_v25 = vpop.f32.mrf.mxu0 }
 0x5b9   : > { %v5696_v38 = vpop.f32.mrf.mxu3  ;;  %v4560_v47 = vadd.f32 %v4559_v17, %v4350_v41  ;;  %v11344_v41 = vld [vmem:[#allocation3_spill] sm:$0xff]  ;;  %v7532_v17 = vor.u32 %v8430_v34, %v7531_v22 }
 0x5ba   : > { %v5697_v21 = vadd.f32 %v5696_v38, %v5487_v49  ;;  %v5489_v12 = vpop.f32.mrf.mxu1  ;;  %v7948_v49 = vor.u32 %v8517_v4, %v7945_v18  ;;  %v7536_v38 = vor.u32 %v8429_v58, %v7533_v51  ;;  %v7961_v4 = vld [vmem:[%s8645_s10 + $0x298] sm:$0xf0]  ;;  %v8434_v22 = vld [vmem:[%s8645_s10 + $0x284] sm:$0xf0]  ;;  %v7549_v58 = vld [vmem:[%s8645_s10 + $0x288] sm:$0xf0] }
 0x5bb   : > { %4392 = vmatmul.bf16.gmra.mxu0 %v7516_v52  ;;  %v4695_v7 = vadd.f32 %v4560_v47, %v11342_v13  ;;  %v7951_v47 = vld [vmem:[%s8645_s10 + $0x280] sm:$0xf] }
 0x5bc   : > { %v5833_v9 = vadd.f32 %v5697_v21, %v4694_v15 }
 0x5bd   : > { %7663 = vmatmul.msk.bf16.gmra.mxu2 %vm696_vm0, %v7520_v59 }
 0x5be   : > { %5913 = vst.msk [vmem:[%s10446_s30 + $0x150] sm:$0xff] %vm696_vm0, %v5833_v9 }
 0x5c0   : > { %v4562_v23 = vpop.f32.mrf.mxu2  ;;  %v4355_v55 = vpop.f32.mrf.mxu0 }
 0x5c1   : > { %v5698_v57 = vpop.f32.mrf.mxu3  ;;  %v4563_v36 = vadd.f32 %v4562_v23, %v4353_v25  ;;  %v11345_v25 = vld [vmem:[#allocation4_spill] sm:$0xff] }
 0x5c2   : > { %v5699_v0 = vadd.f32 %v5698_v57, %v5489_v12  ;;  %v5492_v8 = vpop.f32.mrf.mxu1  ;;  %v7952_v57 = vor.u32 %v8520_v27, %v7951_v47  ;;  %v8524_v47 = vld [vmem:[%s8645_s10 + $0x2a4] sm:$0xf0]  ;;  %v8523_v27 = vld [vmem:[%s8645_s10 + $0x2a4] sm:$0xf] }
 0x5c3   : > { %v4696_v32 = vadd.f32 %v4563_v36, %v11343_v6  ;;  %v8431_v36 = vld [vmem:[%s8645_s10 + $0x274] sm:$0xf] }
 0x5c4   : > { %v5834_v35 = vadd.f32 %v5699_v0, %v4695_v7 }
 0x5c5   : > { %5531 = vmatmul.bf16.gmra.mxu1 %v7936_v11 }
 0x5c6   : > { %5914 = vst.msk [vmem:[%s10446_s30 + $0x158] sm:$0xff] %vm696_vm0, %v5834_v35  ;;  %8083 = vmatmul.msk.bf16.gmra.mxu3 %vm696_vm0, %v7940_v3  ;;  %v7539_v35 = vld [vmem:[%s8645_s10 + $0x270] sm:$0xf] }
 0x5c8   : > { %v4564_v29 = vpop.f32.mrf.mxu2  ;;  %v4358_v37 = vpop.f32.mrf.mxu0 }
 0x5c9   : > { %v5701_v30 = vpop.f32.mrf.mxu3  ;;  %v4565_v63 = vadd.f32 %v4564_v29, %v4355_v55  ;;  %v11346_v55 = vld [vmem:[#allocation115_spill] sm:$0xff]  ;;  %v7540_v29 = vor.u32 %v8432_v31, %v7539_v35  ;;  %v8436_v35 = vld [vmem:[%s8645_s10 + $0x294] sm:$0xf0] }
 0x5ca   : > { %v5702_v1 = vadd.f32 %v5701_v30, %v5492_v8  ;;  %v5494_v24 = vpop.f32.mrf.mxu1  ;;  %v7956_v8 = vor.u32 %v8519_v20, %v7953_v26  ;;  %v7544_v30 = vor.u32 %v8431_v36, %v7541_v61  ;;  %v7969_v20 = vld [vmem:[%s8645_s10 + $0x2a8] sm:$0xf0]  ;;  %v7557_v36 = vld [vmem:[%s8645_s10 + $0x298] sm:$0xf0] }
 0x5cb   : > { %4397 = vmatmul.bf16.gmra.mxu0 %v7524_v60  ;;  %v4697_v2 = vadd.f32 %v4565_v63, %v11344_v41  ;;  %v7959_v63 = vld [vmem:[%s8645_s10 + $0x290] sm:$0xf] }
 0x5cc   : > { %v5835_v10 = vadd.f32 %v5702_v1, %v4696_v32 }
 0x5cd   : > { %7664 = vmatmul.msk.bf16.gmra.mxu2 %vm696_vm0, %v7528_v46 }
 0x5ce   : > { %5915 = vst.msk [vmem:[%s10446_s30 + $0x160] sm:$0xff] %vm696_vm0, %v5835_v10 }
 0x5d0   : > { %v4567_v50 = vpop.f32.mrf.mxu2  ;;  %v4360_v56 = vpop.f32.mrf.mxu0 }
 0x5d1   : > { %v5703_v43 = vpop.f32.mrf.mxu3  ;;  %v4568_v19 = vadd.f32 %v4567_v50, %v4358_v37  ;;  %v11347_v37 = vld [vmem:[#allocation5_spill] sm:$0xff] }
 0x5d2   : > { %v5704_v39 = vadd.f32 %v5703_v43, %v5494_v24  ;;  %v5497_v45 = vpop.f32.mrf.mxu1  ;;  %v7960_v43 = vor.u32 %v8522_v48, %v7959_v63  ;;  %v8526_v63 = vld [vmem:[%s8645_s10 + $0x2b4] sm:$0xf0]  ;;  %v8525_v48 = vld [vmem:[%s8645_s10 + $0x2b4] sm:$0xf] }
 0x5d3   : > { %v4698_v42 = vadd.f32 %v4568_v19, %v11345_v25  ;;  %v8433_v19 = vld [vmem:[%s8645_s10 + $0x284] sm:$0xf] }
 0x5d4   : > { %v5836_v28 = vadd.f32 %v5704_v39, %v4697_v2 }
 0x5d5   : > { %5536 = vmatmul.bf16.gmra.mxu1 %v7944_v44 }
 0x5d6   : > { %5916 = vst.msk [vmem:[%s10446_s30 + $0x168] sm:$0xff] %vm696_vm0, %v5836_v28  ;;  %8084 = vmatmul.msk.bf16.gmra.mxu3 %vm696_vm0, %v7948_v49  ;;  %v7547_v28 = vld [vmem:[%s8645_s10 + $0x280] sm:$0xf] }
 0x5d8   : > { %v4569_v53 = vpop.f32.mrf.mxu2  ;;  %v4363_v59 = vpop.f32.mrf.mxu0 }
 0x5d9   : > { %v5706_v52 = vpop.f32.mrf.mxu3  ;;  %v4570_v9 = vadd.f32 %v4569_v53, %v4360_v56  ;;  %v11348_v56 = vld [vmem:[#allocation6_spill] sm:$0xff]  ;;  %v7548_v53 = vor.u32 %v8434_v22, %v7547_v28  ;;  %v8438_v28 = vld [vmem:[%s8645_s10 + $0x2a4] sm:$0xf0] }
 0x5da   : > { %v5707_v15 = vadd.f32 %v5706_v52, %v5497_v45  ;;  %v5499_v21 = vpop.f32.mrf.mxu1  ;;  %v7964_v45 = vor.u32 %v8521_v14, %v7961_v4  ;;  %v7552_v52 = vor.u32 %v8433_v19, %v7549_v58  ;;  %v7977_v14 = vld [vmem:[%s8645_s10 + $0x2b8] sm:$0xf0]  ;;  %v7565_v19 = vld [vmem:[%s8645_s10 + $0x2a8] sm:$0xf0] }
 0x5db   : > { %4402 = vmatmul.bf16.gmra.mxu0 %v7532_v17  ;;  %v4699_v13 = vadd.f32 %v4570_v9, %v11346_v55  ;;  %v7967_v9 = vld [vmem:[%s8645_s10 + $0x2a0] sm:$0xf] }
 0x5dc   : > { %v5837_v12 = vadd.f32 %v5707_v15, %v4698_v42 }
 0x5dd   : > { %7665 = vmatmul.msk.bf16.gmra.mxu2 %vm696_vm0, %v7536_v38 }
 0x5de   : > { %5917 = vst.msk [vmem:[%s10446_s30 + $0x170] sm:$0xff] %vm696_vm0, %v5837_v12 }
 0x5e0   : > { %v4572_v5 = vpop.f32.mrf.mxu2  ;;  %v4365_v11 = vpop.f32.mrf.mxu0 }
 0x5e1   : > { %v5708_v23 = vpop.f32.mrf.mxu3  ;;  %v4573_v54 = vadd.f32 %v4572_v5, %v4363_v59  ;;  %v11349_v59 = vld [vmem:[#allocation7_spill] sm:$0xff] }
 0x5e2   : > { %v5709_v7 = vadd.f32 %v5708_v23, %v5499_v21  ;;  %v5502_v0 = vpop.f32.mrf.mxu1  ;;  %v7968_v23 = vor.u32 %v8524_v47, %v7967_v9  ;;  %v8528_v9 = vld [vmem:[%s8645_s10 + $0x2c4] sm:$0xf0]  ;;  %v8527_v47 = vld [vmem:[%s8645_s10 + $0x2c4] sm:$0xf] }
 0x5e3   : > { %v4700_v6 = vadd.f32 %v4573_v54, %v11347_v37  ;;  %v8435_v54 = vld [vmem:[%s8645_s10 + $0x294] sm:$0xf] }
 0x5e4   : > { %v5838_v3 = vadd.f32 %v5709_v7, %v4699_v13 }
 0x5e5   : > { %5541 = vmatmul.bf16.gmra.mxu1 %v7952_v57 }
 0x5e6   : > { %5918 = vst.msk [vmem:[%s10446_s30 + $0x178] sm:$0xff] %vm696_vm0, %v5838_v3  ;;  %8085 = vmatmul.msk.bf16.gmra.mxu3 %vm696_vm0, %v7956_v8  ;;  %v7555_v3 = vld [vmem:[%s8645_s10 + $0x290] sm:$0xf] }
 0x5e8   : > { %v4574_v40 = vpop.f32.mrf.mxu2  ;;  %v4368_v46 = vpop.f32.mrf.mxu0 }
 0x5e9   : > { %v5711_v60 = vpop.f32.mrf.mxu3  ;;  %v4575_v10 = vadd.f32 %v4574_v40, %v4365_v11  ;;  %v11350_v11 = vld [vmem:[#allocation8_spill] sm:$0xff]  ;;  %v7556_v40 = vor.u32 %v8436_v35, %v7555_v3  ;;  %v8440_v3 = vld [vmem:[%s8645_s10 + $0x2b4] sm:$0xf0] }
 0x5ea   : > { %v5712_v32 = vadd.f32 %v5711_v60, %v5502_v0  ;;  %v5504_v1 = vpop.f32.mrf.mxu1  ;;  %v7972_v0 = vor.u32 %v8523_v27, %v7969_v20  ;;  %v7560_v60 = vor.u32 %v8435_v54, %v7557_v36  ;;  %v7985_v27 = vld [vmem:[%s8645_s10 + $0x2c8] sm:$0xf0]  ;;  %v7573_v54 = vld [vmem:[%s8645_s10 + $0x2b8] sm:$0xf0] }
 0x5eb   : > { %4407 = vmatmul.bf16.gmra.mxu0 %v7540_v29  ;;  %v4701_v41 = vadd.f32 %v4575_v10, %v11348_v56  ;;  %v7975_v10 = vld [vmem:[%s8645_s10 + $0x2b0] sm:$0xf] }
 0x5ec   : > { %v5839_v24 = vadd.f32 %v5712_v32, %v4700_v6 }
 0x5ed   : > { %7666 = vmatmul.msk.bf16.gmra.mxu2 %vm696_vm0, %v7544_v30 }
 0x5ee   : > { %5919 = vst.msk [vmem:[%s10446_s30 + $0x180] sm:$0xff] %vm696_vm0, %v5839_v24 }
 0x5f0   : > { %v4577_v18 = vpop.f32.mrf.mxu2  ;;  %v4370_v44 = vpop.f32.mrf.mxu0 }
 0x5f1   : > { %v5713_v50 = vpop.f32.mrf.mxu3  ;;  %v4578_v34 = vadd.f32 %v4577_v18, %v4368_v46  ;;  %v11351_v46 = vld [vmem:[#allocation9_spill] sm:$0xff] }
 0x5f2   : > { %v5714_v2 = vadd.f32 %v5713_v50, %v5504_v1  ;;  %v5507_v39 = vpop.f32.mrf.mxu1  ;;  %v7976_v50 = vor.u32 %v8526_v63, %v7975_v10  ;;  %v8530_v10 = vld [vmem:[%s8645_s10 + $0x2d4] sm:$0xf0]  ;;  %v8529_v63 = vld [vmem:[%s8645_s10 + $0x2d4] sm:$0xf] }
 0x5f3   : > { %v4702_v25 = vadd.f32 %v4578_v34, %v11349_v59  ;;  %v8437_v34 = vld [vmem:[%s8645_s10 + $0x2a4] sm:$0xf] }
 0x5f4   : > { %v5840_v49 = vadd.f32 %v5714_v2, %v4701_v41 }
 0x5f5   : > { %5546 = vmatmul.bf16.gmra.mxu1 %v7960_v43 }
 0x5f6   : > { %5920 = vst.msk [vmem:[%s10446_s30 + $0x188] sm:$0xff] %vm696_vm0, %v5840_v49  ;;  %8086 = vmatmul.msk.bf16.gmra.mxu3 %vm696_vm0, %v7964_v45  ;;  %v7563_v49 = vld [vmem:[%s8645_s10 + $0x2a0] sm:$0xf] }
 0x5f8   : > { %v4579_v51 = vpop.f32.mrf.mxu2  ;;  %v4373_v38 = vpop.f32.mrf.mxu0 }
 0x5f9   : > { %v5716_v17 = vpop.f32.mrf.mxu3  ;;  %v4580_v12 = vadd.f32 %v4579_v51, %v4370_v44  ;;  %v11352_v44 = vld [vmem:[#allocation10_spill] sm:$0xff]  ;;  %v7564_v51 = vor.u32 %v8438_v28, %v7563_v49  ;;  %v8442_v49 = vld [vmem:[%s8645_s10 + $0x2c4] sm:$0xf0] }
 0x5fa   : > { %v5717_v42 = vadd.f32 %v5716_v17, %v5507_v39  ;;  %v5509_v15 = vpop.f32.mrf.mxu1  ;;  %v7980_v39 = vor.u32 %v8525_v48, %v7977_v14  ;;  %v7568_v17 = vor.u32 %v8437_v34, %v7565_v19  ;;  %v7993_v48 = vld [vmem:[%s8645_s10 + $0x2d8] sm:$0xf0]  ;;  %v7581_v34 = vld [vmem:[%s8645_s10 + $0x2c8] sm:$0xf0] }
 0x5fb   : > { %4412 = vmatmul.bf16.gmra.mxu0 %v7548_v53  ;;  %v4703_v55 = vadd.f32 %v4580_v12, %v11350_v11  ;;  %v7983_v12 = vld [vmem:[%s8645_s10 + $0x2c0] sm:$0xf] }
 0x5fc   : > { %v5841_v21 = vadd.f32 %v5717_v42, %v4702_v25 }
 0x5fd   : > { %7667 = vmatmul.msk.bf16.gmra.mxu2 %vm696_vm0, %v7552_v52 }
 0x5fe   : > { %5921 = vst.msk [vmem:[%s10446_s30 + $0x190] sm:$0xff] %vm696_vm0, %v5841_v21 }
 0x600   : > { %v4582_v26 = vpop.f32.mrf.mxu2  ;;  %v4375_v57 = vpop.f32.mrf.mxu0 }
 0x601   : > { %v5718_v5 = vpop.f32.mrf.mxu3  ;;  %v4583_v31 = vadd.f32 %v4582_v26, %v4373_v38  ;;  %v11353_v38 = vld [vmem:[#allocation11_spill] sm:$0xff] }
 0x602   : > { %v5719_v13 = vadd.f32 %v5718_v5, %v5509_v15  ;;  %v5512_v7 = vpop.f32.mrf.mxu1  ;;  %v7984_v5 = vor.u32 %v8528_v9, %v7983_v12  ;;  %v8532_v12 = vld [vmem:[%s8645_s10 + $0x2e4] sm:$0xf0]  ;;  %v8531_v9 = vld [vmem:[%s8645_s10 + $0x2e4] sm:$0xf] }
 0x603   : > { %v4704_v37 = vadd.f32 %v4583_v31, %v11351_v46  ;;  %v8439_v31 = vld [vmem:[%s8645_s10 + $0x2b4] sm:$0xf] }
 0x604   : > { %v5842_v8 = vadd.f32 %v5719_v13, %v4703_v55 }
 0x605   : > { %5551 = vmatmul.bf16.gmra.mxu1 %v7968_v23 }
 0x606   : > { %5922 = vst.msk [vmem:[%s10446_s30 + $0x198] sm:$0xff] %vm696_vm0, %v5842_v8  ;;  %8087 = vmatmul.msk.bf16.gmra.mxu3 %vm696_vm0, %v7972_v0  ;;  %v7571_v8 = vld [vmem:[%s8645_s10 + $0x2b0] sm:$0xf] }
 0x608   : > { %v4584_v61 = vpop.f32.mrf.mxu2  ;;  %v4378_v30 = vpop.f32.mrf.mxu0 }
 0x609   : > { %v5721_v29 = vpop.f32.mrf.mxu3  ;;  %v4585_v24 = vadd.f32 %v4584_v61, %v4375_v57  ;;  %v11354_v57 = vld [vmem:[#allocation12_spill] sm:$0xff]  ;;  %v7572_v61 = vor.u32 %v8440_v3, %v7571_v8  ;;  %v8444_v8 = vld [vmem:[%s8645_s10 + $0x2d4] sm:$0xf0] }
 0x60a   : > { %v5722_v6 = vadd.f32 %v5721_v29, %v5512_v7  ;;  %v5514_v32 = vpop.f32.mrf.mxu1  ;;  %v7988_v7 = vor.u32 %v8527_v47, %v7985_v27  ;;  %v7576_v29 = vor.u32 %v8439_v31, %v7573_v54  ;;  %v8001_v47 = vld [vmem:[%s8645_s10 + $0x2e8] sm:$0xf0]  ;;  %v7589_v31 = vld [vmem:[%s8645_s10 + $0x2d8] sm:$0xf0] }
 0x60b   : > { %4417 = vmatmul.bf16.gmra.mxu0 %v7556_v40  ;;  %v4705_v56 = vadd.f32 %v4585_v24, %v11352_v44  ;;  %v7991_v24 = vld [vmem:[%s8645_s10 + $0x2d0] sm:$0xf] }
 0x60c   : > { %v5843_v1 = vadd.f32 %v5722_v6, %v4704_v37 }
 0x60d   : > { %7668 = vmatmul.msk.bf16.gmra.mxu2 %vm696_vm0, %v7560_v60 }
 0x60e   : > { %5923 = vst.msk [vmem:[%s10446_s30 + $0x1a0] sm:$0xff] %vm696_vm0, %v5843_v1 }
 0x610   : > { %v4587_v4 = vpop.f32.mrf.mxu2  ;;  %v4380_v43 = vpop.f32.mrf.mxu0 }
 0x611   : > { %v5723_v18 = vpop.f32.mrf.mxu3  ;;  %v4588_v22 = vadd.f32 %v4587_v4, %v4378_v30  ;;  %v11355_v30 = vld [vmem:[#allocation13_spill] sm:$0xff] }
 0x612   : > { %v5724_v41 = vadd.f32 %v5723_v18, %v5514_v32  ;;  %v5517_v2 = vpop.f32.mrf.mxu1  ;;  %v7992_v18 = vor.u32 %v8530_v10, %v7991_v24  ;;  %v8534_v24 = vld [vmem:[%s8645_s10 + $0x2f4] sm:$0xf0]  ;;  %v8533_v10 = vld [vmem:[%s8645_s10 + $0x2f4] sm:$0xf] }
 0x613   : > { %v4706_v59 = vadd.f32 %v4588_v22, %v11353_v38  ;;  %v8441_v22 = vld [vmem:[%s8645_s10 + $0x2c4] sm:$0xf] }
 0x614   : > { %v5844_v45 = vadd.f32 %v5724_v41, %v4705_v56 }
 0x615   : > { %5556 = vmatmul.bf16.gmra.mxu1 %v7976_v50 }
 0x616   : > { %5924 = vst.msk [vmem:[%s10446_s30 + $0x1a8] sm:$0xff] %vm696_vm0, %v5844_v45  ;;  %8088 = vmatmul.msk.bf16.gmra.mxu3 %vm696_vm0, %v7980_v39  ;;  %v7579_v45 = vld [vmem:[%s8645_s10 + $0x2c0] sm:$0xf] }
 0x618   : > { %v4589_v58 = vpop.f32.mrf.mxu2  ;;  %v4383_v52 = vpop.f32.mrf.mxu0 }
 0x619   : > { %v5726_v53 = vpop.f32.mrf.mxu3  ;;  %v4590_v21 = vadd.f32 %v4589_v58, %v4380_v43  ;;  %v11356_v43 = vld [vmem:[#allocation14_spill] sm:$0xff]  ;;  %v7580_v58 = vor.u32 %v8442_v49, %v7579_v45 }
 0x61a   : > { %v5727_v25 = vadd.f32 %v5726_v53, %v5517_v2  ;;  %v5519_v42 = vpop.f32.mrf.mxu1  ;;  %v7996_v2 = vor.u32 %v8529_v63, %v7993_v48  ;;  %v7584_v53 = vor.u32 %v8441_v22, %v7581_v34  ;;  %v8009_v63 = vld [vmem:[%s8645_s10 + $0x2f8] sm:$0xf0]  ;;  %v11361_v22 = vld [vmem:[#allocation19_spill] sm:$0xff] }
 0x61b   : > { %4422 = vmatmul.bf16.gmra.mxu0 %v7564_v51  ;;  %v4707_v11 = vadd.f32 %v4590_v21, %v11354_v57  ;;  %v7999_v21 = vld [vmem:[%s8645_s10 + $0x2e0] sm:$0xf] }
 0x61c   : > { %v5845_v15 = vadd.f32 %v5727_v25, %v4706_v59 }
 0x61d   : > { %7669 = vmatmul.msk.bf16.gmra.mxu2 %vm696_vm0, %v7568_v17 }
 0x61e   : > { %5925 = vst.msk [vmem:[%s10446_s30 + $0x1b0] sm:$0xff] %vm696_vm0, %v5845_v15 }
 0x620   : > { %v4592_v20 = vpop.f32.mrf.mxu2  ;;  %v4385_v23 = vpop.f32.mrf.mxu0 }
 0x621   : > { %v5728_v26 = vpop.f32.mrf.mxu3  ;;  %v4593_v35 = vadd.f32 %v4592_v20, %v4383_v52  ;;  %v11357_v52 = vld [vmem:[#allocation15_spill] sm:$0xff] }
 0x622   : > { %v5729_v55 = vadd.f32 %v5728_v26, %v5519_v42  ;;  %v5522_v13 = vpop.f32.mrf.mxu1  ;;  %v8000_v26 = vor.u32 %v8532_v12, %v7999_v21 }
 0x623   : > { %v4708_v46 = vadd.f32 %v4593_v35, %v11355_v30  ;;  %v8443_v35 = vld [vmem:[%s8645_s10 + $0x2d4] sm:$0xf] }
 0x624   : > { %v5846_v0 = vadd.f32 %v5729_v55, %v4707_v11 }
 0x625   : > { %5561 = vmatmul.bf16.gmra.mxu1 %v7984_v5 }
 0x626   : > { %5926 = vst.msk [vmem:[%s10446_s30 + $0x1b8] sm:$0xff] %vm696_vm0, %v5846_v0  ;;  %8089 = vmatmul.msk.bf16.gmra.mxu3 %vm696_vm0, %v7988_v7  ;;  %v7587_v0 = vld [vmem:[%s8645_s10 + $0x2d0] sm:$0xf] }
 0x628   : > { %v4594_v36 = vpop.f32.mrf.mxu2  ;;  %v4388_v60 = vpop.f32.mrf.mxu0 }
 0x629   : > { %v5731_v40 = vpop.f32.mrf.mxu3  ;;  %v4595_v1 = vadd.f32 %v4594_v36, %v4385_v23  ;;  %v11358_v23 = vld [vmem:[#allocation16_spill] sm:$0xff]  ;;  %v7588_v36 = vor.u32 %v8444_v8, %v7587_v0  ;;  %v11364_v0 = vld [vmem:[#allocation21_spill] sm:$0xff] }
 0x62a   : > { %v5732_v37 = vadd.f32 %v5731_v40, %v5522_v13  ;;  %v5524_v6 = vpop.f32.mrf.mxu1  ;;  %v8004_v13 = vor.u32 %v8531_v9, %v8001_v47  ;;  %v7592_v40 = vor.u32 %v8443_v35, %v7589_v31 }
 0x62b   : > { %4427 = vmatmul.bf16.gmra.mxu0 %v7572_v61  ;;  %v4709_v44 = vadd.f32 %v4595_v1, %v11356_v43  ;;  %v8007_v1 = vld [vmem:[%s8645_s10 + $0x2f0] sm:$0xf] }
 0x62c   : > { %v5847_v32 = vadd.f32 %v5732_v37, %v4708_v46 }
 0x62d   : > { %7670 = vmatmul.msk.bf16.gmra.mxu2 %vm696_vm0, %v7576_v29 }
 0x62e   : > { %5927 = vst.msk [vmem:[%s10446_s30 + $0x1c0] sm:$0xff] %vm696_vm0, %v5847_v32 }
 0x630   : > { %v4597_v14 = vpop.f32.mrf.mxu2  ;;  %v4390_v50 = vpop.f32.mrf.mxu0 }
 0x631   : > { %v5733_v4 = vpop.f32.mrf.mxu3  ;;  %v4598_v28 = vadd.f32 %v4597_v14, %v4388_v60  ;;  %v11359_v60 = vld [vmem:[#allocation17_spill] sm:$0xff] }
 0x632   : > { %v5734_v56 = vadd.f32 %v5733_v4, %v5524_v6  ;;  %v5527_v41 = vpop.f32.mrf.mxu1  ;;  %v8008_v4 = vor.u32 %v8534_v24, %v8007_v1 }
 0x633   : > { %v4710_v38 = vadd.f32 %v4598_v28, %v11357_v52 }
 0x634   : > { %v5848_v39 = vadd.f32 %v5734_v56, %v4709_v44 }
 0x635   : > { %5566 = vmatmul.bf16.gmra.mxu1 %v7992_v18 }
 0x636   : > { %5928 = vst.msk [vmem:[%s10446_s30 + $0x1c8] sm:$0xff] %vm696_vm0, %v5848_v39  ;;  %8090 = vmatmul.msk.bf16.gmra.mxu3 %vm696_vm0, %v7996_v2 }
 0x638   : > { %v4599_v19 = vpop.f32.mrf.mxu2  ;;  %v4393_v17 = vpop.f32.mrf.mxu0 }
 0x639   : > { %v5736_v51 = vpop.f32.mrf.mxu3  ;;  %v4600_v15 = vadd.f32 %v4599_v19, %v4390_v50  ;;  %v11360_v50 = vld [vmem:[#allocation18_spill] sm:$0xff] }
 0x63a   : > { %v5737_v59 = vadd.f32 %v5736_v51, %v5527_v41  ;;  %v5529_v25 = vpop.f32.mrf.mxu1  ;;  %v8012_v41 = vor.u32 %v8533_v10, %v8009_v63  ;;  %v11366_v10 = vld [vmem:[#allocation23_spill] sm:$0xff] }
 0x63b   : > { %4432 = vmatmul.bf16.gmra.mxu0 %v7580_v58  ;;  %v4711_v57 = vadd.f32 %v4600_v15, %v11358_v23 }
 0x63c   : > { %v5849_v42 = vadd.f32 %v5737_v59, %v4710_v38  ;;  %v11362_v59 = vld [vmem:[#allocation20_spill] sm:$0xff] }
 0x63d   : > { %7671 = vmatmul.msk.bf16.gmra.mxu2 %vm696_vm0, %v7584_v53 }
 0x63e   : > { %5929 = vst.msk [vmem:[%s10446_s30 + $0x1d0] sm:$0xff] %vm696_vm0, %v5849_v42 }
 0x640   : > { %v4602_v27 = vpop.f32.mrf.mxu2  ;;  %v4395_v5 = vpop.f32.mrf.mxu0 }
 0x641   : > { %v5738_v20 = vpop.f32.mrf.mxu3  ;;  %v4603_v3 = vadd.f32 %v4602_v27, %v4393_v17 }
 0x642   : > { %v5739_v11 = vadd.f32 %v5738_v20, %v5529_v25  ;;  %v5532_v55 = vpop.f32.mrf.mxu1  ;;  %v11363_v20 = vld [vmem:[#allocation116_spill] sm:$0xff] }
 0x643   : > { %v4712_v30 = vadd.f32 %v4603_v3, %v11359_v60 }
 0x644   : > { %v5850_v7 = vadd.f32 %v5739_v11, %v4711_v57 }
 0x645   : > { %5571 = vmatmul.bf16.gmra.mxu1 %v8000_v26 }
 0x646   : > { %5930 = vst.msk [vmem:[%s10446_s30 + $0x1d8] sm:$0xff] %vm696_vm0, %v5850_v7  ;;  %8091 = vmatmul.msk.bf16.gmra.mxu3 %vm696_vm0, %v8004_v13 }
 0x648   : > { %v4604_v54 = vpop.f32.mrf.mxu2  ;;  %v4398_v29 = vpop.f32.mrf.mxu0 }
 0x649   : > { %v5741_v61 = vpop.f32.mrf.mxu3  ;;  %v4605_v32 = vadd.f32 %v4604_v54, %v4395_v5 }
 0x64a   : > { %v5742_v46 = vadd.f32 %v5741_v61, %v5532_v55  ;;  %v5534_v37 = vpop.f32.mrf.mxu1 }
 0x64b   : > { %4437 = vmatmul.bf16.gmra.mxu0 %v7588_v36  ;;  %v4713_v43 = vadd.f32 %v4605_v32, %v11360_v50 }
 0x64c   : > { %v5851_v6 = vadd.f32 %v5742_v46, %v4712_v30 }
 0x64d   : > { %7672 = vmatmul.msk.bf16.gmra.mxu2 %vm696_vm0, %v7592_v40 }
 0x64e   : > { %5931 = vst.msk [vmem:[%s10446_s30 + $0x1e0] sm:$0xff] %vm696_vm0, %v5851_v6 }
 0x650   : > { %v4607_v48 = vpop.f32.mrf.mxu2  ;;  %v4400_v18 = vpop.f32.mrf.mxu0 }
 0x651   : > { %v5743_v14 = vpop.f32.mrf.mxu3  ;;  %v4608_v39 = vadd.f32 %v4607_v48, %v4398_v29  ;;  %v11365_v29 = vld [vmem:[#allocation22_spill] sm:$0xff] }
 0x652   : > { %v5744_v44 = vadd.f32 %v5743_v14, %v5534_v37  ;;  %v5537_v56 = vpop.f32.mrf.mxu1 }
 0x653   : > { %v4714_v34 = vadd.f32 %v4608_v39, %v11361_v22 }
 0x654   : > { %v5852_v2 = vadd.f32 %v5744_v44, %v4713_v43 }
 0x655   : > { %5576 = vmatmul.bf16.gmra.mxu1 %v8008_v4 }
 0x656   : > { %5932 = vst.msk [vmem:[%s10446_s30 + $0x1e8] sm:$0xff] %vm696_vm0, %v5852_v2  ;;  %8092 = vmatmul.msk.bf16.gmra.mxu3 %vm696_vm0, %v8012_v41 }
 0x658   : > { %v4609_v45 = vpop.f32.mrf.mxu2  ;;  %v4403_v28 = vpop.f32.mrf.mxu0 }
 0x659   : > { %v5746_v49 = vpop.f32.mrf.mxu3  ;;  %v4610_v53 = vadd.f32 %v4609_v45, %v4400_v18 }
 0x65a   : > { %v5747_v19 = vadd.f32 %v5746_v49, %v5537_v56  ;;  %v5539_v58 = vpop.f32.mrf.mxu1  ;;  %v11367_v56 = vld [vmem:[#allocation24_spill] sm:$0xff] }
 0x65b   : > { %v4715_v25 = vadd.f32 %v4610_v53, %v11362_v59 }
 0x65c   : > { %v5853_v51 = vadd.f32 %v5747_v19, %v4714_v34  ;;  %v11368_v19 = vld [vmem:[#allocation25_spill] sm:$0xff] }
 0x65e   : > { %5933 = vst.msk [vmem:[%s10446_s30 + $0x1f0] sm:$0xff] %vm696_vm0, %v5853_v51 }
 0x660   : > { %v4612_v17 = vpop.f32.mrf.mxu2  ;;  %v4405_v38 = vpop.f32.mrf.mxu0 }
 0x661   : > { %v5748_v52 = vpop.f32.mrf.mxu3  ;;  %v4613_v12 = vadd.f32 %v4612_v17, %v4403_v28 }
 0x662   : > { %v5749_v42 = vadd.f32 %v5748_v52, %v5539_v58  ;;  %v5542_v15 = vpop.f32.mrf.mxu1 }
 0x663   : > { %v4716_v26 = vadd.f32 %v4613_v12, %v11363_v20 }
 0x664   : > { %v5854_v21 = vadd.f32 %v5749_v42, %v4715_v25  ;;  %v11369_v42 = vld [vmem:[#allocation26_spill] sm:$0xff] }
 0x666   : > { %5934 = vst.msk [vmem:[%s10446_s30 + $0x1f8] sm:$0xff] %vm696_vm0, %v5854_v21 }
 0x668   : > { %v4614_v9 = vpop.f32.mrf.mxu2  ;;  %v4408_v27 = vpop.f32.mrf.mxu0 }
 0x669   : > { %v5751_v47 = vpop.f32.mrf.mxu3  ;;  %v4615_v11 = vadd.f32 %v4614_v9, %v4405_v38 }
 0x66a   : > { %v5752_v5 = vadd.f32 %v5751_v47, %v5542_v15  ;;  %v5544_v23 = vpop.f32.mrf.mxu1 }
 0x66b   : > { %v4717_v8 = vadd.f32 %v4615_v11, %v11364_v0 }
 0x66c   : > { %v5855_v57 = vadd.f32 %v5752_v5, %v4716_v26  ;;  %v11370_v5 = vld [vmem:[#allocation27_spill] sm:$0xff] }
 0x66e   : > { %5935 = vst.msk [vmem:[%s10446_s30 + $0x200] sm:$0xff] %vm696_vm0, %v5855_v57 }
 0x670   : > { %v4617_v55 = vpop.f32.mrf.mxu2  ;;  %v4410_v7 = vpop.f32.mrf.mxu0 }
 0x671   : > { %v5753_v13 = vpop.f32.mrf.mxu3  ;;  %v4618_v54 = vadd.f32 %v4617_v55, %v4408_v27 }
 0x672   : > { %v5754_v3 = vadd.f32 %v5753_v13, %v5544_v23  ;;  %v5547_v35 = vpop.f32.mrf.mxu1 }
 0x673   : > { %v4718_v60 = vadd.f32 %v4618_v54, %v11365_v29 }
 0x674   : > { %v5856_v31 = vadd.f32 %v5754_v3, %v4717_v8  ;;  %v11371_v3 = vld [vmem:[#allocation28_spill] sm:$0xff] }
 0x676   : > { %5936 = vst.msk [vmem:[%s10446_s30 + $0x208] sm:$0xff] %vm696_vm0, %v5856_v31 }
 0x678   : > { %v4619_v36 = vpop.f32.mrf.mxu2  ;;  %v4413_v40 = vpop.f32.mrf.mxu0 }
 0x679   : > { %v5756_v61 = vpop.f32.mrf.mxu3  ;;  %v4620_v6 = vadd.f32 %v4619_v36, %v4410_v7 }
 0x67a   : > { %v5757_v30 = vadd.f32 %v5756_v61, %v5547_v35  ;;  %v5549_v46 = vpop.f32.mrf.mxu1 }
 0x67b   : > { %v4719_v63 = vadd.f32 %v4620_v6, %v11366_v10 }
 0x67c   : > { %v5857_v37 = vadd.f32 %v5757_v30, %v4718_v60  ;;  %v11372_v60 = vld [vmem:[#allocation29_spill] sm:$0xff] }
 0x67e   : > { %5937 = vst.msk [vmem:[%s10446_s30 + $0x210] sm:$0xff] %vm696_vm0, %v5857_v37 }
 0x680   : > { %v4622_v32 = vpop.f32.mrf.mxu2  ;;  %v4415_v24 = vpop.f32.mrf.mxu0 }
 0x681   : > { %v5758_v1 = vpop.f32.mrf.mxu3  ;;  %v4623_v18 = vadd.f32 %v4622_v32, %v4413_v40 }
 0x682   : > { %v5759_v48 = vadd.f32 %v5758_v1, %v5549_v46  ;;  %v5552_v14 = vpop.f32.mrf.mxu1 }
 0x683   : > { %v4720_v41 = vadd.f32 %v4623_v18, %v11367_v56 }
 0x684   : > { %v5858_v4 = vadd.f32 %v5759_v48, %v4719_v63  ;;  %v11373_v63 = vld [vmem:[#allocation30_spill] sm:$0xff] }
 0x686   : > { %5938 = vst.msk [vmem:[%s10446_s30 + $0x218] sm:$0xff] %vm696_vm0, %v5858_v4 }
 0x688   : > { %v4624_v50 = vpop.f32.mrf.mxu2  ;;  %v4418_v44 = vpop.f32.mrf.mxu0 }
 0x689   : > { %v5761_v43 = vpop.f32.mrf.mxu3  ;;  %v4625_v49 = vadd.f32 %v4624_v50, %v4415_v24 }
 0x68a   : > { %v5762_v2 = vadd.f32 %v5761_v43, %v5552_v14  ;;  %v5554_v39 = vpop.f32.mrf.mxu1 }
 0x68b   : > { %v4721_v58 = vadd.f32 %v4625_v49, %v11368_v19 }
 0x68c   : > { %v5859_v45 = vadd.f32 %v5762_v2, %v4720_v41  ;;  %v11374_v41 = vld [vmem:[#allocation31_spill] sm:$0xff] }
 0x68e   : > { %5939 = vst.msk [vmem:[%s10446_s30 + $0x220] sm:$0xff] %vm696_vm0, %v5859_v45 }
 0x690   : > { %v4627_v28 = vpop.f32.mrf.mxu2  ;;  %v4420_v34 = vpop.f32.mrf.mxu0 }
 0x691   : > { %v5763_v22 = vpop.f32.mrf.mxu3  ;;  %v4628_v52 = vadd.f32 %v4627_v28, %v4418_v44 }
 0x692   : > { %v5764_v51 = vadd.f32 %v5763_v22, %v5554_v39  ;;  %v5557_v53 = vpop.f32.mrf.mxu1 }
 0x693   : > { %v4722_v15 = vadd.f32 %v4628_v52, %v11369_v42 }
 0x694   : > { %v5860_v17 = vadd.f32 %v5764_v51, %v4721_v58  ;;  %v11375_v58 = vld [vmem:[#allocation32_spill] sm:$0xff] }
 0x696   : > { %5940 = vst.msk [vmem:[%s10446_s30 + $0x228] sm:$0xff] %vm696_vm0, %v5860_v17 }
 0x698   : > { %v4629_v38 = vpop.f32.mrf.mxu2  ;;  %v4423_v25 = vpop.f32.mrf.mxu0 }
 0x699   : > { %v5766_v59 = vpop.f32.mrf.mxu3  ;;  %v4630_v47 = vadd.f32 %v4629_v38, %v4420_v34 }
 0x69a   : > { %v5767_v21 = vadd.f32 %v5766_v59, %v5557_v53  ;;  %v5559_v12 = vpop.f32.mrf.mxu1 }
 0x69b   : > { %v4723_v23 = vadd.f32 %v4630_v47, %v11370_v5 }
 0x69c   : > { %v5861_v9 = vadd.f32 %v5767_v21, %v4722_v15 }
 0x69e   : > { %5941 = vst.msk [vmem:[%s10446_s30 + $0x230] sm:$0xff] %vm696_vm0, %v5861_v9 }
 0x6a0   : > { %v4632_v27 = vpop.f32.mrf.mxu2  ;;  %v4425_v26 = vpop.f32.mrf.mxu0 }
 0x6a1   : > { %v5768_v20 = vpop.f32.mrf.mxu3  ;;  %v4633_v13 = vadd.f32 %v4632_v27, %v4423_v25 }
 0x6a2   : > { %v5769_v57 = vadd.f32 %v5768_v20, %v5559_v12  ;;  %v5562_v11 = vpop.f32.mrf.mxu1 }
 0x6a3   : > { %v4724_v35 = vadd.f32 %v4633_v13, %v11371_v3 }
 0x6a4   : > { %v5862_v55 = vadd.f32 %v5769_v57, %v4723_v23 }
 0x6a6   : > { %5942 = vst.msk [vmem:[%s10446_s30 + $0x238] sm:$0xff] %vm696_vm0, %v5862_v55 }
 0x6a8   : > { %v4634_v7 = vpop.f32.mrf.mxu2  ;;  %v4428_v8 = vpop.f32.mrf.mxu0 }
 0x6a9   : > { %v5771_v0 = vpop.f32.mrf.mxu3  ;;  %v4635_v61 = vadd.f32 %v4634_v7, %v4425_v26 }
 0x6aa   : > { %v5772_v31 = vadd.f32 %v5771_v0, %v5562_v11  ;;  %v5564_v54 = vpop.f32.mrf.mxu1 }
 0x6ab   : > { %v4725_v30 = vadd.f32 %v4635_v61, %v11372_v60 }
 0x6ac   : > { %v5863_v36 = vadd.f32 %v5772_v31, %v4724_v35 }
 0x6ae   : > { %5943 = vst.msk [vmem:[%s10446_s30 + $0x240] sm:$0xff] %vm696_vm0, %v5863_v36 }
 0x6b0   : > { %v4637_v40 = vpop.f32.mrf.mxu2  ;;  %v4430_v6 = vpop.f32.mrf.mxu0 }
 0x6b1   : > { %v5773_v29 = vpop.f32.mrf.mxu3  ;;  %v4638_v1 = vadd.f32 %v4637_v40, %v4428_v8 }
 0x6b2   : > { %v5774_v46 = vadd.f32 %v5773_v29, %v5564_v54  ;;  %v5567_v37 = vpop.f32.mrf.mxu1 }
 0x6b3   : > { %v4726_v48 = vadd.f32 %v4638_v1, %v11373_v63 }
 0x6b4   : > { %v5864_v32 = vadd.f32 %v5774_v46, %v4725_v30 }
 0x6b6   : > { %5944 = vst.msk [vmem:[%s10446_s30 + $0x248] sm:$0xff] %vm696_vm0, %v5864_v32 }
 0x6b8   : > { %v4639_v24 = vpop.f32.mrf.mxu2  ;;  %v4433_v50 = vpop.f32.mrf.mxu0 }
 0x6b9   : > { %v5776_v10 = vpop.f32.mrf.mxu3  ;;  %v4640_v43 = vadd.f32 %v4639_v24, %v4430_v6 }
 0x6ba   : > { %v5777_v14 = vadd.f32 %v5776_v10, %v5567_v37  ;;  %v5569_v4 = vpop.f32.mrf.mxu1 }
 0x6bb   : > { %v4727_v2 = vadd.f32 %v4640_v43, %v11374_v41 }
 0x6bc   : > { %v5865_v18 = vadd.f32 %v5777_v14, %v4726_v48 }
 0x6be   : > { %5945 = vst.msk [vmem:[%s10446_s30 + $0x250] sm:$0xff] %vm696_vm0, %v5865_v18 }
 0x6c0   : > { %v4642_v44 = vpop.f32.mrf.mxu2  ;;  %v4435_v22 = vpop.f32.mrf.mxu0 }
 0x6c1   : > { %v5778_v56 = vpop.f32.mrf.mxu3  ;;  %v4643_v28 = vadd.f32 %v4642_v44, %v4433_v50 }
 0x6c2   : > { %v5779_v39 = vadd.f32 %v5778_v56, %v5569_v4  ;;  %v5572_v45 = vpop.f32.mrf.mxu1 }
 0x6c3   : > { %v4728_v51 = vadd.f32 %v4643_v28, %v11375_v58 }
 0x6c4   : > { %v5866_v49 = vadd.f32 %v5779_v39, %v4727_v2 }
 0x6c6   : > { %5946 = vst.msk [vmem:[%s10446_s30 + $0x258] sm:$0xff] %vm696_vm0, %v5866_v49 }
 0x6c8   : > { %v4644_v34 = vpop.f32.mrf.mxu2  ;;  %v4438_v59 = vpop.f32.mrf.mxu0 }
 0x6c9   : > { %v5781_v19 = vpop.f32.mrf.mxu3  ;;  %v4645_v38 = vadd.f32 %v4644_v34, %v4435_v22 }
 0x6ca   : > { %v5782_v53 = vadd.f32 %v5781_v19, %v5572_v45  ;;  %v5574_v52 = vpop.f32.mrf.mxu1 }
 0x6cb   : > { %v4729_v15 = vadd.f32 %v4645_v38, %v10409_v16 }
 0x6cc   : > { %v5867_v17 = vadd.f32 %v5782_v53, %v4728_v51 }
 0x6ce   : > { %5947 = vst.msk [vmem:[%s10446_s30 + $0x260] sm:$0xff] %vm696_vm0, %v5867_v17 }
 0x6d0   : > { %v4647_v25 = vpop.f32.mrf.mxu2  ;;  %v4440_v5 = vpop.f32.mrf.mxu0 }
 0x6d1   : > { %v5783_v42 = vpop.f32.mrf.mxu3  ;;  %v4648_v9 = vadd.f32 %v4647_v25, %v4438_v59 }
 0x6d2   : > { %v5784_v21 = vadd.f32 %v5783_v42, %v5574_v52  ;;  %v5577_v47 = vpop.f32.mrf.mxu1 }
 0x6d3   : > { %v4730_v20 = vadd.f32 %v4648_v9, %v10423_v62 }
 0x6d4   : > { %v5868_v12 = vadd.f32 %v5784_v21, %v4729_v15 }
 0x6d6   : > { %5948 = vst.msk [vmem:[%s10446_s30 + $0x268] sm:$0xff] %vm696_vm0, %v5868_v12 }
 0x6d8   : > { %v4649_v23 = vpop.f32.mrf.mxu2 }
 0x6d9   : > { %v5786_v27 = vpop.f32.mrf.mxu3  ;;  %v4650_v11 = vadd.f32 %v4649_v23, %v4440_v5 }
 0x6da   : > { %v5787_v26 = vadd.f32 %v5786_v27, %v5577_v47  ;;  %v5579_v55 = vpop.f32.mrf.mxu1 }
 0x6db   : > { %v4731_v16 = vadd.f32 %v4650_v11, %v10434_v33 }
 0x6dc   : > { %v5869_v57 = vadd.f32 %v5787_v26, %v4730_v20 }
 0x6de   : > { %5949 = vst.msk [vmem:[%s10446_s30 + $0x270] sm:$0xff] %vm696_vm0, %v5869_v57 }
 0x6e1   : > { %v5788_v13 = vpop.f32.mrf.mxu3 }
 0x6e2   : > { %v5789_v7 = vadd.f32 %v5788_v13, %v5579_v55 }
 0x6e4   : > { %v5870_v0 = vadd.f32 %v5789_v7, %v4731_v16 }
 0x6e6   : > { %5950 = vst.msk [vmem:[%s10446_s30 + $0x278] sm:$0xff] %vm696_vm0, %v5870_v0 }
 0x6e7 PF: > { %s13_s12 = sadd.s32 1, %s8568_s12  }
 0x6e8   : > { %p10_p4 = scmp.ge.s32.totalorder %s13_s12, 4  }
 0x6ea   :  { %12 = sbr.rel (!%p10_p4) target bundleno = 1 (0x1), region = 66 }

</bundles_post_ra>
